<compile_context>
chip_gen: v6e
topology: v6e:2x2x1
jax: 0.10.0
libtpu: 0.0.40
codegen_flags: <defaults>
</compile_context>

<pallas_src>
import functools

import numpy as np
import jax
import jax.numpy as jnp
from jax import lax
from jax.experimental import pallas as pl
from jax.experimental.pallas import tpu as pltpu


def _round_up(x, m):
    return (x + m - 1) // m * m


def _to_i32_const(v):
    """Python int -> two's-complement int32 value (as a Python int)."""
    v &= 0xFFFFFFFF
    return v - (1 << 32) if v >= (1 << 31) else v


_GOLDEN = _to_i32_const(0x9E3779B9)   # -1640531527
_MIX1 = _to_i32_const(0x85EBCA6B)     # -2048144789
_MIX2 = _to_i32_const(0xC2B2AE35)     # -1028477387
_INV_2_23 = 1.0 / float(1 << 23)


def _srl(h, k):
    """Logical right shift on int32 lanes (arithmetic shift + mask)."""
    return jnp.bitwise_and(jnp.right_shift(h, k), jnp.int32((1 << (32 - k)) - 1))


def _fmix32(h):
    """MurmurHash3 finalizer (avalanche) on int32 lanes."""
    h = jnp.bitwise_xor(h, _srl(h, 16))
    h = h * jnp.int32(_MIX1)
    h = jnp.bitwise_xor(h, _srl(h, 13))
    h = h * jnp.int32(_MIX2)
    h = jnp.bitwise_xor(h, _srl(h, 16))
    return h


def _hash_u01(idx, salt):
    """Counter-based U[0,1) (23-bit granularity) from an int32 element index."""
    h = idx * jnp.int32(_GOLDEN) + jnp.int32(salt)
    h = _fmix32(h)
    return jnp.bitwise_and(h, jnp.int32(0x7FFFFF)).astype(jnp.float32) * _INV_2_23


def _add_noise_kernel(x_ref, mu_ref, sigma_ref, o_ref, *,
                      r_mu, r_sigma, seed, total_cols):
    i = pl.program_id(0)
    j = pl.program_id(1)
    tb, tn = o_ref.shape

    # Distinct, well-mixed streams per (seed, purpose); salts are compile-time
    # int32 constants (no sequential-seed correlation across tiles).
    salt_m = _to_i32_const(seed * 0x9E3779B9 + 0x0000001B)
    salt_r = _to_i32_const(seed * 0x9E3779B9 + 0x7F4A7C15)
    salt_t = _to_i32_const(seed * 0x9E3779B9 + 0x2545F491)

    # Global element coordinates of this tile (deterministic per element).
    rows = i * tb + lax.broadcasted_iota(jnp.int32, (tb, tn), 0)
    cols = j * tn + lax.broadcasted_iota(jnp.int32, (tb, tn), 1)
    idx = rows * jnp.int32(total_cols) + cols

    # mMat ~ U(mu - r_mu, mu + r_mu), per element.
    u_m = _hash_u01(idx, salt_m)

    # sMat ~ N(sigma, r_sigma): Box-Muller drawn on half the batch rows; the
    # cos/sin pair supplies the other half (independent standard normals).
    if tb >= 16:
        half = tb // 2
        idx_h = idx[:half, :]
        u1 = _hash_u01(idx_h, salt_r)                 # radius uniform (23-bit)
        u2 = _hash_u01(idx_h, salt_t)                 # angle uniform
        r = jnp.sqrt(-2.0 * jnp.log(1.0 - u1))        # 1-u1 in (0,1] -> finite
        theta = (2.0 * u2 - 1.0) * np.pi              # directly in [-pi, pi)
        z = jnp.concatenate([r * jnp.cos(theta), r * jnp.sin(theta)], axis=0)
    else:
        u1 = _hash_u01(idx, salt_r)
        u2 = _hash_u01(idx, salt_t)
        r = jnp.sqrt(-2.0 * jnp.log(1.0 - u1))
        theta = (2.0 * u2 - 1.0) * np.pi
        z = r * jnp.cos(theta)

    mu = mu_ref[...]        # (1, TN), broadcasts over batch rows
    sigma = sigma_ref[...]  # (1, TN)
    m_mat = (mu - r_mu) + (2.0 * r_mu) * u_m          # U(mu - r_mu, mu + r_mu)
    s_mat = sigma + r_sigma * z                       # N(sigma, r_sigma)
    o_ref[...] = s_mat * x_ref[...] + m_mat


def add_noise(x, mu, sigma, seed, *, r_mu, r_sigma, max_tb=256, max_tn=2048):
    """x: (B,N) f32; mu, sigma: (1,N) f32; seed: python int -> (B,N) f32."""
    B, N = x.shape
    x = x.astype(jnp.float32)
    mu = jnp.reshape(mu, (1, N)).astype(jnp.float32)
    sigma = jnp.reshape(sigma, (1, N)).astype(jnp.float32)

    TB = min(_round_up(B, 8), max_tb)          # sublane-aligned batch tile
    TN = min(_round_up(N, 128), max_tn)        # lane-dense entries tile
    # v7x has 2 TensorCores per chip: make sure small inputs still give >= 2
    # tiles along a "parallel" axis so one core is not idle.
    if pl.cdiv(B, TB) * pl.cdiv(N, TN) < 2:
        if N > 128:
            TN = _round_up(pl.cdiv(N, 2), 128)
        elif B > 8:
            TB = _round_up(pl.cdiv(B, 2), 8)

    grid = (pl.cdiv(B, TB), pl.cdiv(N, TN))
    total_cols = grid[1] * TN                  # static stride for element index

    kernel = functools.partial(
        _add_noise_kernel,
        r_mu=float(r_mu), r_sigma=float(r_sigma),
        seed=int(seed), total_cols=int(total_cols))

    return pl.pallas_call(
        kernel,
        out_shape=jax.ShapeDtypeStruct((B, N), jnp.float32),
        grid=grid,
        in_specs=[
            pl.BlockSpec((TB, TN), lambda i, j: (i, j)),   # x
            pl.BlockSpec((1, TN), lambda i, j: (0, j)),    # mu (per-entry)
            pl.BlockSpec((1, TN), lambda i, j: (0, j)),    # sigma (per-entry)
        ],
        out_specs=pl.BlockSpec((TB, TN), lambda i, j: (i, j)),
        compiler_params=pltpu.CompilerParams(
            dimension_semantics=("parallel", "parallel"),
            vmem_limit_bytes=48 * 1024 * 1024,
        ),
        cost_estimate=pl.CostEstimate(
            flops=60 * B * N,                  # hash + Box-Muller polynomials
            transcendentals=2 * B * N,         # (log+sqrt+cos+sin) on half rows
            bytes_accessed=(2 * B * N + 2 * N) * 4,
        ),
    )(x, mu, sigma)


def add_noise_forward(key, x, seed, *, n_mu, n_sigma, r_mu, r_sigma):
    """Full forward matching AddNoise.forward: per-entry mu/sigma via
    jax.random (mirrors the module's host-side per-entry RNG); per-element
    noise generated inside the kernel."""
    _, N = x.shape
    k_mu, k_sigma = jax.random.split(key)
    mu = jax.random.uniform(k_mu, (1, N), minval=-n_mu, maxval=n_mu,
                            dtype=jnp.float32)
    sigma = jax.random.uniform(k_sigma, (1, N), minval=1.0, maxval=n_sigma,
                               dtype=jnp.float32)
    out = add_noise(x, mu, sigma, seed, r_mu=r_mu, r_sigma=r_sigma)
    return out, (mu, sigma)


if __name__ == "__main__":
    # Module hyper-parameters (deterministic, set in-script).
    n_mu, n_sigma, r_mu, r_sigma = 0.5, 2.0, 0.1, 0.05

    key = jax.random.PRNGKey(0)
    k_x, k_noise = jax.random.split(key)

    # Small (batchSize, numOfEntries); N deliberately NOT a multiple of 128 so
    # the masked edge-block path (no wrapper pad/slice) is exercised.
    B, N = 32, 1200
    x = jax.random.normal(k_x, (B, N), dtype=jnp.float32)
    seed = 1234

    out, (mu, sigma) = add_noise_forward(
        k_noise, x, seed, n_mu=n_mu, n_sigma=n_sigma, r_mu=r_mu, r_sigma=r_sigma)
    out = jax.block_until_ready(out)
    assert out.shape == (B, N) and out.dtype == jnp.float32

    # The in-kernel noise stream is deterministic for a fixed (seed, geometry),
    # so re-running with x=0 and x=1 recovers mMat and sMat exactly.
    m_mat = add_noise(jnp.zeros_like(x), mu, sigma, seed,
                      r_mu=r_mu, r_sigma=r_sigma)
    s_mat = add_noise(jnp.ones_like(x), mu, sigma, seed,
                      r_mu=r_mu, r_sigma=r_sigma) - m_mat

    # out == sMat * x + mMat with identical draws (same affine form as module).
    assert jnp.allclose(out, s_mat * x + m_mat, atol=1e-4, rtol=1e-4)
    # mMat[b,j] ~ U(mu[j]-r_mu, mu[j]+r_mu): hard support bounds.
    assert bool(jnp.all(m_mat >= mu - r_mu - 1e-5))
    assert bool(jnp.all(m_mat <= mu + r_mu + 1e-5))
    # sMat[b,j] ~ N(sigma[j], r_sigma): Box-Muller with 23-bit uniforms is
    # bounded by ~5.7 sigma, so 8 sigma is a safe deterministic sanity bound.
    assert bool(jnp.all(jnp.abs(s_mat - sigma) <= 8.0 * r_sigma))
    assert bool(jnp.all(jnp.isfinite(out)))

    print("KERNEL_OK")
</pallas_src>

<mosaic_0001>
module attributes {stable_mosaic.version = 11 : i64} {
  func.func @_add_noise_kernel(%arg0: i32, %arg1: i32, %arg2: memref<32x640xf32, #tpu.memory_space<vmem>>, %arg3: memref<1x640xf32, #tpu.memory_space<vmem>>, %arg4: memref<1x640xf32, #tpu.memory_space<vmem>>, %arg5: memref<32x640xf32, #tpu.memory_space<vmem>>) attributes {dimension_semantics = [#tpu.dimension_semantics<parallel>, #tpu.dimension_semantics<parallel>], iteration_bounds = array<i64: 1, 2>, scalar_prefetch = 0 : i64, scratch_operands = 0 : i64, tpu.core_type = #tpu.core_type<tc>, window_params = [{transform_indices = @transform_0, window_bounds = array<i64: 32, 640>}, {transform_indices = @transform_1, window_bounds = array<i64: 1, 640>}, {transform_indices = @transform_2, window_bounds = array<i64: 1, 640>}, {transform_indices = @transform_3, window_bounds = array<i64: 32, 640>}]} {
    %c32_i32 = arith.constant 32 : i32
    %0 = arith.muli %arg0, %c32_i32 : i32
    %1 = tpu.iota {dimensions = array<i32: 0>} : vector<32x640xi32>
    %2 = vector.broadcast %0 : i32 to vector<32x640xi32>
    %3 = arith.addi %2, %1 : vector<32x640xi32>
    %c640_i32 = arith.constant 640 : i32
    %4 = arith.muli %arg1, %c640_i32 : i32
    %5 = tpu.iota {dimensions = array<i32: 1>} : vector<32x640xi32>
    %6 = vector.broadcast %4 : i32 to vector<32x640xi32>
    %7 = arith.addi %6, %5 : vector<32x640xi32>
    %c1280_i32 = arith.constant 1280 : i32
    %8 = vector.broadcast %c1280_i32 : i32 to vector<32x640xi32>
    %9 = arith.muli %3, %8 : vector<32x640xi32>
    %10 = arith.addi %9, %7 : vector<32x640xi32>
    %c-1640531527_i32 = arith.constant -1640531527 : i32
    %11 = vector.broadcast %c-1640531527_i32 : i32 to vector<32x640xi32>
    %12 = arith.muli %10, %11 : vector<32x640xi32>
    %c-1486307875_i32 = arith.constant -1486307875 : i32
    %13 = vector.broadcast %c-1486307875_i32 : i32 to vector<32x640xi32>
    %14 = arith.addi %12, %13 : vector<32x640xi32>
    %c16_i32 = arith.constant 16 : i32
    %15 = vector.broadcast %c16_i32 : i32 to vector<32x640xi32>
    %16 = arith.shrsi %14, %15 : vector<32x640xi32>
    %c65535_i32 = arith.constant 65535 : i32
    %17 = vector.broadcast %c65535_i32 : i32 to vector<32x640xi32>
    %18 = arith.andi %16, %17 : vector<32x640xi32>
    %19 = arith.xori %14, %18 : vector<32x640xi32>
    %c-2048144789_i32 = arith.constant -2048144789 : i32
    %20 = vector.broadcast %c-2048144789_i32 : i32 to vector<32x640xi32>
    %21 = arith.muli %19, %20 : vector<32x640xi32>
    %c13_i32 = arith.constant 13 : i32
    %22 = vector.broadcast %c13_i32 : i32 to vector<32x640xi32>
    %23 = arith.shrsi %21, %22 : vector<32x640xi32>
    %c524287_i32 = arith.constant 524287 : i32
    %24 = vector.broadcast %c524287_i32 : i32 to vector<32x640xi32>
    %25 = arith.andi %23, %24 : vector<32x640xi32>
    %26 = arith.xori %21, %25 : vector<32x640xi32>
    %c-1028477387_i32 = arith.constant -1028477387 : i32
    %27 = vector.broadcast %c-1028477387_i32 : i32 to vector<32x640xi32>
    %28 = arith.muli %26, %27 : vector<32x640xi32>
    %c16_i32_0 = arith.constant 16 : i32
    %29 = vector.broadcast %c16_i32_0 : i32 to vector<32x640xi32>
    %30 = arith.shrsi %28, %29 : vector<32x640xi32>
    %c65535_i32_1 = arith.constant 65535 : i32
    %31 = vector.broadcast %c65535_i32_1 : i32 to vector<32x640xi32>
    %32 = arith.andi %30, %31 : vector<32x640xi32>
    %33 = arith.xori %28, %32 : vector<32x640xi32>
    %c8388607_i32 = arith.constant 8388607 : i32
    %34 = vector.broadcast %c8388607_i32 : i32 to vector<32x640xi32>
    %35 = arith.andi %33, %34 : vector<32x640xi32>
    %36 = arith.sitofp %35 : vector<32x640xi32> to vector<32x640xf32>
    %cst = arith.constant 1.1920929E-7 : f32
    %37 = vector.broadcast %cst : f32 to vector<32x640xf32>
    %38 = arith.mulf %36, %37 : vector<32x640xf32>
    %39 = vector.extract_strided_slice %10 {offsets = [0, 0], sizes = [16, 640], strides = [1, 1]} : vector<32x640xi32> to vector<16x640xi32>
    %c-1640531527_i32_2 = arith.constant -1640531527 : i32
    %40 = vector.broadcast %c-1640531527_i32_2 : i32 to vector<16x640xi32>
    %41 = arith.muli %39, %40 : vector<16x640xi32>
    %c649279959_i32 = arith.constant 649279959 : i32
    %42 = vector.broadcast %c649279959_i32 : i32 to vector<16x640xi32>
    %43 = arith.addi %41, %42 : vector<16x640xi32>
    %c16_i32_3 = arith.constant 16 : i32
    %44 = vector.broadcast %c16_i32_3 : i32 to vector<16x640xi32>
    %45 = arith.shrsi %43, %44 : vector<16x640xi32>
    %c65535_i32_4 = arith.constant 65535 : i32
    %46 = vector.broadcast %c65535_i32_4 : i32 to vector<16x640xi32>
    %47 = arith.andi %45, %46 : vector<16x640xi32>
    %48 = arith.xori %43, %47 : vector<16x640xi32>
    %c-2048144789_i32_5 = arith.constant -2048144789 : i32
    %49 = vector.broadcast %c-2048144789_i32_5 : i32 to vector<16x640xi32>
    %50 = arith.muli %48, %49 : vector<16x640xi32>
    %c13_i32_6 = arith.constant 13 : i32
    %51 = vector.broadcast %c13_i32_6 : i32 to vector<16x640xi32>
    %52 = arith.shrsi %50, %51 : vector<16x640xi32>
    %c524287_i32_7 = arith.constant 524287 : i32
    %53 = vector.broadcast %c524287_i32_7 : i32 to vector<16x640xi32>
    %54 = arith.andi %52, %53 : vector<16x640xi32>
    %55 = arith.xori %50, %54 : vector<16x640xi32>
    %c-1028477387_i32_8 = arith.constant -1028477387 : i32
    %56 = vector.broadcast %c-1028477387_i32_8 : i32 to vector<16x640xi32>
    %57 = arith.muli %55, %56 : vector<16x640xi32>
    %c16_i32_9 = arith.constant 16 : i32
    %58 = vector.broadcast %c16_i32_9 : i32 to vector<16x640xi32>
    %59 = arith.shrsi %57, %58 : vector<16x640xi32>
    %c65535_i32_10 = arith.constant 65535 : i32
    %60 = vector.broadcast %c65535_i32_10 : i32 to vector<16x640xi32>
    %61 = arith.andi %59, %60 : vector<16x640xi32>
    %62 = arith.xori %57, %61 : vector<16x640xi32>
    %c8388607_i32_11 = arith.constant 8388607 : i32
    %63 = vector.broadcast %c8388607_i32_11 : i32 to vector<16x640xi32>
    %64 = arith.andi %62, %63 : vector<16x640xi32>
    %65 = arith.sitofp %64 : vector<16x640xi32> to vector<16x640xf32>
    %cst_12 = arith.constant 1.1920929E-7 : f32
    %66 = vector.broadcast %cst_12 : f32 to vector<16x640xf32>
    %67 = arith.mulf %65, %66 : vector<16x640xf32>
    %c-1640531527_i32_13 = arith.constant -1640531527 : i32
    %68 = vector.broadcast %c-1640531527_i32_13 : i32 to vector<16x640xi32>
    %69 = arith.muli %39, %68 : vector<16x640xi32>
    %c-860966317_i32 = arith.constant -860966317 : i32
    %70 = vector.broadcast %c-860966317_i32 : i32 to vector<16x640xi32>
    %71 = arith.addi %69, %70 : vector<16x640xi32>
    %c16_i32_14 = arith.constant 16 : i32
    %72 = vector.broadcast %c16_i32_14 : i32 to vector<16x640xi32>
    %73 = arith.shrsi %71, %72 : vector<16x640xi32>
    %c65535_i32_15 = arith.constant 65535 : i32
    %74 = vector.broadcast %c65535_i32_15 : i32 to vector<16x640xi32>
    %75 = arith.andi %73, %74 : vector<16x640xi32>
    %76 = arith.xori %71, %75 : vector<16x640xi32>
    %c-2048144789_i32_16 = arith.constant -2048144789 : i32
    %77 = vector.broadcast %c-2048144789_i32_16 : i32 to vector<16x640xi32>
    %78 = arith.muli %76, %77 : vector<16x640xi32>
    %c13_i32_17 = arith.constant 13 : i32
    %79 = vector.broadcast %c13_i32_17 : i32 to vector<16x640xi32>
    %80 = arith.shrsi %78, %79 : vector<16x640xi32>
    %c524287_i32_18 = arith.constant 524287 : i32
    %81 = vector.broadcast %c524287_i32_18 : i32 to vector<16x640xi32>
    %82 = arith.andi %80, %81 : vector<16x640xi32>
    %83 = arith.xori %78, %82 : vector<16x640xi32>
    %c-1028477387_i32_19 = arith.constant -1028477387 : i32
    %84 = vector.broadcast %c-1028477387_i32_19 : i32 to vector<16x640xi32>
    %85 = arith.muli %83, %84 : vector<16x640xi32>
    %c16_i32_20 = arith.constant 16 : i32
    %86 = vector.broadcast %c16_i32_20 : i32 to vector<16x640xi32>
    %87 = arith.shrsi %85, %86 : vector<16x640xi32>
    %c65535_i32_21 = arith.constant 65535 : i32
    %88 = vector.broadcast %c65535_i32_21 : i32 to vector<16x640xi32>
    %89 = arith.andi %87, %88 : vector<16x640xi32>
    %90 = arith.xori %85, %89 : vector<16x640xi32>
    %c8388607_i32_22 = arith.constant 8388607 : i32
    %91 = vector.broadcast %c8388607_i32_22 : i32 to vector<16x640xi32>
    %92 = arith.andi %90, %91 : vector<16x640xi32>
    %93 = arith.sitofp %92 : vector<16x640xi32> to vector<16x640xf32>
    %cst_23 = arith.constant 1.1920929E-7 : f32
    %94 = vector.broadcast %cst_23 : f32 to vector<16x640xf32>
    %95 = arith.mulf %93, %94 : vector<16x640xf32>
    %cst_24 = arith.constant 1.000000e+00 : f32
    %96 = vector.broadcast %cst_24 : f32 to vector<16x640xf32>
    %97 = arith.subf %96, %67 : vector<16x640xf32>
    %98 = math.log %97 : vector<16x640xf32>
    %cst_25 = arith.constant -2.000000e+00 : f32
    %99 = vector.broadcast %cst_25 : f32 to vector<16x640xf32>
    %100 = arith.mulf %99, %98 : vector<16x640xf32>
    %101 = math.sqrt %100 : vector<16x640xf32>
    %cst_26 = arith.constant 2.000000e+00 : f32
    %102 = vector.broadcast %cst_26 : f32 to vector<16x640xf32>
    %103 = arith.mulf %102, %95 : vector<16x640xf32>
    %cst_27 = arith.constant 1.000000e+00 : f32
    %104 = vector.broadcast %cst_27 : f32 to vector<16x640xf32>
    %105 = arith.subf %103, %104 : vector<16x640xf32>
    %cst_28 = arith.constant 3.14159274 : f32
    %106 = vector.broadcast %cst_28 : f32 to vector<16x640xf32>
    %107 = arith.mulf %105, %106 : vector<16x640xf32>
    %108 = math.cos %107 : vector<16x640xf32>
    %109 = arith.mulf %101, %108 : vector<16x640xf32>
    %110 = math.sin %107 : vector<16x640xf32>
    %111 = arith.mulf %101, %110 : vector<16x640xf32>
    %112 = tpu.concatenate %109, %111 in 0 : vector<16x640xf32>, vector<16x640xf32> -> vector<32x640xf32>
    %c0 = arith.constant 0 : index
    %c0_29 = arith.constant 0 : index
    %113 = vector.load %arg3[%c0, %c0_29] : memref<1x640xf32, #tpu.memory_space<vmem>>, vector<1x640xf32>
    %c0_30 = arith.constant 0 : index
    %c0_31 = arith.constant 0 : index
    %114 = vector.load %arg4[%c0_30, %c0_31] : memref<1x640xf32, #tpu.memory_space<vmem>>, vector<1x640xf32>
    %cst_32 = arith.constant 1.000000e-01 : f32
    %115 = vector.broadcast %cst_32 : f32 to vector<1x640xf32>
    %116 = arith.subf %113, %115 : vector<1x640xf32>
    %cst_33 = arith.constant 2.000000e-01 : f32
    %117 = vector.broadcast %cst_33 : f32 to vector<32x640xf32>
    %118 = arith.mulf %117, %38 : vector<32x640xf32>
    %119 = vector.broadcast %116 : vector<1x640xf32> to vector<32x640xf32>
    %120 = arith.addf %119, %118 : vector<32x640xf32>
    %cst_34 = arith.constant 5.000000e-02 : f32
    %121 = vector.broadcast %cst_34 : f32 to vector<32x640xf32>
    %122 = arith.mulf %121, %112 : vector<32x640xf32>
    %123 = vector.broadcast %114 : vector<1x640xf32> to vector<32x640xf32>
    %124 = arith.addf %123, %122 : vector<32x640xf32>
    %c0_35 = arith.constant 0 : index
    %c0_36 = arith.constant 0 : index
    %125 = vector.load %arg2[%c0_35, %c0_36] : memref<32x640xf32, #tpu.memory_space<vmem>>, vector<32x640xf32>
    %126 = arith.mulf %124, %125 : vector<32x640xf32>
    %127 = arith.addf %126, %120 : vector<32x640xf32>
    %c0_37 = arith.constant 0 : index
    %c0_38 = arith.constant 0 : index
    %128 = vector.load %arg5[%c0_37, %c0_38] : memref<32x640xf32, #tpu.memory_space<vmem>>, vector<32x640xf32>
    tpu.vector_store %arg5[%c0_37, %c0_38], %127 {strides = array<i32>} : memref<32x640xf32, #tpu.memory_space<vmem>>, vector<32x640xf32>,
    return
  }
  func.func @transform_0(%arg0: i32, %arg1: i32) -> (i32, i32) {
    %c0_i32 = arith.constant 0 : i32
    return %arg0, %arg1 : i32, i32
  }
  func.func @transform_1(%arg0: i32, %arg1: i32) -> (i32, i32) {
    %c0_i32 = arith.constant 0 : i32
    %c0_i32_0 = arith.constant 0 : i32
    return %c0_i32, %arg1 : i32, i32
  }
  func.func @transform_2(%arg0: i32, %arg1: i32) -> (i32, i32) {
    %c0_i32 = arith.constant 0 : i32
    %c0_i32_0 = arith.constant 0 : i32
    return %c0_i32, %arg1 : i32, i32
  }
  func.func @transform_3(%arg0: i32, %arg1: i32) -> (i32, i32) {
    %c0_i32 = arith.constant 0 : i32
    return %arg0, %arg1 : i32, i32
  }
}

</mosaic_0001>

<bundles_post_ra>
// kernel: tpu_custom_call.1
= control target key start
LH: loop header
LB: loop body
LE: loop exit
PB: predicated region body
PF: predicated region fallthrough
CT: control target
= control target key end

     0   :  { %s6237_s0 = inlined_call_operand.hbm [shape: f32[32,1200], index: 0, kind: input, shape index: {}]   ;;  %s6238_s1 = inlined_call_operand.hbm [shape: f32[1,1200], index: 1, kind: input, shape index: {}]   ;;  %s6239_s2 = inlined_call_operand.hbm [shape: f32[1,1200], index: 2, kind: input, shape index: {}]   ;;  %s6240_s3 = inlined_call_operand.hbm [shape: f32[32,1200], index: 3, kind: output, shape index: {}]  }
   0x1   :  { %6329 = sst [smem:[#allocation59_spill]] %s6237_s0 }
   0x2   :  { %6330 = sst [smem:[#allocation60_spill]] %s6238_s1 }
   0x3   :  { %8 = vsyncpa [#allocation3], 0 }
   0x4   :  { %10 = vsyncpa [#allocation3 + $0x1], 0 }
   0x5   :  { %11 = vsyncpa [#allocation6], 0 }
   0x6   :  { %13 = vsyncpa [#allocation6 + $0x1], 0 }
   0x7   :  { %14 = vsyncpa [#allocation4], 0 }
   0x8   :  { %16 = vsyncpa [#allocation4 + $0x1], 0  ;;  %s4188_s12 = smov 0   ;;  %s4190_s13 = smov 0  }
   0x9   :  { %s4192_s14 = smov 0   ;;  %s4194_s15 = smov 0  }
   0xa   :  { %s4196_s16 = smov 0   ;;  %s4198_s17 = smov 0  }
   0xb LB: > { %6331 = sst [smem:[#allocation12_spill]] %s4138_s14  ;;  %s4219_s18 = sadd.s32 4294967295, %s4150_s17   ;;  %s4150_s17 = sphi %s4198_s17, %s22_s17   ;;  %s4146_s16 = sphi %s4196_s16, %s6549_s16   ;;  %s4142_s15 = sphi %s4194_s15, %s6548_s15   ;;  %s4138_s14 = sphi %s4192_s14, %s6544_s14   ;;  %s4134_s13 = sphi %s4190_s13, %s6547_s13   ;;  %s4130_s12 = sphi %s4188_s12, %s6546_s12  }
   0xc   : > { %6332 = sst [smem:[#allocation13_spill]] %s4150_s17  ;;  %s3548_s19 = sadd.s32 4294967294, %s4150_s17  }
   0xd   : > { %s31_s20 = sadd.s32 1, %s4146_s16  ;;  %s43_s21 = sadd.s32 1, %s4138_s14 }
   0xe   : > { %p32_p0 = scmp.ge.s32.totalorder %s31_s20, 2  ;;  %p50_p1 = scmp.ne.s32.totalorder %s4138_s14, %s4134_s13 }
   0xf   : > { %p51_p2 = scmp.eq.s32.totalorder %s4150_s17, 0  ;;  %p56_p3 = scmp.ne.s32.totalorder %s4134_s13, %s4130_s12 }
  0x10   : > { %s6551_s20 = smov (%p32_p0, %s31_s20), 0  ;;  %p57_p5 = scmp.eq.s32.totalorder %s4219_s18, 0 }
  0x11   : > { %6333 = sst [smem:[#allocation14_spill]] %s6551_s20  ;;  %p4231_p4 = por %p51_p2, %p50_p1 }
  0x12   : > { %s39_s23 = ssub.s32 %s4146_s16, %s6551_s20  ;;  %p134_p6 = scmp.eq.s32.totalorder %s4219_s18, 1 }
  0x13   : > { %p41_p7 = scmp.eq.s32.totalorder %s39_s23, 0  ;;  %p4239_p8 = por %p57_p5, %p56_p3 }
  0x14   : > { %p4243_p9 = por %p134_p6, %p50_p1  ;;  %p140_p10 = scmp.eq.s32.totalorder %s3548_s19, 1 }
  0x15   : > { %s4248_s26 = scalar_select %p41_p7, %s4138_s14, %s43_s21  }
  0x16   : > { %p4250_p11 = por %p140_p10, %p56_p3  ;;  %p3550_p12 = scmp.ge.s32.totalorder %s4150_s17, 2 }
  0x17   : > { %6337 = sst [smem:[#allocation15_spill]] %s4248_s26  ;;  %p3840_p13 = scmp.lt.s32.totalorder %s4150_s17, 2 }
  0x18   : > { %s4257_s28 = sand.u32 1, %s4138_s14   ;;  %s184_s4 = sand.u32 1, %s4150_s17  }
  0x19   : > { %s3773_s29 = smul.u32 160, %s4257_s28  ;;  %p4262_p0 = pnand %p3840_p13, %p4231_p4 }
  0x1a   : > { %s6241_s7 = smul.u32 5, %s4257_s28  ;;  %p3554_p1 = scmp.ge.s32.totalorder %s4150_s17, 1 }
  0x1b   : > { %s164_s5 = scalar_lea.vmem [#allocation2], %s3773_s29  ;;  %s6242_s8 = smul.u32 80, %s4146_s16 }
  0x1c   : > { %s174_s6 = sshll.u32 %s164_s5, 4  ;;  %p220_p2 = scmp.lt.s32.totalorder %s4150_s17, 3  ;;  %s4267_s6 = int_to_ptr.vmem [resolvable:$true] %s174_s6 }
  0x1d   : > { %s6340_s1 = sld [smem:[#allocation60_spill]]  ;;  %s188_s19 = scalar_lea.vmem [#allocation5], %s6241_s7 }
  0x1e   : > { %s196_s21 = sshll.u32 %s188_s19, 4  ;;  %p4280_p3 = pnand %p3554_p1, %p220_p2  ;;  %s197_s21 = int_to_ptr.vmem [resolvable:$true] %s196_s21 }
  0x1f   : > { %s4284_s23 = scalar_lea.sflag [#allocation6], %s184_s4  ;;  %p3984_p4 = pneg %p4262_p0 }
  0x20   : > { %s3995_s29 = scalar_lea.vmem %s197_s21, 80  ;;  %s4152_s5 = smov [#allocation5]  }
  0x21   : > { %p3996_p5 = scmp.ne.s32.totalorder %s197_s21, %s3995_s29  ;;  %s4000_s9 = sshll.u32 %s4152_s5, 4  ;;  %s4001_s9 = int_to_ptr.vmem [resolvable:$false] %s4000_s9 }
  0x22   : > { %s4002_s10 = scalar_lea.vmem %s4001_s9, 160  ;;  %p4003_p10 = scmp.lt.s32.totalorder %s197_s21, %s4001_s9 }
  0x23   : > { %s194_s11 = scalar_lea.hbm %s6340_s1, %s6242_s8  ;;  %p3998_p6 = pnand %p3996_p5, %p3984_p4 }
  0x24   : > { %p4004_p13 = scmp.lt.s32.totalorder %s4002_s10, %s3995_s29 }
  0x25   : > { %p3999_p7 = pneg %p3998_p6 }
  0x26   : > { %p4005_p1 = por %p4004_p13, %p4003_p10 }
  0x28   : > { %p4006_p2 = pnand %p4005_p1, %p3999_p7 }
  0x2a   : > { %4009 = shalt.err (!%p4006_p2)
}
  0x2b   : > { %3832 = dma.hbm_to_vmem [thread:$0]  (!%p4262_p0), %s194_s11, 80, %s197_s21, %s4284_s23  }
  0x2c   : > { %s3769_s4 = smul.u32 640, %s4146_s16  ;;  %s6342_s0 = sld [smem:[#allocation59_spill]] }
  0x2d   : > { %s161_s9 = scalar_lea.sflag [#allocation3], %s4257_s28  ;;  %s4023_s29 = scalar_lea.vmem %s4267_s6, 2560 }
  0x2e   : > { %p4024_p5 = scmp.ne.s32.totalorder %s4267_s6, %s4023_s29  ;;  %s4153_s10 = smov [#allocation2]  }
  0x2f   : > { %s4028_s8 = sshll.u32 %s4153_s10, 4  ;;  %s4029_s8 = int_to_ptr.vmem [resolvable:$false] %s4028_s8 }
  0x30   : > { %p4026_p6 = pnand %p4024_p5, %p3984_p4  ;;  %s4030_s1 = scalar_lea.vmem %s4029_s8, 5120 }
  0x31   : > { %p4031_p10 = scmp.lt.s32.totalorder %s4267_s6, %s4029_s8  ;;  %p4032_p13 = scmp.lt.s32.totalorder %s4030_s1, %s4023_s29 }
  0x32   : > { %s173_s7 = scalar_lea.hbm %s6342_s0, %s3769_s4  ;;  %p4027_p7 = pneg %p4026_p6 }
  0x33   : > { %p4033_p1 = por %p4032_p13, %p4031_p10 }
  0x35   : > { %p4034_p2 = pnand %p4033_p1, %p4027_p7 }
  0x37   : > { %4037 = shalt.err (!%p4034_p2)
}
  0x38   : > { %s4154_s11 = smov 1280   ;;  %s4155_s21 = smov 640  }
  0x39   : > { %s4156_s4 = smov 40   ;;  %s6343_s19 = smul.u32 80, %s4146_s16 }
  0x3a   : > { %3829 = dma.hbm_to_vmem [thread:$0]  (!%p4262_p0), %s173_s7, 2560, %s4267_s6, %s161_s9, %s4154_s11, %s4155_s21, %s4156_s4  }
  0x3b   : > { %s213_s0 = scalar_lea.hbm %s6239_s2, %s6343_s19  ;;  %s6344_s8 = smul.u32 5, %s4257_s28 }
  0x3c   : > { %s4157_s26 = smov [#allocation7]  }
  0x3d   : > { %s207_s1 = scalar_lea.vmem [#allocation7], %s6344_s8  ;;  %s4056_s14 = sshll.u32 %s4157_s26, 4  ;;  %s4057_s14 = int_to_ptr.vmem [resolvable:$false] %s4056_s14 }
  0x3e   : > { %s215_s29 = sshll.u32 %s207_s1, 4  ;;  %s4058_s17 = scalar_lea.vmem %s4057_s14, 160  ;;  %s216_s29 = int_to_ptr.vmem [resolvable:$true] %s215_s29 }
  0x3f   : > { %s4051_s20 = scalar_lea.vmem %s216_s29, 80  ;;  %p4059_p10 = scmp.lt.s32.totalorder %s216_s29, %s4057_s14 }
  0x40   : > { %p4052_p5 = scmp.ne.s32.totalorder %s216_s29, %s4051_s20  ;;  %p4060_p13 = scmp.lt.s32.totalorder %s4058_s17, %s4051_s20 }
  0x42   : > { %p4054_p6 = pnand %p4052_p5, %p3984_p4  ;;  %p4061_p1 = por %p4060_p13, %p4059_p10 }
  0x44   : > { %p4055_p7 = pneg %p4054_p6 }
  0x46   : > { %p4062_p2 = pnand %p4061_p1, %p4055_p7 }
  0x48   : > { %4065 = shalt.err (!%p4062_p2)
}
  0x49   : > { %3835 = dma.hbm_to_vmem [thread:$0]  (!%p4262_p0), %s213_s0, 80, %s216_s29, %s4284_s23  }
  0x4a   : > { %224 = sbr.rel (%p4280_p3) target bundleno = 602 (0x25a), region = 32 }
  0x4f   : > { %s4324_s28 = sand.u32 1, %s4134_s13  }
  0x50   : > { %s3776_s26 = smul.u32 160, %s4324_s28  ;;  %s227_s14 = scalar_lea.sflag [#allocation3], %s4324_s28 }
  0x52   : > { %s4330_s17 = scalar_lea.vmem [#allocation2], %s3776_s26 }
  0x53   : > { %4117 = dma.done.wait (%p4239_p8), %s227_s14, 2560  }
  0x54   : > { %4119 = vsyncadd (%p4239_p8), %s227_s14, 4294964736  ;;  %s235_s0 = sand.u32 1, %s4219_s18   ;;  %s3777_s20 = smul.u32 5, %s4324_s28 }
  0x55   : > { %s236_s30 = scalar_lea.sflag [#allocation6], %s235_s0 }
  0x56   : > { %s4340_s6 = scalar_lea.vmem [#allocation5], %s3777_s20 }
  0x57   : > { %4121 = dma.done.wait (%p4239_p8), %s236_s30, 160  }
  0x58   : > { %4123 = vsyncadd (%p4239_p8), %s236_s30, 4294967136  ;;  %v288_v0 = vlaneseq  ;;  %s298_s7 = smul.u32 640, %s4142_s15  ;;  %s248_s18 = scalar_lea.vmem [#allocation7], %s3777_s20 }
  0x59   : > { %s6146_s24 = scalar_lea.vmem [#allocation8], %s3776_s26  ;;  %s3401_s15 = scalar_lea.sflag [#allocation4], %s4324_s28 }
  0x5a   : > { %v300_v1 = vand.u32 127, %v288_v0  ;;  %v4347_v2 = vshrl.u32 %v288_v0, 7  ;;  %v305_v6 = vstv %s298_s7  ;;  %s3417_s22 = sshll.u32 %s6146_s24, 4  ;;  %s6169_s11 = scalar_lea.hbm %s6240_s3, %s298_s7  ;;  %s6179_s22 = int_to_ptr.vmem [resolvable:$true] %s3417_s22 }
  0x5b   : > { %s4066_s21 = scalar_lea.vmem %s6179_s22, 2560  ;;  %s4164_s4 = smov [#allocation8]  }
  0x5c   : > { %6345 = vst [vmem:[#allocation16_spill] sm:$0xff] %v4347_v2  ;;  %v301_v3 = vadd.s32 128, %v300_v1  ;;  %v302_v4 = vadd.s32 256, %v300_v1  ;;  %v303_v5 = vadd.s32 384, %v300_v1  ;;  %v290_v7 = vadd.s32 8, %v4347_v2  ;;  %p4067_p8 = scmp.ne.s32.totalorder %s6179_s22, %s4066_s21  ;;  %s4070_s19 = sshll.u32 %s4164_s4, 4  ;;  %s4071_s19 = int_to_ptr.vmem [resolvable:$false] %s4070_s19 }
  0x5d   : > { %v304_v8 = vadd.s32 512, %v300_v1  ;;  %v291_v9 = vadd.s32 16, %v4347_v2  ;;  %v306_v10 = vadd.s32 %v305_v6, %v300_v1  ;;  %v311_v12 = vmul.u32 1280, %v4347_v2  ;;  %s4072_s5 = scalar_lea.vmem %s4071_s19, 5120  ;;  %p4073_p4 = scmp.lt.s32.totalorder %s6179_s22, %s4071_s19 }
  0x5e   : > { %v307_v11 = vadd.s32 %v305_v6, %v301_v3  ;;  %v292_v13 = vadd.s32 24, %v4347_v2  ;;  %v308_v14 = vadd.s32 %v305_v6, %v302_v4  ;;  %v309_v15 = vadd.s32 %v305_v6, %v303_v5  ;;  %p4068_p0 = pnand %p4067_p8, %p4243_p9  ;;  %p4074_p5 = scmp.lt.s32.totalorder %s4072_s5, %s4066_s21 }
  0x5f   : > { %v310_v16 = vadd.s32 %v305_v6, %v304_v8  ;;  %v312_v17 = vmul.u32 1280, %v290_v7  ;;  %v313_v18 = vmul.u32 1280, %v291_v9  ;;  %v315_v19 = vadd.s32 %v311_v12, %v306_v10 }
  0x60   : > { %v316_v20 = vadd.s32 %v311_v12, %v307_v11  ;;  %v314_v21 = vmul.u32 1280, %v292_v13  ;;  %v317_v22 = vadd.s32 %v311_v12, %v308_v14  ;;  %v318_v23 = vadd.s32 %v311_v12, %v309_v15  ;;  %p4069_p3 = pneg %p4068_p0  ;;  %p4075_p6 = por %p4074_p5, %p4073_p4 }
  0x61   : > { %v319_v24 = vadd.s32 %v311_v12, %v310_v16  ;;  %v320_v25 = vadd.s32 %v312_v17, %v306_v10  ;;  %v321_v26 = vadd.s32 %v312_v17, %v307_v11  ;;  %v322_v27 = vadd.s32 %v312_v17, %v308_v14 }
  0x62   : > { %v323_v28 = vadd.s32 %v312_v17, %v309_v15  ;;  %v324_v29 = vadd.s32 %v312_v17, %v310_v16  ;;  %v325_v30 = vadd.s32 %v313_v18, %v306_v10  ;;  %v326_v31 = vadd.s32 %v313_v18, %v307_v11  ;;  %p4076_p7 = pnand %p4075_p6, %p4069_p3 }
  0x63   : > { %v327_v32 = vadd.s32 %v313_v18, %v308_v14  ;;  %v328_v33 = vadd.s32 %v313_v18, %v309_v15  ;;  %v4355_v34 = vmul.u32 2654435769, %v315_v19  ;;  %v4357_v35 = vmul.u32 2654435769, %v316_v20 }
  0x64   : > { %v329_v36 = vadd.s32 %v313_v18, %v310_v16  ;;  %v330_v37 = vadd.s32 %v314_v21, %v306_v10  ;;  %v4359_v38 = vmul.u32 2654435769, %v317_v22  ;;  %v4361_v39 = vmul.u32 2654435769, %v318_v23 }
  0x65   : > { %6346 = vst [vmem:[#allocation17_spill] sm:$0xff] %v4355_v34  ;;  %6347 = vst [vmem:[#allocation18_spill] sm:$0xff] %v4357_v35  ;;  %v331_v40 = vadd.s32 %v314_v21, %v307_v11  ;;  %v4363_v41 = vmul.u32 2654435769, %v319_v24  ;;  %v4365_v42 = vmul.u32 2654435769, %v320_v25  ;;  %v332_v44 = vadd.s32 %v314_v21, %v308_v14 }
  0x66   : > { %6348 = vst [vmem:[#allocation19_spill] sm:$0xff] %v4359_v38  ;;  %6349 = vst [vmem:[#allocation20_spill] sm:$0xff] %v4361_v39  ;;  %v355_v43 = vadd.s32 2808659421, %v4355_v34  ;;  %v4368_v45 = vmul.u32 2654435769, %v321_v26  ;;  %v333_v48 = vadd.s32 %v314_v21, %v309_v15  ;;  %v334_v52 = vadd.s32 %v314_v21, %v310_v16 }
  0x67   : > { %v4370_v46 = vmul.u32 2654435769, %v322_v27  ;;  %v356_v47 = vadd.s32 2808659421, %v4357_v35  ;;  %v4373_v49 = vmul.u32 2654435769, %v323_v28 }
  0x68   : > { %v4375_v50 = vmul.u32 2654435769, %v324_v29  ;;  %v357_v51 = vadd.s32 2808659421, %v4359_v38  ;;  %v345_v53 = vmul.u32 2654435769, %v325_v30 }
  0x69   : > { %6350 = vst [vmem:[#allocation21_spill] sm:$0xff] %v4373_v49  ;;  %v346_v54 = vmul.u32 2654435769, %v326_v31  ;;  %v358_v55 = vadd.s32 2808659421, %v4361_v39  ;;  %v3555_v17 = vshrl.u32 %v355_v43, 16 }
  0x6a   : > { %6351 = vst [vmem:[#allocation22_spill] sm:$0xff] %v4375_v50  ;;  %v347_v56 = vmul.u32 2654435769, %v327_v32  ;;  %v348_v57 = vmul.u32 2654435769, %v328_v33  ;;  %v3556_v18 = vshrl.u32 %v356_v47, 16 }
  0x6b   : > { %v359_v58 = vadd.s32 2808659421, %v4363_v41  ;;  %v349_v59 = vmul.u32 2654435769, %v329_v36  ;;  %v350_v60 = vmul.u32 2654435769, %v330_v37  ;;  %v415_v37 = vxor.u32 %v3555_v17, %v355_v43 }
  0x6c   : > { %v360_v61 = vadd.s32 2808659421, %v4365_v42  ;;  %v351_v62 = vmul.u32 2654435769, %v331_v40  ;;  %v352_v63 = vmul.u32 2654435769, %v332_v44  ;;  %v416_v40 = vxor.u32 %v3556_v18, %v356_v47 }
  0x6d   : > { %v361_v0 = vadd.s32 2808659421, %v4368_v45  ;;  %v353_v1 = vmul.u32 2654435769, %v333_v48  ;;  %v354_v3 = vmul.u32 2654435769, %v334_v52 }
  0x6e   : > { %v362_v4 = vadd.s32 2808659421, %v4370_v46  ;;  %v363_v5 = vadd.s32 2808659421, %v4373_v49  ;;  %v364_v6 = vadd.s32 2808659421, %v4375_v50 }
  0x6f   : > { %v365_v7 = vadd.s32 2808659421, %v345_v53  ;;  %v366_v8 = vadd.s32 2808659421, %v346_v54  ;;  %v367_v9 = vadd.s32 2808659421, %v347_v56 }
  0x70   : > { %v368_v10 = vadd.s32 2808659421, %v348_v57  ;;  %v369_v11 = vadd.s32 2808659421, %v349_v59  ;;  %v370_v12 = vadd.s32 2808659421, %v350_v60 }
  0x71   : > { %v371_v13 = vadd.s32 2808659421, %v351_v62  ;;  %v372_v14 = vadd.s32 2808659421, %v352_v63  ;;  %v373_v15 = vadd.s32 2808659421, %v353_v1 }
  0x72   : > { %v374_v16 = vadd.s32 2808659421, %v354_v3  ;;  %v3557_v19 = vshrl.u32 %v357_v51, 16  ;;  %v3558_v20 = vshrl.u32 %v358_v55, 16  ;;  %v3559_v21 = vshrl.u32 %v359_v58, 16 }
  0x73   : > { %v3560_v22 = vshrl.u32 %v360_v61, 16  ;;  %v3561_v23 = vshrl.u32 %v361_v0, 16  ;;  %v3562_v24 = vshrl.u32 %v362_v4, 16  ;;  %v3563_v25 = vshrl.u32 %v363_v5, 16 }
  0x74   : > { %v3564_v26 = vshrl.u32 %v364_v6, 16  ;;  %v3565_v27 = vshrl.u32 %v365_v7, 16  ;;  %v3566_v28 = vshrl.u32 %v366_v8, 16  ;;  %v3567_v29 = vshrl.u32 %v367_v9, 16 }
  0x75   : > { %v3568_v30 = vshrl.u32 %v368_v10, 16  ;;  %v3569_v31 = vshrl.u32 %v369_v11, 16  ;;  %v3570_v32 = vshrl.u32 %v370_v12, 16  ;;  %v3571_v33 = vshrl.u32 %v371_v13, 16 }
  0x76   : > { %v3572_v36 = vshrl.u32 %v372_v14, 16  ;;  %v3573_v44 = vshrl.u32 %v373_v15, 16  ;;  %v3574_v48 = vshrl.u32 %v374_v16, 16  ;;  %v417_v52 = vxor.u32 %v3557_v19, %v357_v51 }
  0x77   : > { %v418_v53 = vxor.u32 %v3558_v20, %v358_v55  ;;  %v4385_v54 = vxor.u32 %v3559_v21, %v359_v58  ;;  %v4387_v56 = vxor.u32 %v3560_v22, %v360_v61  ;;  %v4389_v57 = vxor.u32 %v3561_v23, %v361_v0 }
  0x78   : > { %v4391_v59 = vxor.u32 %v3562_v24, %v362_v4  ;;  %v4393_v60 = vxor.u32 %v3563_v25, %v363_v5  ;;  %v4395_v62 = vxor.u32 %v3564_v26, %v364_v6  ;;  %v4397_v63 = vxor.u32 %v3565_v27, %v365_v7 }
  0x79   : > { %v4399_v43 = vxor.u32 %v3566_v28, %v366_v8  ;;  %v4401_v47 = vxor.u32 %v3567_v29, %v367_v9  ;;  %v4403_v51 = vxor.u32 %v3568_v30, %v368_v10  ;;  %v435_v55 = vmul.u32 2246822507, %v415_v37 }
  0x7a   : > { %v436_v58 = vmul.u32 2246822507, %v416_v40  ;;  %v4405_v61 = vxor.u32 %v3569_v31, %v369_v11  ;;  %v4407_v0 = vxor.u32 %v3570_v32, %v370_v12  ;;  %v437_v1 = vmul.u32 2246822507, %v417_v52 }
  0x7b   : > { %v438_v3 = vmul.u32 2246822507, %v418_v53  ;;  %v4409_v4 = vxor.u32 %v3571_v33, %v371_v13  ;;  %v4411_v5 = vxor.u32 %v3572_v36, %v372_v14  ;;  %v439_v6 = vmul.u32 2246822507, %v4385_v54 }
  0x7c   : > { %v440_v7 = vmul.u32 2246822507, %v4387_v56  ;;  %v4415_v8 = vxor.u32 %v3573_v44, %v373_v15  ;;  %v441_v9 = vmul.u32 2246822507, %v4389_v57  ;;  %v4420_v11 = vadd.s32 649279959, %v4355_v34 }
  0x7d   : > { %v442_v10 = vmul.u32 2246822507, %v4391_v59  ;;  %v4422_v12 = vxor.u32 %v3574_v48, %v374_v16  ;;  %v443_v13 = vmul.u32 2246822507, %v4393_v60  ;;  %v4427_v17 = vadd.s32 649279959, %v4357_v35 }
  0x7e   : > { %v444_v14 = vmul.u32 2246822507, %v4395_v62  ;;  %v445_v18 = vmul.u32 2246822507, %v4397_v63  ;;  %v3575_v19 = vshrl.u32 %v435_v55, 13  ;;  %v3576_v20 = vshrl.u32 %v436_v58, 13 }
  0x7f   : > { %v446_v15 = vmul.u32 2246822507, %v4399_v43  ;;  %v447_v21 = vmul.u32 2246822507, %v4401_v47  ;;  %v3577_v23 = vshrl.u32 %v437_v1, 13  ;;  %v3578_v16 = vshrl.u32 %v438_v3, 13 }
  0x80   : > { %v448_v22 = vmul.u32 2246822507, %v4403_v51  ;;  %v449_v24 = vmul.u32 2246822507, %v4405_v61  ;;  %v3579_v26 = vshrl.u32 %v439_v6, 13  ;;  %v3580_v27 = vshrl.u32 %v440_v7, 13 }
  0x81   : > { %v450_v25 = vmul.u32 2246822507, %v4407_v0  ;;  %v451_v28 = vmul.u32 2246822507, %v4409_v4  ;;  %v3581_v30 = vshrl.u32 %v441_v9, 13  ;;  %v3582_v31 = vshrl.u32 %v442_v10, 13 }
  0x82   : > { %v452_v29 = vmul.u32 2246822507, %v4411_v5  ;;  %v453_v32 = vmul.u32 2246822507, %v4415_v8  ;;  %v3583_v36 = vshrl.u32 %v443_v13, 13  ;;  %v3584_v37 = vshrl.u32 %v444_v14, 13 }
  0x83   : > { %v454_v33 = vmul.u32 2246822507, %v4422_v12  ;;  %v3585_v40 = vshrl.u32 %v445_v18, 13  ;;  %v3586_v44 = vshrl.u32 %v446_v15, 13  ;;  %v3587_v48 = vshrl.u32 %v447_v21, 13 }
  0x84   : > { %v3588_v52 = vshrl.u32 %v448_v22, 13  ;;  %v3589_v53 = vshrl.u32 %v449_v24, 13  ;;  %v3590_v54 = vshrl.u32 %v450_v25, 13  ;;  %v4439_v56 = vxor.u32 %v3575_v19, %v435_v55 }
  0x85   : > { %v4441_v57 = vxor.u32 %v3576_v20, %v436_v58  ;;  %v3591_v59 = vshrl.u32 %v451_v28, 13  ;;  %v3592_v60 = vshrl.u32 %v452_v29, 13  ;;  %v4443_v62 = vxor.u32 %v3577_v23, %v437_v1 }
  0x86   : > { %v4445_v63 = vxor.u32 %v3578_v16, %v438_v3  ;;  %v3593_v43 = vshrl.u32 %v453_v32, 13  ;;  %v3594_v47 = vshrl.u32 %v454_v33, 13  ;;  %v4447_v51 = vxor.u32 %v3579_v26, %v439_v6 }
  0x87   : > { %v4449_v61 = vxor.u32 %v3580_v27, %v440_v7  ;;  %v4451_v0 = vxor.u32 %v3581_v30, %v441_v9  ;;  %v4453_v4 = vxor.u32 %v3582_v31, %v442_v10  ;;  %v4455_v55 = vxor.u32 %v3583_v36, %v443_v13 }
  0x88   : > { %v4457_v58 = vxor.u32 %v3584_v37, %v444_v14  ;;  %v4459_v5 = vxor.u32 %v3585_v40, %v445_v18  ;;  %v4461_v1 = vxor.u32 %v3586_v44, %v446_v15  ;;  %v515_v3 = vmul.u32 3266489909, %v4439_v56 }
  0x89   : > { %v516_v8 = vmul.u32 3266489909, %v4441_v57  ;;  %v507_v6 = vxor.u32 %v3587_v48, %v447_v21  ;;  %v508_v12 = vxor.u32 %v3588_v52, %v448_v22  ;;  %v517_v7 = vmul.u32 3266489909, %v4443_v62 }
  0x8a   : > { %v518_v9 = vmul.u32 3266489909, %v4445_v63  ;;  %v509_v10 = vxor.u32 %v3589_v53, %v449_v24  ;;  %v510_v19 = vxor.u32 %v3590_v54, %v450_v25  ;;  %v519_v13 = vmul.u32 3266489909, %v4447_v51 }
  0x8b   : > { %v520_v14 = vmul.u32 3266489909, %v4449_v61  ;;  %v511_v18 = vxor.u32 %v3591_v59, %v451_v28  ;;  %v512_v20 = vxor.u32 %v3592_v60, %v452_v29  ;;  %v521_v15 = vmul.u32 3266489909, %v4451_v0 }
  0x8c   : > { %v522_v23 = vmul.u32 3266489909, %v4453_v4  ;;  %v513_v16 = vxor.u32 %v3593_v43, %v453_v32  ;;  %v523_v21 = vmul.u32 3266489909, %v4455_v55  ;;  %v4474_v26 = vadd.s32 649279959, %v4359_v38 }
  0x8d   : > { %v524_v22 = vmul.u32 3266489909, %v4457_v58  ;;  %v514_v24 = vxor.u32 %v3594_v47, %v454_v33  ;;  %v525_v25 = vmul.u32 3266489909, %v4459_v5  ;;  %v4479_v28 = vadd.s32 649279959, %v4361_v39 }
  0x8e   : > { %6352 = vst [vmem:[#allocation23_spill] sm:$0xff] %v4474_v26  ;;  %v526_v27 = vmul.u32 3266489909, %v4461_v1  ;;  %v527_v29 = vmul.u32 3266489909, %v507_v6  ;;  %v3595_v31 = vshrl.u32 %v515_v3, 16 }
  0x8f   : > { %6353 = vst [vmem:[#allocation24_spill] sm:$0xff] %v4479_v28  ;;  %v528_v30 = vmul.u32 3266489909, %v508_v12  ;;  %v3596_v36 = vshrl.u32 %v516_v8, 16  ;;  %v529_v32 = vmul.u32 3266489909, %v509_v10 }
  0x90   : > { %v530_v37 = vmul.u32 3266489909, %v510_v19  ;;  %v3597_v40 = vshrl.u32 %v517_v7, 16  ;;  %v3598_v44 = vshrl.u32 %v518_v9, 16  ;;  %v531_v48 = vmul.u32 3266489909, %v511_v18 }
  0x91   : > { %v532_v52 = vmul.u32 3266489909, %v512_v20  ;;  %v3599_v53 = vshrl.u32 %v519_v13, 16  ;;  %v3600_v54 = vshrl.u32 %v520_v14, 16  ;;  %v533_v33 = vmul.u32 3266489909, %v513_v16 }
  0x92   : > { %v534_v56 = vmul.u32 3266489909, %v514_v24  ;;  %v3601_v57 = vshrl.u32 %v521_v15, 16  ;;  %v3602_v59 = vshrl.u32 %v522_v23, 16  ;;  %v3603_v60 = vshrl.u32 %v523_v21, 16 }
  0x93   : > { %v3604_v62 = vshrl.u32 %v524_v22, 16  ;;  %v3605_v63 = vshrl.u32 %v525_v25, 16  ;;  %v3606_v43 = vshrl.u32 %v526_v27, 16  ;;  %v3607_v47 = vshrl.u32 %v527_v29, 16 }
  0x94   : > { %v3608_v51 = vshrl.u32 %v528_v30, 16  ;;  %v3609_v61 = vshrl.u32 %v529_v32, 16  ;;  %v3610_v0 = vshrl.u32 %v530_v37, 16  ;;  %v3611_v4 = vshrl.u32 %v531_v48, 16 }
  0x95   : > { %v3612_v55 = vshrl.u32 %v532_v52, 16  ;;  %v575_v58 = vxor.u32 %v3595_v31, %v515_v3  ;;  %v576_v5 = vxor.u32 %v3596_v36, %v516_v8  ;;  %v3613_v1 = vshrl.u32 %v533_v33, 16 }
  0x96   : > { %v3614_v6 = vshrl.u32 %v534_v56, 16  ;;  %v577_v12 = vxor.u32 %v3597_v40, %v517_v7  ;;  %v578_v10 = vxor.u32 %v3598_v44, %v518_v9  ;;  %v579_v19 = vxor.u32 %v3599_v53, %v519_v13 }
  0x97   : > { %v580_v18 = vxor.u32 %v3600_v54, %v520_v14  ;;  %v581_v20 = vxor.u32 %v3601_v57, %v521_v15  ;;  %v582_v16 = vxor.u32 %v3602_v59, %v522_v23  ;;  %v583_v24 = vxor.u32 %v3603_v60, %v523_v21 }
  0x98   : > { %v584_v2 = vxor.u32 %v3604_v62, %v524_v22  ;;  %v585_v39 = vxor.u32 %v3605_v63, %v525_v25  ;;  %v586_v38 = vxor.u32 %v3606_v43, %v526_v27  ;;  %v587_v35 = vxor.u32 %v3607_v47, %v527_v29  ;;  %v6355_v62 = vld [vmem:[#allocation24_spill] sm:$0xff] }
  0x99   : > { %v588_v34 = vxor.u32 %v3608_v51, %v528_v30  ;;  %v589_v50 = vxor.u32 %v3609_v61, %v529_v32  ;;  %v595_v49 = vand.u32 8388607, %v575_v58  ;;  %v590_v28 = vxor.u32 %v3610_v0, %v530_v37 }
  0x9a   : > { %v591_v26 = vxor.u32 %v3611_v4, %v531_v48  ;;  %v592_v3 = vxor.u32 %v3612_v55, %v532_v52  ;;  %v596_v8 = vand.u32 8388607, %v576_v5  ;;  %v593_v31 = vxor.u32 %v3613_v1, %v533_v33  ;;  %v6356_v55 = vld [vmem:[#allocation21_spill] sm:$0xff] }
  0x9b   : > { %v597_v36 = vand.u32 8388607, %v577_v12  ;;  %v598_v7 = vand.u32 8388607, %v578_v10  ;;  %v599_v9 = vand.u32 8388607, %v579_v19  ;;  %v4481_v13 = vxor.u32 %v3614_v6, %v534_v56 }
  0x9c   : > { %v600_v14 = vand.u32 8388607, %v580_v18  ;;  %v601_v15 = vand.u32 8388607, %v581_v20  ;;  %v602_v23 = vand.u32 8388607, %v582_v16  ;;  %v615_v27 = vcvt.s32.f32 %v595_v49 }
  0x9d   : > { %v603_v21 = vand.u32 8388607, %v583_v24  ;;  %v604_v22 = vand.u32 8388607, %v584_v2  ;;  %v605_v25 = vand.u32 8388607, %v585_v39  ;;  %v616_v37 = vcvt.s32.f32 %v596_v8 }
  0x9e   : > { %v606_v29 = vand.u32 8388607, %v586_v38  ;;  %v607_v30 = vand.u32 8388607, %v587_v35  ;;  %v608_v32 = vand.u32 8388607, %v588_v34  ;;  %v617_v52 = vcvt.s32.f32 %v597_v36 }
  0x9f   : > { %v609_v40 = vand.u32 8388607, %v589_v50  ;;  %v610_v44 = vand.u32 8388607, %v590_v28  ;;  %v611_v48 = vand.u32 8388607, %v591_v26  ;;  %v618_v54 = vcvt.s32.f32 %v598_v7 }
  0xa0   : > { %v612_v53 = vand.u32 8388607, %v592_v3  ;;  %v659_v33 = vadd.s32 649279959, %v4363_v41  ;;  %v660_v56 = vadd.s32 649279959, %v4365_v42  ;;  %v619_v2 = vcvt.s32.f32 %v599_v9 }
  0xa1   : > { %v613_v57 = vand.u32 8388607, %v593_v31  ;;  %v3615_v39 = vshrl.u32 %v4420_v11, 16  ;;  %v620_v38 = vcvt.s32.f32 %v600_v14  ;;  %v621_v35 = vcvt.s32.f32 %v601_v15  ;;  %v6354_v28 = vld [vmem:[#allocation23_spill] sm:$0xff]  ;;  %v6357_v6 = vld [vmem:[#allocation22_spill] sm:$0xff] }
  0xa2   : > { %v661_v34 = vadd.s32 649279959, %v4368_v45  ;;  %v3616_v49 = vshrl.u32 %v4427_v17, 16  ;;  %v622_v50 = vcvt.s32.f32 %v602_v23  ;;  %v662_v26 = vadd.s32 649279959, %v4370_v46 }
  0xa3   : > { %v3617_v60 = vshrl.u32 %v6354_v28, 16  ;;  %v3618_v63 = vshrl.u32 %v6355_v62, 16  ;;  %v623_v43 = vcvt.s32.f32 %v603_v21  ;;  %v624_v47 = vcvt.s32.f32 %v604_v22 }
  0xa4   : > { %v3619_v51 = vshrl.u32 %v659_v33, 16  ;;  %v3620_v61 = vshrl.u32 %v660_v56, 16  ;;  %v625_v0 = vcvt.s32.f32 %v605_v25  ;;  %v626_v4 = vcvt.s32.f32 %v606_v29 }
  0xa5   : > { %v663_v58 = vadd.s32 649279959, %v6356_v55  ;;  %v685_v5 = vxor.u32 %v3615_v39, %v4420_v11  ;;  %v627_v1 = vcvt.s32.f32 %v607_v30  ;;  %v664_v12 = vadd.s32 649279959, %v6357_v6 }
  0xa6   : > { %v3621_v10 = vshrl.u32 %v661_v34, 16  ;;  %v686_v19 = vxor.u32 %v3616_v49, %v4427_v17  ;;  %v628_v18 = vcvt.s32.f32 %v608_v32  ;;  %v3622_v20 = vshrl.u32 %v662_v26, 16 }
  0xa7   : > { %v687_v16 = vxor.u32 %v3617_v60, %v6354_v28  ;;  %v688_v24 = vxor.u32 %v3618_v63, %v6355_v62  ;;  %v629_v3 = vcvt.s32.f32 %v609_v40  ;;  %v4498_v8 = vcvt.s32.f32 %v610_v44 }
  0xa8   : > { %v689_v31 = vxor.u32 %v3619_v51, %v659_v33  ;;  %v690_v36 = vxor.u32 %v3620_v61, %v660_v56  ;;  %v4500_v7 = vcvt.s32.f32 %v611_v48  ;;  %v4502_v11 = vcvt.s32.f32 %v612_v53 }
  0xa9   : > { %v3623_v9 = vshrl.u32 %v663_v58, 16  ;;  %v695_v14 = vmul.u32 2246822507, %v685_v5  ;;  %v4504_v15 = vcvt.s32.f32 %v613_v57  ;;  %v3624_v17 = vshrl.u32 %v664_v12, 16 }
  0xaa   : > { %v691_v23 = vxor.u32 %v3621_v10, %v661_v34  ;;  %v696_v21 = vmul.u32 2246822507, %v686_v19  ;;  %v4506_v22 = vmul.f32 1.1920929e-07, %v615_v27  ;;  %v692_v25 = vxor.u32 %v3622_v20, %v662_v26 }
  0xab   : > { %v697_v29 = vmul.u32 2246822507, %v687_v16  ;;  %v698_v30 = vmul.u32 2246822507, %v688_v24  ;;  %v4508_v32 = vmul.f32 1.1920929e-07, %v616_v37  ;;  %v4510_v40 = vmul.f32 1.1920929e-07, %v617_v52 }
  0xac   : > { %6358 = vst [vmem:[#allocation23_spill] sm:$0xff] %v4506_v22  ;;  %v699_v44 = vmul.u32 2246822507, %v689_v31  ;;  %v700_v48 = vmul.u32 2246822507, %v690_v36  ;;  %v4512_v53 = vmul.f32 1.1920929e-07, %v618_v54  ;;  %v693_v56 = vxor.u32 %v3623_v9, %v663_v58 }
  0xad   : > { %6359 = vst [vmem:[#allocation24_spill] sm:$0xff] %v4508_v32  ;;  %6360 = vst [vmem:[#allocation21_spill] sm:$0xff] %v4510_v40  ;;  %v4514_v33 = vmul.f32 1.1920929e-07, %v619_v2  ;;  %v3625_v57 = vshrl.u32 %v695_v14, 13  ;;  %v4516_v39 = vmul.f32 1.1920929e-07, %v620_v38  ;;  %v694_v34 = vxor.u32 %v3624_v17, %v664_v12  ;;  %v6366_v54 = vld [vmem:[#allocation17_spill] sm:$0xff] }
  0xae   : > { %6361 = vst [vmem:[#allocation22_spill] sm:$0xff] %v4512_v53  ;;  %v701_v27 = vmul.u32 2246822507, %v691_v23  ;;  %v3626_v49 = vshrl.u32 %v696_v21, 13  ;;  %v4518_v26 = vmul.f32 1.1920929e-07, %v621_v35  ;;  %v3627_v37 = vshrl.u32 %v697_v29, 13 }
  0xaf   : > { %6362 = vst [vmem:[#allocation25_spill] sm:$0xff] %v4514_v33  ;;  %6363 = vst [vmem:[#allocation26_spill] sm:$0xff] %v4516_v39  ;;  %v702_v28 = vmul.u32 2246822507, %v692_v25  ;;  %v3628_v60 = vshrl.u32 %v698_v30, 13  ;;  %v4520_v52 = vmul.f32 1.1920929e-07, %v622_v50  ;;  %v4527_v58 = vxor.u32 %v3625_v57, %v695_v14 }
  0xb0   : > { %6364 = vst [vmem:[#allocation27_spill] sm:$0xff] %v4518_v26  ;;  %v3629_v62 = vshrl.u32 %v699_v44, 13  ;;  %v3630_v63 = vshrl.u32 %v700_v48, 13  ;;  %v805_v51 = vadd.s32 3434000979, %v6366_v54  ;;  %v4523_v2 = vmul.f32 1.1920929e-07, %v623_v43 }
  0xb1   : > { %6365 = vst [vmem:[#allocation28_spill] sm:$0xff] %v4520_v52  ;;  %v4525_v61 = vmul.f32 1.1920929e-07, %v624_v47  ;;  %v703_v38 = vmul.u32 2246822507, %v693_v56  ;;  %v4529_v5 = vmul.f32 1.1920929e-07, %v625_v0  ;;  %v3631_v12 = vshrl.u32 %v701_v27, 13 }
  0xb2   : > { %6367 = vst [vmem:[#allocation17_spill] sm:$0xff] %v4523_v2  ;;  %v704_v35 = vmul.u32 2246822507, %v694_v34  ;;  %v4531_v10 = vxor.u32 %v3626_v49, %v696_v21  ;;  %v4533_v19 = vmul.f32 1.1920929e-07, %v626_v4  ;;  %v3632_v50 = vshrl.u32 %v702_v28, 13  ;;  %v6374_v21 = vld [vmem:[#allocation18_spill] sm:$0xff] }
  0xb3   : > { %6368 = vst [vmem:[#allocation29_spill] sm:$0xff] %v4525_v61  ;;  %6369 = vst [vmem:[#allocation30_spill] sm:$0xff] %v4529_v5  ;;  %v4535_v20 = vxor.u32 %v3627_v37, %v697_v29  ;;  %v4537_v16 = vxor.u32 %v3628_v60, %v698_v30  ;;  %v4539_v43 = vmul.f32 1.1920929e-07, %v627_v1  ;;  %v4541_v47 = vxor.u32 %v3629_v62, %v699_v44  ;;  %v6376_v56 = vld [vmem:[#allocation20_spill] sm:$0xff] }
  0xb4   : > { %6370 = vst [vmem:[#allocation31_spill] sm:$0xff] %v4533_v19  ;;  %v4543_v24 = vxor.u32 %v3630_v63, %v700_v48  ;;  %v3645_v31 = vshrl.u32 %v805_v51, 16  ;;  %v4545_v0 = vmul.f32 1.1920929e-07, %v628_v18  ;;  %v4547_v36 = vmul.f32 1.1920929e-07, %v629_v3  ;;  %v6375_v18 = vld [vmem:[#allocation19_spill] sm:$0xff] }
  0xb5   : > { %6371 = vst [vmem:[#allocation32_spill] sm:$0xff] %v4539_v43  ;;  %v3633_v9 = vshrl.u32 %v703_v38, 13  ;;  %v735_v4 = vmul.u32 3266489909, %v4527_v58  ;;  %v3634_v14 = vshrl.u32 %v704_v35, 13  ;;  %v4550_v17 = vxor.u32 %v3631_v12, %v701_v27 }
  0xb6   : > { %6372 = vst [vmem:[#allocation33_spill] sm:$0xff] %v4545_v0  ;;  %6373 = vst [vmem:[#allocation34_spill] sm:$0xff] %v4547_v36  ;;  %v736_v23 = vmul.u32 3266489909, %v4531_v10  ;;  %v806_v1 = vadd.s32 3434000979, %v6374_v21  ;;  %v4554_v25 = vxor.u32 %v3632_v50, %v702_v28  ;;  %v835_v34 = vxor.u32 %v3645_v31, %v805_v51 }
  0xb7   : > { %v737_v29 = vmul.u32 3266489909, %v4535_v20  ;;  %v738_v30 = vmul.u32 3266489909, %v4537_v16  ;;  %v807_v44 = vadd.s32 3434000979, %v6375_v18  ;;  %v4562_v27 = vxor.u32 %v3633_v9, %v703_v38 }
  0xb8   : > { %v739_v3 = vmul.u32 3266489909, %v4541_v47  ;;  %v740_v48 = vmul.u32 3266489909, %v4543_v24  ;;  %v808_v57 = vadd.s32 3434000979, %v6376_v56  ;;  %v4566_v60 = vxor.u32 %v3634_v14, %v704_v35 }
  0xb9   : > { %v3635_v49 = vshrl.u32 %v735_v4, 16  ;;  %v809_v37 = vadd.s32 3434000979, %v4363_v41  ;;  %v810_v28 = vadd.s32 3434000979, %v4365_v42  ;;  %v3636_v58 = vshrl.u32 %v736_v23, 16 }
  0xba   : > { %v811_v62 = vadd.s32 3434000979, %v4368_v45  ;;  %v812_v63 = vadd.s32 3434000979, %v4370_v46  ;;  %v813_v54 = vadd.s32 3434000979, %v6356_v55 }
  0xbb   : > { %v814_v12 = vadd.s32 3434000979, %v6357_v6  ;;  %v3646_v10 = vshrl.u32 %v806_v1, 16  ;;  %v845_v51 = vmul.u32 2246822507, %v835_v34  ;;  %v3647_v41 = vshrl.u32 %v807_v44, 16 }
  0xbc   : > { %v741_v38 = vmul.u32 3266489909, %v4550_v17  ;;  %v742_v50 = vmul.u32 3266489909, %v4554_v25  ;;  %v3648_v20 = vshrl.u32 %v808_v57, 16  ;;  %v3637_v42 = vshrl.u32 %v737_v29, 16 }
  0xbd   : > { %v3649_v35 = vshrl.u32 %v809_v37, 16  ;;  %v3650_v16 = vshrl.u32 %v810_v28, 16  ;;  %v3655_v47 = vshrl.u32 %v845_v51, 13  ;;  %v743_v45 = vmul.u32 3266489909, %v4562_v27 }
  0xbe   : > { %v3638_v46 = vshrl.u32 %v738_v30, 16  ;;  %v3651_v31 = vshrl.u32 %v811_v62, 16  ;;  %v3652_v55 = vshrl.u32 %v812_v63, 16  ;;  %v744_v9 = vmul.u32 3266489909, %v4566_v60 }
  0xbf   : > { %v3653_v6 = vshrl.u32 %v813_v54, 16  ;;  %v3654_v14 = vshrl.u32 %v814_v12, 16  ;;  %v836_v21 = vxor.u32 %v3646_v10, %v806_v1  ;;  %v3639_v18 = vshrl.u32 %v739_v3, 16 }
  0xc0   : > { %v837_v17 = vxor.u32 %v3647_v41, %v807_v44  ;;  %v838_v56 = vxor.u32 %v3648_v20, %v808_v57  ;;  %v875_v25 = vxor.u32 %v3655_v47, %v845_v51  ;;  %v3640_v34 = vshrl.u32 %v740_v48, 16 }
  0xc1   : > { %v3641_v59 = vshrl.u32 %v741_v38, 16  ;;  %v839_v36 = vxor.u32 %v3649_v35, %v809_v37  ;;  %v840_v0 = vxor.u32 %v3650_v16, %v810_v28  ;;  %v3642_v43 = vshrl.u32 %v742_v50, 16 }
  0xc2   : > { %v765_v27 = vxor.u32 %v3635_v49, %v735_v4  ;;  %v841_v19 = vxor.u32 %v3651_v31, %v811_v62  ;;  %v842_v5 = vxor.u32 %v3652_v55, %v812_v63  ;;  %v843_v61 = vxor.u32 %v3653_v6, %v813_v54 }
  0xc3   : > { %v844_v2 = vxor.u32 %v3654_v14, %v814_v12  ;;  %v846_v60 = vmul.u32 2246822507, %v836_v21  ;;  %v885_v52 = vmul.u32 3266489909, %v875_v25  ;;  %v3643_v26 = vshrl.u32 %v743_v45, 16 }
  0xc4   : > { %v4578_v1 = vxor.u32 %v3636_v58, %v736_v23  ;;  %v847_v44 = vmul.u32 2246822507, %v837_v17  ;;  %v848_v57 = vmul.u32 2246822507, %v838_v56  ;;  %v3644_v10 = vshrl.u32 %v744_v9, 16 }
  0xc5   : > { %v767_v51 = vxor.u32 %v3637_v42, %v737_v29  ;;  %v849_v41 = vmul.u32 2246822507, %v839_v36  ;;  %v850_v20 = vmul.u32 2246822507, %v840_v0  ;;  %v768_v47 = vxor.u32 %v3638_v46, %v738_v30 }
  0xc6   : > { %v851_v37 = vmul.u32 2246822507, %v841_v19  ;;  %v852_v28 = vmul.u32 2246822507, %v842_v5  ;;  %v3665_v35 = vshrl.u32 %v885_v52, 16  ;;  %v769_v4 = vxor.u32 %v3639_v18, %v739_v3 }
  0xc7   : > { %v853_v49 = vmul.u32 2246822507, %v843_v61  ;;  %v854_v62 = vmul.u32 2246822507, %v844_v2  ;;  %v3656_v63 = vshrl.u32 %v846_v60, 13  ;;  %v770_v54 = vxor.u32 %v3640_v34, %v740_v48 }
  0xc8   : > { %v4582_v12 = vxor.u32 %v3641_v59, %v741_v38  ;;  %v3657_v23 = vshrl.u32 %v847_v44, 13  ;;  %v3658_v58 = vshrl.u32 %v848_v57, 13  ;;  %v772_v16 = vxor.u32 %v3642_v43, %v742_v50 }
  0xc9   : > { %v4584_v31 = vxor.u32 %v3643_v26, %v743_v45  ;;  %v3659_v36 = vshrl.u32 %v849_v41, 13  ;;  %v3660_v0 = vshrl.u32 %v850_v20, 13  ;;  %v4586_v29 = vxor.u32 %v3644_v10, %v744_v9 }
  0xca   : > { %v3661_v5 = vshrl.u32 %v851_v37, 13  ;;  %v3662_v19 = vshrl.u32 %v852_v28, 13  ;;  %v915_v30 = vxor.u32 %v3665_v35, %v885_v52  ;;  %v775_v61 = vand.u32 8388607, %v765_v27 }
  0xcb   : > { %v3663_v2 = vshrl.u32 %v853_v49, 13  ;;  %v3664_v3 = vshrl.u32 %v854_v62, 13  ;;  %v876_v42 = vxor.u32 %v3656_v63, %v846_v60  ;;  %v776_v24 = vand.u32 8388607, %v4578_v1 }
  0xcc   : > { %v777_v59 = vand.u32 8388607, %v767_v51  ;;  %v877_v48 = vxor.u32 %v3657_v23, %v847_v44  ;;  %v878_v38 = vxor.u32 %v3658_v58, %v848_v57  ;;  %v778_v46 = vand.u32 8388607, %v768_v47 }
  0xcd   : > { %v779_v43 = vand.u32 8388607, %v769_v4  ;;  %v879_v26 = vxor.u32 %v3659_v36, %v849_v41  ;;  %v880_v50 = vxor.u32 %v3660_v0, %v850_v20  ;;  %v780_v45 = vand.u32 8388607, %v770_v54 }
  0xce   : > { %v881_v55 = vxor.u32 %v3661_v5, %v851_v37  ;;  %v882_v9 = vxor.u32 %v3662_v19, %v852_v28  ;;  %v925_v6 = vand.u32 8388607, %v915_v30  ;;  %v781_v14 = vand.u32 8388607, %v4582_v12 }
  0xcf   : > { %v883_v52 = vxor.u32 %v3663_v2, %v853_v49  ;;  %v884_v21 = vxor.u32 %v3664_v3, %v854_v62  ;;  %v886_v18 = vmul.u32 3266489909, %v876_v42  ;;  %v6377_v17 = vand.u32 8388607, %v4481_v13 }
  0xd0   : > { %v782_v25 = vand.u32 8388607, %v772_v16  ;;  %v887_v34 = vmul.u32 3266489909, %v877_v48  ;;  %v888_v27 = vmul.u32 3266489909, %v878_v38  ;;  %v785_v1 = vcvt.s32.f32 %v775_v61 }
  0xd1   : > { %v4592_v56 = vcvt.s32.f32 %v6377_v17  ;;  %v783_v60 = vand.u32 8388607, %v4584_v31  ;;  %v889_v44 = vmul.u32 3266489909, %v879_v26  ;;  %v890_v57 = vmul.u32 3266489909, %v880_v50 }
  0xd2   : > { %v784_v10 = vand.u32 8388607, %v4586_v29  ;;  %v891_v51 = vmul.u32 3266489909, %v881_v55  ;;  %v892_v41 = vmul.u32 3266489909, %v882_v9  ;;  %v935_v20 = vcvt.s32.f32 %v925_v6 }
  0xd3   : > { %v4597_v47 = vmul.f32 1.1920929e-07, %v4498_v8  ;;  %v893_v37 = vmul.u32 3266489909, %v883_v52  ;;  %v894_v13 = vmul.u32 3266489909, %v884_v21  ;;  %v3666_v28 = vshrl.u32 %v886_v18, 16 }
  0xd4   : > { %v786_v35 = vcvt.s32.f32 %v776_v24  ;;  %v787_v4 = vcvt.s32.f32 %v777_v59  ;;  %v3667_v49 = vshrl.u32 %v887_v34, 16  ;;  %v3668_v62 = vshrl.u32 %v888_v27, 16 }
  0xd5   : > { %6378 = vst [vmem:[#allocation18_spill] sm:$0xff] %v4597_v47  ;;  %v788_v63 = vcvt.s32.f32 %v778_v46  ;;  %v789_v54 = vcvt.s32.f32 %v779_v43  ;;  %v3669_v12 = vshrl.u32 %v889_v44, 16  ;;  %v3670_v23 = vshrl.u32 %v890_v57, 16 }
  0xd6   : > { %v790_v58 = vcvt.s32.f32 %v780_v45  ;;  %v795_v16 = vmul.f32 1.1920929e-07, %v785_v1  ;;  %v3671_v31 = vshrl.u32 %v891_v51, 16  ;;  %v945_v36 = vmul.f32 1.1920929e-07, %v935_v20 }
  0xd7   : > { %v3672_v0 = vshrl.u32 %v892_v41, 16  ;;  %v3673_v5 = vshrl.u32 %v893_v37, 16  ;;  %v3674_v19 = vshrl.u32 %v894_v13, 16  ;;  %v916_v8 = vxor.u32 %v3666_v28, %v886_v18 }
  0xd8   : > { %v791_v30 = vcvt.s32.f32 %v781_v14  ;;  %v792_v61 = vcvt.s32.f32 %v782_v25  ;;  %v917_v2 = vxor.u32 %v3667_v49, %v887_v34  ;;  %v918_v3 = vxor.u32 %v3668_v62, %v888_v27 }
  0xd9   : > { %v793_v42 = vcvt.s32.f32 %v783_v60  ;;  %v796_v24 = vmul.f32 1.1920929e-07, %v786_v35  ;;  %v919_v59 = vxor.u32 %v3669_v12, %v889_v44  ;;  %v920_v48 = vxor.u32 %v3670_v23, %v890_v57 }
  0xda   : > { %v797_v38 = vmul.f32 1.1920929e-07, %v787_v4  ;;  %v921_v46 = vxor.u32 %v3671_v31, %v891_v51  ;;  %v955_v43 = vsub.f32 1.0, %v795_v16  ;;  %v1065_v26 = vmul.f32 2.0, %v945_v36 }
  0xdb   : > { %v922_v50 = vxor.u32 %v3672_v0, %v892_v41  ;;  %v923_v45 = vxor.u32 %v3673_v5, %v893_v37  ;;  %v924_v55 = vxor.u32 %v3674_v19, %v894_v13  ;;  %v926_v9 = vand.u32 8388607, %v916_v8 }
  0xdc   : > { %v798_v6 = vmul.f32 1.1920929e-07, %v788_v63  ;;  %v799_v52 = vmul.f32 1.1920929e-07, %v789_v54  ;;  %v927_v21 = vand.u32 8388607, %v917_v2  ;;  %v928_v18 = vand.u32 8388607, %v918_v3 }
  0xdd   : > { %v800_v14 = vmul.f32 1.1920929e-07, %v790_v58  ;;  %v929_v17 = vand.u32 8388607, %v919_v59  ;;  %v930_v25 = vand.u32 8388607, %v920_v48  ;;  %v956_v34 = vsub.f32 1.0, %v796_v24 }
  0xde   : > { %v801_v27 = vmul.f32 1.1920929e-07, %v791_v30  ;;  %v931_v60 = vand.u32 8388607, %v921_v46  ;;  %3902 = vlog2.f32 %v955_v43  ;;  %v3675_v1 = vadd.f32 -1.0, %v1065_v26 }
  0xdf   : > { %v932_v44 = vand.u32 8388607, %v922_v50  ;;  %v933_v57 = vand.u32 8388607, %v923_v45  ;;  %v934_v51 = vand.u32 8388607, %v924_v55  ;;  %v936_v20 = vcvt.s32.f32 %v926_v9 }
  0xe0   : > { %v802_v41 = vmul.f32 1.1920929e-07, %v792_v61  ;;  %v937_v37 = vcvt.s32.f32 %v927_v21  ;;  %v938_v13 = vcvt.s32.f32 %v928_v18  ;;  %v957_v28 = vsub.f32 1.0, %v797_v38 }
  0xe1   : > { %v939_v35 = vcvt.s32.f32 %v929_v17  ;;  %v940_v4 = vcvt.s32.f32 %v930_v25  ;;  %v958_v49 = vsub.f32 1.0, %v798_v6  ;;  %3904 = vlog2.f32 %v956_v34 }
  0xe2   : > { %v803_v62 = vmul.f32 1.1920929e-07, %v793_v42  ;;  %v941_v63 = vcvt.s32.f32 %v931_v60  ;;  %v959_v54 = vsub.f32 1.0, %v799_v52  ;;  %v4599_v12 = vmul.f32 3.1415927, %v3675_v1 }
  0xe3   : > { %v942_v23 = vcvt.s32.f32 %v932_v44  ;;  %v943_v58 = vcvt.s32.f32 %v933_v57  ;;  %v944_v16 = vcvt.s32.f32 %v934_v51  ;;  %v946_v31 = vmul.f32 1.1920929e-07, %v936_v20 }
  0xe4   : > { %6379 = vst [vmem:[#allocation19_spill] sm:$0xff] %v4599_v12  ;;  %v947_v36 = vmul.f32 1.1920929e-07, %v937_v37  ;;  %v948_v0 = vmul.f32 1.1920929e-07, %v938_v13  ;;  %v960_v5 = vsub.f32 1.0, %v800_v14  ;;  %3906 = vlog2.f32 %v957_v28 }
  0xe5   : > { %v949_v19 = vmul.f32 1.1920929e-07, %v939_v35  ;;  %v950_v8 = vmul.f32 1.1920929e-07, %v940_v4  ;;  %v961_v30 = vsub.f32 1.0, %v801_v27  ;;  %3908 = vlog2.f32 %v958_v49 }
  0xe6   : > { %v951_v61 = vmul.f32 1.1920929e-07, %v941_v63  ;;  %v962_v2 = vsub.f32 1.0, %v802_v41  ;;  %3910 = vlog2.f32 %v959_v54  ;;  %v1098_v3 = vand.u32 2139095040, %v4599_v12 }
  0xe7   : > { %v794_v42 = vcvt.s32.f32 %v784_v10  ;;  %v952_v24 = vmul.f32 1.1920929e-07, %v942_v23  ;;  %v953_v59 = vmul.f32 1.1920929e-07, %v943_v58  ;;  %v954_v48 = vmul.f32 1.1920929e-07, %v944_v16 }
  0xe8   : > { %v4605_v38 = vmul.f32 1.1920929e-07, %v4500_v7  ;;  %3912 = vlog2.f32 %v960_v5  ;;  %v1066_v46 = vmul.f32 2.0, %v946_v31  ;;  %v1067_v43 = vmul.f32 2.0, %v947_v36 }
  0xe9   : > { %3914 = vlog2.f32 %v961_v30  ;;  %v1068_v26 = vmul.f32 2.0, %v948_v0  ;;  %v1069_v50 = vmul.f32 2.0, %v949_v19  ;;  %v1070_v45 = vmul.f32 2.0, %v950_v8 }
  0xea   : > { %6380 = vst [vmem:[#allocation20_spill] sm:$0xff] %v4605_v38  ;;  %v963_v55 = vsub.f32 1.0, %v803_v62  ;;  %3916 = vlog2.f32 %v962_v2  ;;  %v1071_v9 = vmul.f32 2.0, %v951_v61  ;;  %v1099_v6 = vshrl.u32 %v1098_v3, 23 }
  0xeb   : > { %v3903_v52 = vpop.eup %3902  ;;  %v804_v29 = vmul.f32 1.1920929e-07, %v794_v42  ;;  %v1072_v10 = vmul.f32 2.0, %v952_v24  ;;  %v1073_v21 = vmul.f32 2.0, %v953_v59  ;;  %v1074_v18 = vmul.f32 2.0, %v954_v48 }
  0xec   : > { %v4608_v14 = vmul.f32 1.1920929e-07, %v4502_v11  ;;  %v4611_v7 = vmul.f32 1.1920929e-07, %v4504_v15  ;;  %v3676_v17 = vadd.f32 -1.0, %v1066_v46  ;;  %v3677_v25 = vadd.f32 -1.0, %v1067_v43 }
  0xed   : > { %v4614_v34 = vmul.f32 1.1920929e-07, %v4592_v56  ;;  %v3678_v27 = vadd.f32 -1.0, %v1068_v26  ;;  %v3679_v60 = vadd.f32 -1.0, %v1069_v50  ;;  %v3680_v1 = vadd.f32 -1.0, %v1070_v45 }
  0xee   : > { %6381 = vst [vmem:[#allocation35_spill] sm:$0xff] %v4608_v14  ;;  %6382 = vst [vmem:[#allocation36_spill] sm:$0xff] %v4611_v7  ;;  %v3905_v44 = vpop.eup %3904  ;;  %v966_v57 = vmul.f32 0.6931472, %v3903_v52  ;;  %3918 = vlog2.f32 %v963_v55  ;;  %v3681_v51 = vadd.f32 -1.0, %v1071_v9  ;;  %v3685_v20 = vadd.s32 4294967169, %v1099_v6 }
  0xef   : > { %6383 = vst [vmem:[#allocation37_spill] sm:$0xff] %v4614_v34  ;;  %v964_v41 = vsub.f32 1.0, %v804_v29  ;;  %v3682_v37 = vadd.f32 -1.0, %v1072_v10  ;;  %v3683_v11 = vadd.f32 -1.0, %v1073_v21  ;;  %v3684_v13 = vadd.f32 -1.0, %v1074_v18 }
  0xf0   : > { %v4616_v28 = vmul.f32 3.1415927, %v3676_v17  ;;  %v4618_v15 = vmul.f32 3.1415927, %v3677_v25  ;;  %v6259_v35 = vand.u32 2147483647, %v4599_v12 }
  0xf1   : > { %v3907_v56 = vpop.eup %3906  ;;  %v968_v4 = vmul.f32 0.6931472, %v3905_v44  ;;  %v4621_v49 = vmul.f32 3.1415927, %v3678_v27  ;;  %v4623_v62 = vmul.f32 3.1415927, %v3679_v60  ;;  %3920 = vlog2.f32 %v964_v41 }
  0xf2   : > { %6384 = vst [vmem:[#allocation38_spill] sm:$0xff] %v4616_v28  ;;  %6385 = vst [vmem:[#allocation39_spill] sm:$0xff] %v4618_v15  ;;  %v3909_v63 = vpop.eup %3908  ;;  %v4625_v54 = vmul.f32 -2.0, %v966_v57  ;;  %v4627_v23 = vmul.f32 3.1415927, %v3680_v1  ;;  %v1105_v16 = vadd.s32 1, %v3685_v20 }
  0xf3   : > { %6386 = vst [vmem:[#allocation40_spill] sm:$0xff] %v4621_v49  ;;  %6387 = vst [vmem:[#allocation41_spill] sm:$0xff] %v4623_v62  ;;  %v4629_v58 = vmul.f32 3.1415927, %v3681_v51  ;;  %v3911_v31 = vpop.eup %3910  ;;  %v4631_v36 = vmul.f32 3.1415927, %v3682_v37 }
  0xf4   : > { %v4633_v0 = vmul.f32 3.1415927, %v3683_v11  ;;  %v4635_v5 = vmul.f32 3.1415927, %v3684_v13  ;;  %v970_v19 = vmul.f32 0.6931472, %v3907_v56  ;;  %3922 = vrsqrt.f32 %v4625_v54 }
  0xf5   : > { %6388 = vst [vmem:[#allocation42_spill] sm:$0xff] %v4631_v36  ;;  %v1102_v8 = vand.u32 8388607, %v6259_v35  ;;  %vm1106_vm0 = vcmp.gt.s32.totalorder %v1105_v16, 0  ;;  %v3913_v30 = vpop.eup %3912  ;;  %v972_v61 = vmul.f32 0.6931472, %v3909_v63 }
  0xf6   : > { %6389 = vst [vmem:[#allocation43_spill] sm:$0xff] %v4633_v0  ;;  %6390 = vst [vmem:[#allocation44_spill] sm:$0xff] %v4635_v5  ;;  %v4639_v2 = vmul.f32 -2.0, %v968_v4  ;;  %v1107_v3 = vsel %vm1106_vm0, %v1105_v16, 0  ;;  %v3915_v42 = vpop.eup %3914  ;;  %v974_v24 = vmul.f32 0.6931472, %v3911_v31 }
  0xf7   : > { %v1109_v48 = vand.u32 31, %v1107_v3  ;;  %v3917_v46 = vpop.eup %3916  ;;  %v976_v43 = vmul.f32 0.6931472, %v3913_v30  ;;  %v4643_v26 = vmul.f32 -2.0, %v970_v19  ;;  %v1103_v50 = vor.u32 8388608, %v1102_v8 }
  0xf8   : > { %v4645_v55 = vmul.f32 -2.0, %v972_v61  ;;  %3924 = vrsqrt.f32 %v4639_v2  ;;  %v1201_v9 = vand.u32 2139095040, %v4616_v28  ;;  %v978_v6 = vmul.f32 0.6931472, %v3915_v42 }
  0xf9   : > { %v1110_v45 = vsub.s32 32, %v1109_v48  ;;  %v980_v52 = vmul.f32 0.6931472, %v3917_v46  ;;  %v4649_v29 = vmul.f32 -2.0, %v974_v24  ;;  %v6263_v18 = vmov 683565275  }
  0xfa   : > { %v1112_v17 = vshll.u32 %v6263_v18, %v1109_v48  ;;  %v6272_v25 = vmov 2475754826   ;;  %v6267_v1 = vmov 2131351028   ;;  %v4656_v57 = vmul.f32 -2.0, %v976_v43 }
  0xfb   : > { %v3919_v21 = vpop.eup %3918  ;;  %v1113_v27 = vshrl.u32 %v6272_v25, %v1110_v45  ;;  %v1115_v60 = vshll.u32 %v6272_v25, %v1109_v48  ;;  %v1116_v44 = vshrl.u32 %v6267_v1, %v1110_v45  ;;  %3926 = vrsqrt.f32 %v4643_v26 }
  0xfc   : > { %v1118_v51 = vshll.u32 %v6267_v1, %v1109_v48  ;;  %v6265_v20 = vmov 2102212464   ;;  %v1108_v37 = vshrl.u32 %v1107_v3, 5  ;;  %v6260_v13 = vand.u32 2147483647, %v4616_v28 }
  0xfd   : > { %v1119_v41 = vshrl.u32 %v6265_v20, %v1110_v45  ;;  %v1121_v11 = vshll.u32 %v6265_v20, %v1109_v48  ;;  %v1202_v56 = vshrl.u32 %v1201_v9, 23  ;;  %v982_v4 = vmul.f32 0.6931472, %v3919_v21 }
  0xfe   : > { %v4663_v63 = vmul.f32 -2.0, %v978_v6  ;;  %v6269_v31 = vmov 920167782   ;;  %v1111_v8 = vshrl.u32 %v6263_v18, %v1110_v45  ;;  %v1114_v30 = vor.u32 %v1113_v27, %v1112_v17  ;;  %v3921_v21 = vpop.eup %3920 }
  0xff   : > { %v1122_v19 = vshrl.u32 %v6269_v31, %v1110_v45  ;;  %v1117_v61 = vor.u32 %v1116_v44, %v1115_v60  ;;  %v1124_v42 = vshll.u32 %v6269_v31, %v1109_v48  ;;  %v1120_v3 = vor.u32 %v1119_v41, %v1118_v51 }
 0x100   : > { %v6261_v46 = vmov 1326507024   ;;  %v1143_v9 = vshll.u32 %v1103_v50, 8  ;;  %vm1127_vm1 = vcmp.lt.s32.totalorder %v1108_v37, 1  ;;  %v3689_v6 = vadd.s32 4294967169, %v1202_v56 }
 0x101   : > { %v1123_v24 = vor.u32 %v1122_v19, %v1121_v11  ;;  %v1125_v43 = vshrl.u32 %v6261_v46, %v1110_v45  ;;  %v1205_v35 = vand.u32 8388607, %v6260_v13  ;;  %v1304_v16 = vand.u32 2139095040, %v4618_v15  ;;  %v3923_v44 = vpop.eup %3922 }
 0x102   : > { %vm1128_vm2 = vcmp.lt.s32.totalorder %v1108_v37, 2  ;;  %vm1129_vm3 = vcmp.lt.s32.totalorder %v1108_v37, 3  ;;  %vm1130_vm4 = vcmp.lt.s32.totalorder %v1108_v37, 4  ;;  %v1131_v17 = vsel %vm1127_vm1, %v1111_v8, %v1114_v30 }
 0x103   : > { %v1126_v10 = vor.u32 %v1125_v43, %v1124_v42  ;;  %v1132_v48 = vsel %vm1130_vm4, %v1120_v3, 2102212464  ;;  %v1135_v27 = vsel %vm1127_vm1, %v1114_v30, %v1117_v61  ;;  %v1136_v60 = vsel %vm1130_vm4, %v1123_v24, 920167782 }
 0x104   : > { %v1133_v51 = vsel %vm1129_vm3, %v1117_v61, %v1132_v48  ;;  %v1137_v45 = vsel %vm1129_vm3, %v1120_v3, %v1136_v60  ;;  %v1139_v50 = vsel %vm1127_vm1, %v1117_v61, %v1120_v3  ;;  %v1206_v19 = vor.u32 8388608, %v1205_v35 }
 0x105   : > { %v1140_v41 = vsel %vm1130_vm4, %v1126_v10, 1326507024  ;;  %v1138_v11 = vsel %vm1128_vm2, %v1135_v27, %v1137_v45  ;;  %v1208_v13 = vadd.s32 1, %v3689_v6  ;;  %v4674_v59 = vpop.eup %3924  ;;  %v1134_v42 = vsel %vm1128_vm2, %v1131_v17, %v1133_v51 }
 0x106   : > { %v1141_v56 = vsel %vm1129_vm3, %v1123_v24, %v1140_v41  ;;  %v4678_v8 = vmul.u32.u64.low %v1143_v9, %v1138_v11  ;;  %v4679_v46 = vmul.u32.u64.high %v1143_v9, %v1138_v11, %v4678_v8  ;;  %v984_v30 = vmul.f32 0.6931472, %v3921_v21 }
 0x107   : > { %v1142_v43 = vsel %vm1128_vm2, %v1139_v50, %v1141_v56  ;;  %vm1209_vm5 = vcmp.gt.s32.totalorder %v1208_v13, 0  ;;  %v4685_v10 = vmul.f32 -2.0, %v980_v52  ;;  %v4687_v61 = vmul.f32 -2.0, %v982_v4 }
 0x108   : > { %v4682_v48 = vmul.u32.u64.low %v1143_v9, %v1142_v43  ;;  %v4683_v60 = vmul.u32.u64.high %v1143_v9, %v1142_v43, %v4682_v48  ;;  %3928 = vrsqrt.f32 %v4645_v55  ;;  %v1210_v35 = vsel %vm1209_vm5, %v1208_v13, 0  ;;  %v4690_v3 = vpop.eup %3926 }
 0x109   : > { %3930 = vrsqrt.f32 %v4649_v29  ;;  %v1150_v24 = vmul.u32 %v1143_v9, %v1134_v42  ;;  %v1212_v6 = vand.u32 31, %v1210_v35  ;;  %v996_v21 = vmul.f32 %v3923_v44, %v4625_v54 }
 0x10a   : > { %vm997_vm6 = vcmp.eq.f32.partialorder %v4625_v54, inf  ;;  %v1153_v52 = vadd.s32 1, %v4679_v46  ;;  %v4697_v17 = vshll.u32 %v1206_v19, 8  ;;  %v1305_v4 = vshrl.u32 %v1304_v16, 23 }
 0x10b   : > { %vm1152_vm7 = vc.u32 %v4683_v60, %v4678_v8  ;;  %v1211_v13 = vshrl.u32 %v1210_v35, 5  ;;  %v1213_v27 = vsub.s32 32, %v1212_v6  ;;  %v1215_v51 = vshll.u32 %v6263_v18, %v1212_v6 }
 0x10c   : > { %v1154_v45 = vsel %vm1152_vm7, %v1153_v52, %v4679_v46  ;;  %v1218_v9 = vshll.u32 %v6272_v25, %v1212_v6  ;;  %v1221_v44 = vshll.u32 %v6267_v1, %v1212_v6  ;;  %v1224_v50 = vshll.u32 %v6265_v20, %v1212_v6 }
 0x10d   : > { %vm999_vm8 = vcmp.eq.f32.partialorder %v4625_v54, 0.0  ;;  %v1155_v41 = vadd.s32 %v1154_v45, %v1150_v24  ;;  %v1214_v16 = vshrl.u32 %v6263_v18, %v1213_v27  ;;  %v1216_v11 = vshrl.u32 %v6272_v25, %v1213_v27 }
 0x10e   : > { %v1219_v56 = vshrl.u32 %v6267_v1, %v1213_v27  ;;  %v1222_v19 = vshrl.u32 %v6265_v20, %v1213_v27  ;;  %v1225_v42 = vshrl.u32 %v6269_v31, %v1213_v27  ;;  %v1227_v46 = vshll.u32 %v6269_v31, %v1212_v6 }
 0x10f   : > { %v6391_v43 = vmov 1326507024   ;;  %v1156_v35 = vadd.s32 536870912, %v1155_v41  ;;  %v1217_v52 = vor.u32 %v1216_v11, %v1215_v51  ;;  %vm1230_vm9 = vcmp.lt.s32.totalorder %v1211_v13, 1 }
 0x110   : > { %v1228_v48 = vshrl.u32 %v6391_v43, %v1213_v27  ;;  %v1220_v37 = vor.u32 %v1219_v56, %v1218_v9  ;;  %v1223_v34 = vor.u32 %v1222_v19, %v1221_v44  ;;  %v1226_v24 = vor.u32 %v1225_v42, %v1224_v50 }
 0x111   : > { %v3693_v18 = vadd.s32 4294967169, %v1305_v4  ;;  %v4714_v7 = vshrl.u32 %v1156_v35, 30  ;;  %vm1231_vm10 = vcmp.lt.s32.totalorder %v1211_v13, 2  ;;  %vm1232_vm11 = vcmp.lt.s32.totalorder %v1211_v13, 3 }
 0x112   : > { %v1229_v45 = vor.u32 %v1228_v48, %v1227_v46  ;;  %vm1233_vm12 = vcmp.lt.s32.totalorder %v1211_v13, 4  ;;  %v1234_v20 = vsel %vm1230_vm9, %v1214_v16, %v1217_v52  ;;  %v1238_v6 = vsel %vm1230_vm9, %v1217_v52, %v1220_v37 }
 0x113   : > { %v1235_v1 = vsel %vm1233_vm12, %v1223_v34, 2102212464  ;;  %v1239_v31 = vsel %vm1233_vm12, %v1226_v24, 920167782  ;;  %vm1004_vm13 = vcmp.eq.f32.partialorder %v4639_v2, inf  ;;  %vm1011_vm14 = vcmp.eq.f32.partialorder %v4643_v26, inf }
 0x114   : > { %v1158_v27 = vshll.u32 %v4714_v7, 30  ;;  %v1236_v51 = vsel %vm1232_vm11, %v1220_v37, %v1235_v1  ;;  %v1240_v4 = vsel %vm1232_vm11, %v1223_v34, %v1239_v31  ;;  %v1242_v9 = vsel %vm1230_vm9, %v1220_v37, %v1223_v34 }
 0x115   : > { %v4724_v44 = vmul.f32 -2.0, %v984_v30  ;;  %v1241_v50 = vsel %vm1231_vm10, %v1238_v6, %v1240_v4  ;;  %v1243_v16 = vsel %vm1233_vm12, %v1229_v45, 1326507024  ;;  %v1311_v11 = vadd.s32 1, %v3693_v18  ;;  %v3929_v56 = vpop.eup %3928 }
 0x116   : > { %v998_v19 = vsel %vm997_vm6, %v4625_v54, %v996_v21  ;;  %v4731_v46 = vsub.s32 %v1155_v41, %v1158_v27  ;;  %v1244_v1 = vsel %vm1232_vm11, %v1226_v24, %v1243_v16  ;;  %v3931_v31 = vpop.eup %3930  ;;  %v1237_v34 = vsel %vm1231_vm10, %v1234_v20, %v1236_v51 }
 0x117   : > { %v1245_v30 = vsel %vm1231_vm10, %v1242_v9, %v1244_v1  ;;  %v4737_v37 = vmul.u32.u64.low %v4697_v17, %v1241_v50  ;;  %v4738_v48 = vmul.u32.u64.high %v4697_v17, %v1241_v50, %v4737_v37  ;;  %3932 = vrsqrt.f32 %v4656_v57 }
 0x118   : > { %v1161_v18 = vsub.s32 0, %v4731_v46  ;;  %v4744_v21 = vmul.u32.u64.low %v4697_v17, %v1245_v30  ;;  %v4745_v41 = vmul.u32.u64.high %v4697_v17, %v1245_v30, %v4744_v21  ;;  %v6392_v35 = vand.u32 2147483648, %v4625_v54 }
 0x119   : > { %3934 = vrsqrt.f32 %v4663_v63  ;;  %vm1312_vm15 = vcmp.gt.s32.totalorder %v1311_v11, 0  ;;  %v1253_v45 = vmul.u32 %v4697_v17, %v1237_v34  ;;  %v6271_v6 = vand.u32 2147483647, %v4618_v15 }
 0x11a   : > { %v4751_v20 = vsel %vm999_vm8, %v6392_v35, %v998_v19  ;;  %v3686_v24 = vmin.u32 %v1161_v18, %v4731_v46  ;;  %v1003_v27 = vmul.f32 %v4674_v59, %v4639_v2  ;;  %v1010_v54 = vmul.f32 %v4690_v3, %v4643_v26 }
 0x11b   : > { %6393 = vst [vmem:[#allocation45_spill] sm:$0xff] %v4751_v20  ;;  %v1256_v51 = vadd.s32 1, %v4738_v48  ;;  %v1313_v4 = vsel %vm1312_vm15, %v1311_v11, 0  ;;  %3936 = vrsqrt.f32 %v4685_v10  ;;  %vm1255_vm0 = vc.u32 %v4745_v41, %v4737_v37 }
 0x11c   : > { %v1163_v50 = vclz %v3686_v24  ;;  %3938 = vrsqrt.f32 %v4687_v61  ;;  %v1315_v16 = vand.u32 31, %v1313_v4  ;;  %v1308_v11 = vand.u32 8388607, %v6271_v6 }
 0x11d   : > { %v1257_v59 = vsel %vm1255_vm0, %v1256_v51, %v4738_v48  ;;  %v1407_v1 = vand.u32 2139095040, %v4621_v49  ;;  %v4777_v34 = vsel %vm1004_vm13, %v4639_v2, %v1003_v27  ;;  %v4782_v30 = vsel %vm1011_vm14, %v4643_v26, %v1010_v54 }
 0x11e   : > { %v3687_v19 = vadd.s32 4294967294, %v1163_v50  ;;  %v1258_v3 = vadd.s32 %v1257_v59, %v1253_v45  ;;  %v4785_v48 = vmul.f32 %v3929_v56, %v4645_v55  ;;  %v1316_v18 = vsub.s32 32, %v1315_v16 }
 0x11f   : > { %v6394_v35 = vmov 683565275   ;;  %v1321_v45 = vshll.u32 %v6272_v25, %v1315_v16  ;;  %v6395_v50 = vmov 2131351028   ;;  %v6396_v6 = vmov 2102212464  }
 0x120   : > { %vm3688_vm1 = vcmp.lt.s32.totalorder %v3687_v19, 0  ;;  %v1259_v21 = vadd.s32 536870912, %v1258_v3  ;;  %v1318_v24 = vshll.u32 %v6394_v35, %v1315_v16  ;;  %v1319_v27 = vshrl.u32 %v6272_v25, %v1316_v18 }
 0x121   : > { %v4789_v51 = vsel %vm3688_vm1, 0, %v3687_v19  ;;  %v1322_v59 = vshrl.u32 %v6395_v50, %v1316_v18  ;;  %v1327_v17 = vshll.u32 %v6396_v6, %v1315_v16  ;;  %vm1018_vm2 = vcmp.eq.f32.partialorder %v4645_v55, inf }
 0x122   : > { %v4795_v54 = vshrl.u32 %v1259_v21, 30  ;;  %v1309_v56 = vor.u32 8388608, %v1308_v11  ;;  %v1314_v9 = vshrl.u32 %v1313_v4, 5  ;;  %v1408_v52 = vshrl.u32 %v1407_v1, 23 }
 0x123   : > { %v1324_v13 = vshll.u32 %v6395_v50, %v1315_v16  ;;  %v1325_v42 = vshrl.u32 %v6396_v6, %v1316_v18  ;;  %v6397_v14 = vmov 920167782   ;;  %v4802_v25 = vmul.f32 %v3931_v31, %v4649_v29 }
 0x124   : > { %v1328_v19 = vshrl.u32 %v6397_v14, %v1316_v18  ;;  %v1330_v38 = vshll.u32 %v6397_v14, %v1315_v16  ;;  %v1151_v47 = vadd.s32 %v4678_v8, %v4683_v60  ;;  %v1171_v21 = vsub.s32 4294967266, %v4789_v51  ;;  %v4808_v4 = vpop.eup %3932 }
 0x125   : > { %v1261_v11 = vshll.u32 %v4795_v54, 30  ;;  %v1320_v1 = vor.u32 %v1319_v27, %v1318_v24  ;;  %v1323_v39 = vor.u32 %v1322_v59, %v1321_v45  ;;  %v1331_v53 = vshrl.u32 %v6391_v43, %v1316_v18 }
 0x126   : > { %v1329_v33 = vor.u32 %v1328_v19, %v1327_v17  ;;  %v4811_v40 = vpop.eup %3934  ;;  %v1317_v31 = vshrl.u32 %v6394_v35, %v1316_v18  ;;  %vm1333_vm3 = vcmp.lt.s32.totalorder %v1314_v9, 1  ;;  %v3697_v32 = vadd.s32 4294967169, %v1408_v52 }
 0x127   : > { %v4813_v16 = vsub.s32 %v1258_v3, %v1261_v11  ;;  %vm1006_vm4 = vcmp.eq.f32.partialorder %v4639_v2, 0.0  ;;  %vm1013_vm5 = vcmp.eq.f32.partialorder %v4643_v26, 0.0  ;;  %vm1020_vm6 = vcmp.eq.f32.partialorder %v4645_v55, 0.0 }
 0x128   : > { %v1326_v8 = vor.u32 %v1325_v42, %v1324_v13  ;;  %v1332_v60 = vor.u32 %v1331_v53, %v1330_v38  ;;  %vm1336_vm7 = vcmp.lt.s32.totalorder %v1314_v9, 4  ;;  %v1349_v17 = vshll.u32 %v1309_v56, 8  ;;  %v4822_v18 = vpop.eup %3936 }
 0x129   : > { %vm1025_vm8 = vcmp.eq.f32.partialorder %v4649_v29, inf  ;;  %v1167_v24 = vsub.s32 32, %v4789_v51  ;;  %v1172_v3 = vadd.s32 127, %v1171_v21  ;;  %v1264_v45 = vsub.s32 0, %v4813_v16  ;;  %v4827_v53 = vpop.eup %3938 }
 0x12a   : > { %vm1335_vm9 = vcmp.lt.s32.totalorder %v1314_v9, 3  ;;  %vm1334_vm10 = vcmp.lt.s32.totalorder %v1314_v9, 2  ;;  %v1338_v52 = vsel %vm1336_vm7, %v1326_v8, 2102212464  ;;  %v1341_v27 = vsel %vm1333_vm3, %v1320_v1, %v1323_v39 }
 0x12b   : > { %v1342_v42 = vsel %vm1336_vm7, %v1329_v33, 920167782  ;;  %v1168_v38 = vshll.u32 %v4731_v46, %v4789_v51  ;;  %v3690_v13 = vmin.u32 %v1264_v45, %v4813_v16  ;;  %v1337_v59 = vsel %vm1333_vm3, %v1317_v31, %v1320_v1 }
 0x12c   : > { %v1414_v56 = vadd.s32 1, %v3697_v32  ;;  %v1339_v19 = vsel %vm1335_vm9, %v1323_v39, %v1338_v52  ;;  %v1343_v21 = vsel %vm1335_vm9, %v1326_v8, %v1342_v42  ;;  %v1345_v11 = vsel %vm1333_vm3, %v1323_v39, %v1326_v8 }
 0x12d   : > { %v1346_v22 = vsel %vm1336_vm7, %v1332_v60, 1326507024  ;;  %v1169_v20 = vshrl.u32 %v1151_v47, %v1167_v24  ;;  %v1173_v5 = vshll.u32 %v1172_v3, 23  ;;  %v1266_v0 = vclz %v3690_v13 }
 0x12e   : > { %v1344_v36 = vsel %vm1334_vm10, %v1341_v27, %v1343_v21  ;;  %v1019_v46 = vsel %vm1018_vm2, %v4645_v55, %v4785_v48  ;;  %v1347_v32 = vsel %vm1335_vm9, %v1329_v33, %v1346_v22  ;;  %v1340_v39 = vsel %vm1334_vm10, %v1337_v59, %v1339_v19 }
 0x12f   : > { %v4843_v51 = vmul.u32.u64.low %v1349_v17, %v1344_v36  ;;  %v4844_v1 = vmul.u32.u64.high %v1349_v17, %v1344_v36, %v4843_v51  ;;  %v3691_v31 = vadd.s32 4294967294, %v1266_v0  ;;  %v1348_v47 = vsel %vm1334_vm10, %v1345_v11, %v1347_v32 }
 0x130   : > { %vm1415_vm11 = vcmp.gt.s32.totalorder %v1414_v56, 0  ;;  %v4849_v8 = vmul.u32.u64.low %v1349_v17, %v1348_v47  ;;  %v4850_v60 = vmul.u32.u64.high %v1349_v17, %v1348_v47, %v4849_v8  ;;  %v6278_v24 = vand.u32 2147483647, %v4621_v49 }
 0x131   : > { %v1416_v3 = vsel %vm1415_vm11, %v1414_v56, 0  ;;  %v1170_v45 = vor.u32 %v1169_v20, %v1168_v38  ;;  %v1174_v48 = vor.u32 4788187, %v1173_v5  ;;  %vm3692_vm12 = vcmp.lt.s32.totalorder %v3691_v31, 0 }
 0x132   : > { %v1418_v22 = vand.u32 31, %v1416_v3  ;;  %3940 = vrsqrt.f32 %v4724_v44  ;;  %v4854_v33 = vsel %vm3692_vm12, 0, %v3691_v31  ;;  %v1356_v36 = vmul.u32 %v1349_v17, %v1340_v39 }
 0x133   : > { %v1359_v0 = vadd.s32 1, %v4844_v1  ;;  %v6398_v9 = vand.u32 2147483648, %v4639_v2  ;;  %v6399_v20 = vand.u32 2147483648, %v4643_v26  ;;  %v6400_v27 = vand.u32 2147483648, %v4645_v55 }
 0x134   : > { %v1026_v2 = vsel %vm1025_vm8, %v4649_v29, %v4802_v25  ;;  %vm1358_vm13 = vc.u32 %v4850_v60, %v4843_v51  ;;  %v1411_v26 = vand.u32 8388607, %v6278_v24  ;;  %vm1027_vm14 = vcmp.eq.f32.partialorder %v4649_v29, 0.0 }
 0x135   : > { %v4862_v52 = vsel %vm1006_vm4, %v6398_v9, %v4777_v34  ;;  %v4869_v5 = vsel %vm1013_vm5, %v6399_v20, %v4782_v30  ;;  %v4875_v17 = vsel %vm1020_vm6, %v6400_v27, %v1019_v46  ;;  %v1419_v34 = vsub.s32 32, %v1418_v22 }
 0x136   : > { %v1175_v30 = vand.u32 2147483647, %v1174_v48  ;;  %v1177_v55 = vcvt.s32.f32 %v1170_v45  ;;  %v1274_v38 = vsub.s32 4294967266, %v4854_v33  ;;  %v1360_v13 = vsel %vm1358_vm13, %v1359_v0, %v4844_v1 }
 0x137   : > { %vm1097_vm15 = vcmp.lt.s32.totalorder %v4599_v12, 0  ;;  %v1254_v25 = vadd.s32 %v4737_v37, %v4745_v41  ;;  %v1361_v59 = vadd.s32 %v1360_v13, %v1356_v36  ;;  %v4892_v56 = vshrl.u32 %v1416_v3, 5 }
 0x138   : > { %v1421_v19 = vshll.u32 %v6394_v35, %v1418_v22  ;;  %vm1032_vm0 = vcmp.eq.f32.partialorder %v4656_v57, inf  ;;  %v6401_v21 = vmov 2475754826   ;;  %v1425_v32 = vshrl.u32 %v6395_v50, %v1419_v34 }
 0x139   : > { %v1422_v11 = vshrl.u32 %v6401_v21, %v1419_v34  ;;  %v1424_v46 = vshll.u32 %v6401_v21, %v1418_v22  ;;  %v1427_v1 = vshll.u32 %v6395_v50, %v1418_v22  ;;  %vm1039_vm1 = vcmp.eq.f32.partialorder %v4663_v63, inf }
 0x13a   : > { %v1270_v31 = vsub.s32 32, %v4854_v33  ;;  %v1362_v37 = vadd.s32 536870912, %v1361_v59  ;;  %v1428_v41 = vshrl.u32 %v6396_v6, %v1419_v34  ;;  %v1430_v39 = vshll.u32 %v6396_v6, %v1418_v22 }
 0x13b   : > { %v6402_v47 = vand.u32 2147483647, %v4599_v12  ;;  %v1178_v3 = vmul.f32 %v1177_v55, %v1175_v30  ;;  %v1275_v45 = vadd.s32 127, %v1274_v38  ;;  %v1412_v48 = vor.u32 8388608, %v1411_v26 }
 0x13c   : > { %v1431_v36 = vshrl.u32 %v6397_v14, %v1419_v34  ;;  %v1271_v0 = vshll.u32 %v4813_v16, %v4854_v33  ;;  %v4913_v9 = vshrl.u32 %v1362_v37, 30  ;;  %v1433_v20 = vshll.u32 %v6397_v14, %v1418_v22 }
 0x13d   : > { %vm4906_vm2 = vcmp.le.f32.partialorder %v6402_v47, 0.7853982  ;;  %v1434_v27 = vshrl.u32 %v6391_v43, %v1419_v34  ;;  %v1423_v13 = vor.u32 %v1422_v11, %v1421_v19  ;;  %v1426_v24 = vor.u32 %v1425_v32, %v1424_v46 }
 0x13e   : > { %v1429_v47 = vor.u32 %v1428_v41, %v1427_v1  ;;  %v1432_v42 = vor.u32 %v1431_v36, %v1430_v39  ;;  %vm1034_vm3 = vcmp.eq.f32.partialorder %v4656_v57, 0.0  ;;  %v1272_v30 = vshrl.u32 %v1254_v25, %v1270_v31 }
 0x13f   : > { %v1364_v26 = vshll.u32 %v4913_v9, 30  ;;  %vm1436_vm4 = vcmp.lt.s32.totalorder %v4892_v56, 1  ;;  %vm1438_vm5 = vcmp.lt.s32.totalorder %v4892_v56, 3  ;;  %vm1041_vm6 = vcmp.eq.f32.partialorder %v4663_v63, 0.0  ;;  %v3941_v11 = vpop.eup %3940 }
 0x140   : > { %vm1046_vm7 = vcmp.eq.f32.partialorder %v4685_v10, inf  ;;  %v1179_v16 = vxor.u32 2147483648, %v1178_v3  ;;  %v1276_v22 = vshll.u32 %v1275_v45, 23  ;;  %v1435_v33 = vor.u32 %v1434_v27, %v1433_v20 }
 0x141   : > { %vm1439_vm8 = vcmp.lt.s32.totalorder %v4892_v56, 4  ;;  %v1031_v55 = vmul.f32 %v4808_v4, %v4656_v57  ;;  %v1038_v38 = vmul.f32 %v4811_v40, %v4663_v63  ;;  %v4928_v25 = vsub.s32 %v1361_v59, %v1364_v26 }
 0x142   : > { %v1445_v19 = vsel %vm1439_vm8, %v1432_v42, 920167782  ;;  %v1420_v46 = vshrl.u32 %v6394_v35, %v1419_v34  ;;  %vm1437_vm9 = vcmp.lt.s32.totalorder %v4892_v56, 2  ;;  %v1444_v32 = vsel %vm1436_vm4, %v1423_v13, %v1426_v24 }
 0x143   : > { %v1446_v1 = vsel %vm1438_vm5, %v1429_v47, %v1445_v19  ;;  %v6405_v4 = vand.u32 2147483648, %v4649_v29  ;;  %v1273_v59 = vor.u32 %v1272_v30, %v1271_v0  ;;  %v1367_v31 = vsub.s32 0, %v4928_v25 }
 0x144   : > { %v1441_v34 = vsel %vm1439_vm8, %v1429_v47, 2102212464  ;;  %v1180_v37 = vsel %vm1097_vm15, %v1179_v16, %v1178_v3  ;;  %v1277_v41 = vor.u32 4788187, %v1276_v22  ;;  %v1449_v39 = vsel %vm1439_vm8, %v1435_v33, 1326507024 }
 0x145   : > { %v4942_v40 = vsel %vm1027_vm14, %v6405_v4, %v1026_v2  ;;  %v1452_v45 = vshll.u32 %v1412_v48, 8  ;;  %v1033_v29 = vsel %vm1032_vm0, %v4656_v57, %v1031_v55  ;;  %vm1048_vm10 = vcmp.eq.f32.partialorder %v4685_v10, 0.0 }
 0x146   : > { %v3694_v2 = vmin.u32 %v1367_v31, %v4928_v25  ;;  %v1447_v36 = vsel %vm1437_vm9, %v1444_v32, %v1446_v1  ;;  %v1448_v0 = vsel %vm1436_vm4, %v1426_v24, %v1429_v47  ;;  %v1040_v3 = vsel %vm1039_vm1, %v4663_v63, %v1038_v38 }
 0x147   : > { %v1045_v48 = vmul.f32 %v4822_v18, %v4685_v10  ;;  %vm1053_vm11 = vcmp.eq.f32.partialorder %v4687_v61, inf  ;;  %v1440_v20 = vsel %vm1436_vm4, %v1420_v46, %v1423_v13  ;;  %v1442_v27 = vsel %vm1438_vm5, %v1426_v24, %v1441_v34 }
 0x148   : > { %vm1060_vm12 = vcmp.eq.f32.partialorder %v4724_v44, inf  ;;  %v4974_v47 = vsel %vm4906_vm2, %v4599_v12, %v1180_v37  ;;  %v1280_v30 = vcvt.s32.f32 %v1273_v59  ;;  %v1369_v26 = vclz %v3694_v2 }
 0x149   : > { %v1450_v18 = vsel %vm1438_vm5, %v1432_v42, %v1449_v39  ;;  %v1278_v16 = vand.u32 2147483647, %v1277_v41  ;;  %v4980_v13 = vmul.u32.u64.low %v1452_v45, %v1447_v36  ;;  %v4981_v33 = vmul.u32.u64.high %v1452_v45, %v1447_v36, %v4980_v13 }
 0x14a   : > { %v1451_v22 = vsel %vm1437_vm9, %v1448_v0, %v1450_v18  ;;  %v3695_v24 = vadd.s32 4294967294, %v1369_v26  ;;  %v1443_v55 = vsel %vm1437_vm9, %v1440_v20, %v1442_v27  ;;  %v6406_v46 = vand.u32 2147483648, %v4656_v57 }
 0x14b   : > { %v4986_v38 = vmul.u32.u64.low %v1452_v45, %v1451_v22  ;;  %v4987_v19 = vmul.u32.u64.high %v1452_v45, %v1451_v22, %v4986_v38  ;;  %v1052_v32 = vmul.f32 %v4827_v53, %v4687_v61  ;;  %vm1055_vm13 = vcmp.eq.f32.partialorder %v4687_v61, 0.0 }
 0x14c   : > { %v4993_v42 = vsel %vm1034_vm3, %v6406_v46, %v1033_v29  ;;  %3942 = vcosq.f32 %v4974_v47  ;;  %vm1200_vm14 = vcmp.lt.s32.totalorder %v4616_v28, 0  ;;  %v1510_v56 = vand.u32 2139095040, %v4623_v62 }
 0x14d   : > { %v6407_v1 = vand.u32 2147483648, %v4663_v63  ;;  %v1047_v57 = vsel %vm1046_vm7, %v4685_v10, %v1045_v48  ;;  %vm1062_vm0 = vcmp.eq.f32.partialorder %v4724_v44, 0.0  ;;  %v1357_v53 = vadd.s32 %v4843_v51, %v4850_v60 }
 0x14e   : > { %vm3696_vm1 = vcmp.lt.s32.totalorder %v3695_v24, 0  ;;  %v1459_v31 = vmul.u32 %v1452_v45, %v1443_v55  ;;  %v1462_v34 = vadd.s32 1, %v4981_v33  ;;  %v1511_v37 = vshrl.u32 %v1510_v56, 23 }
 0x14f   : > { %v5005_v4 = vsel %vm1041_vm6, %v6407_v1, %v1040_v3  ;;  %v1372_v59 = vsel %vm3696_vm1, 0, %v3695_v24  ;;  %v1059_v41 = vmul.f32 %v3941_v11, %v4724_v44  ;;  %v6408_v63 = vand.u32 2147483647, %v4616_v28 }
 0x150   : > { %v1281_v29 = vmul.f32 %v1280_v30, %v1278_v16  ;;  %v1373_v2 = vsub.s32 32, %v1372_v59  ;;  %v1377_v36 = vsub.s32 4294967266, %v1372_v59  ;;  %v1181_v0 = vsub.s32 4, %v4714_v7 }
 0x151   : > { %vm5017_vm3 = vcmp.le.f32.partialorder %v6408_v63, 0.7853982  ;;  %v1284_v51 = vsub.s32 4, %v4795_v54  ;;  %vm1461_vm4 = vc.u32 %v4987_v19, %v4980_v13  ;;  %v3701_v60 = vadd.s32 4294967169, %v1511_v37 }
 0x152   : > { %vm1303_vm5 = vcmp.lt.s32.totalorder %v4618_v15, 0  ;;  %v1374_v11 = vshll.u32 %v4928_v25, %v1372_v59  ;;  %v1375_v45 = vshrl.u32 %v1357_v53, %v1373_v2  ;;  %v1378_v3 = vadd.s32 127, %v1377_v36 }
 0x153   : > { %v1463_v48 = vsel %vm1461_vm4, %v1462_v34, %v4981_v33  ;;  %v6411_v20 = vand.u32 2147483648, %v4685_v10  ;;  %v6282_v26 = vand.u32 2147483647, %v4623_v62  ;;  %v1517_v18 = vadd.s32 1, %v3701_v60 }
 0x154   : > { %v1464_v30 = vadd.s32 %v1463_v48, %v1459_v31  ;;  %v1054_v16 = vsel %vm1053_vm11, %v4687_v61, %v1052_v32  ;;  %v1282_v22 = vxor.u32 2147483648, %v1281_v29  ;;  %v1379_v25 = vshll.u32 %v1378_v3, 23 }
 0x155   : > { %v5032_v27 = vsel %vm1048_vm10, %v6411_v20, %v1047_v57  ;;  %v1613_v24 = vand.u32 2139095040, %v4627_v23  ;;  %v1061_v33 = vsel %vm1060_vm12, %v4724_v44, %v1059_v41  ;;  %v1182_v10 = vsel %vm1097_vm15, %v1181_v0, %v4714_v7 }
 0x156   : > { %6412 = vst [vmem:[#allocation46_spill] sm:$0xff] %v5032_v27  ;;  %v1465_v55 = vadd.s32 536870912, %v1464_v30  ;;  %vm1518_vm6 = vcmp.gt.s32.totalorder %v1517_v18, 0  ;;  %v1285_v38 = vsel %vm1200_vm14, %v1284_v51, %v4795_v54  ;;  %v1376_v46 = vor.u32 %v1375_v45, %v1374_v11 }
 0x157   : > { %v1380_v32 = vor.u32 4788187, %v1379_v25  ;;  %v1519_v56 = vsel %vm1518_vm6, %v1517_v18, 0  ;;  %v1387_v1 = vsub.s32 4, %v4913_v9  ;;  %v1514_v53 = vand.u32 8388607, %v6282_v26 }
 0x158   : > { %v5049_v57 = vshrl.u32 %v1465_v55, 30  ;;  %v1521_v59 = vand.u32 31, %v1519_v56  ;;  %v6413_v31 = vand.u32 2147483648, %v4687_v61  ;;  %v5061_v54 = vsel %vm4906_vm2, 0, %v1182_v10 }
 0x159   : > { %v1283_v34 = vsel %vm1200_vm14, %v1282_v22, %v1281_v29  ;;  %v1614_v37 = vshrl.u32 %v1613_v24, 23  ;;  %v6415_v41 = vand.u32 2147483648, %v4724_v44  ;;  %v5072_v2 = vand.u32 3, %v5061_v54  ;;  %v5075_v0 = vpop.eup %3942 }
 0x15a   : > { %v5057_v7 = vsel %vm1055_vm13, %v6413_v31, %v1054_v16  ;;  %v1467_v61 = vshll.u32 %v5049_v57, 30  ;;  %v1522_v36 = vsub.s32 32, %v1521_v59  ;;  %6417 = vst [vmem:[#allocation49_spill] sm:$0xff] %v5075_v0  ;;  %3944 = vsinq.f32 %v4974_v47 }
 0x15b   : > { %6414 = vst [vmem:[#allocation47_spill] sm:$0xff] %v5057_v7  ;;  %v5069_v63 = vsel %vm1062_vm0, %v6415_v41, %v1061_v33  ;;  %v5080_v8 = vsel %vm5017_vm3, 0, %v1285_v38  ;;  %v1381_v29 = vand.u32 2147483647, %v1380_v32  ;;  %v1383_v51 = vcvt.s32.f32 %v1376_v46 }
 0x15c   : > { %6416 = vst [vmem:[#allocation48_spill] sm:$0xff] %v5069_v63  ;;  %v1286_v44 = vsel %vm5017_vm3, %v4616_v28, %v1283_v34  ;;  %v5088_v60 = vsel %vm1303_vm5, %v1387_v1, %v4913_v9  ;;  %v5090_v11 = vsub.s32 %v1464_v30, %v1467_v61  ;;  %v1515_v45 = vor.u32 8388608, %v1514_v53 }
 0x15d   : > { %v1524_v47 = vshll.u32 %v6394_v35, %v1521_v59  ;;  %v1525_v3 = vshrl.u32 %v6401_v21, %v1522_v36  ;;  %v1527_v48 = vshll.u32 %v6401_v21, %v1521_v59  ;;  %v3705_v20 = vadd.s32 4294967169, %v1614_v37 }
 0x15e   : > { %v6279_v18 = vxor.u32 2147483648, %v5075_v0  ;;  %v1470_v39 = vsub.s32 0, %v5090_v11  ;;  %v1528_v16 = vshrl.u32 %v6395_v50, %v1522_v36  ;;  %v1530_v22 = vshll.u32 %v6395_v50, %v1521_v59 }
 0x15f   : > { %3946 = vcosq.f32 %v1286_v44  ;;  %v1384_v9 = vmul.f32 %v1383_v51, %v1381_v29  ;;  %v1520_v30 = vshrl.u32 %v1519_v56, 5  ;;  %v1531_v25 = vshrl.u32 %v6396_v6, %v1522_v36 }
 0x160   : > { %3948 = vsinq.f32 %v1286_v44  ;;  %v3698_v24 = vmin.u32 %v1470_v39, %v5090_v11  ;;  %v1533_v33 = vshll.u32 %v6396_v6, %v1521_v59  ;;  %v5102_v10 = vshll.u32 %v1515_v45, 8 }
 0x161   : > { %v6418_v55 = vand.u32 2147483647, %v4618_v15  ;;  %v1523_v46 = vshrl.u32 %v6394_v35, %v1522_v36  ;;  %v1526_v32 = vor.u32 %v1525_v3, %v1524_v47  ;;  %v1529_v1 = vor.u32 %v1528_v16, %v1527_v48 }
 0x162   : > { %v1620_v56 = vadd.s32 1, %v3705_v20  ;;  %v1472_v53 = vclz %v3698_v24  ;;  %v1532_v31 = vor.u32 %v1531_v25, %v1530_v22  ;;  %v1534_v34 = vshrl.u32 %v6397_v14, %v1522_v36 }
 0x163   : > { %vm5106_vm15 = vcmp.le.f32.partialorder %v6418_v55, 0.7853982  ;;  %v1536_v37 = vshll.u32 %v6397_v14, %v1521_v59  ;;  %vm1193_vm2 = vcmp.eq.s32.totalorder %v5072_v2, 2  ;;  %v1385_v41 = vxor.u32 2147483648, %v1384_v9 }
 0x164   : > { %v1537_v61 = vshrl.u32 %v6391_v43, %v1522_v36  ;;  %vm1539_vm7 = vcmp.lt.s32.totalorder %v1520_v30, 1  ;;  %vm1540_vm8 = vcmp.lt.s32.totalorder %v1520_v30, 2  ;;  %v3699_v29 = vadd.s32 4294967294, %v1472_v53 }
 0x165   : > { %v1535_v51 = vor.u32 %v1534_v34, %v1533_v33  ;;  %vm1541_vm9 = vcmp.lt.s32.totalorder %v1520_v30, 3  ;;  %vm1542_vm10 = vcmp.lt.s32.totalorder %v1520_v30, 4  ;;  %v1543_v45 = vsel %vm1539_vm7, %v1523_v46, %v1526_v32 }
 0x166   : > { %v1538_v44 = vor.u32 %v1537_v61, %v1536_v37  ;;  %v1544_v47 = vsel %vm1542_vm10, %v1532_v31, 2102212464  ;;  %v1547_v3 = vsel %vm1539_vm7, %v1526_v32, %v1529_v1  ;;  %vm3700_vm11 = vcmp.lt.s32.totalorder %v3699_v29, 0 }
 0x167   : > { %v1545_v48 = vsel %vm1541_vm9, %v1529_v1, %v1544_v47  ;;  %v1548_v20 = vsel %vm1542_vm10, %v1535_v51, 920167782  ;;  %v1551_v59 = vsel %vm1539_vm7, %v1529_v1, %v1532_v31  ;;  %v1475_v39 = vsel %vm3700_vm11, 0, %v3699_v29  ;;  %v5117_v36 = vpop.eup %3944 }
 0x168   : > { %v1549_v16 = vsel %vm1541_vm9, %v1532_v31, %v1548_v20  ;;  %v1552_v22 = vsel %vm1542_vm10, %v1538_v44, 1326507024  ;;  %vm1621_vm12 = vcmp.gt.s32.totalorder %v1620_v56, 0  ;;  %6421 = vst [vmem:[#allocation50_spill] sm:$0xff] %v5117_v36  ;;  %v1386_v25 = vsel %vm1303_vm5, %v1385_v41, %v1384_v9 }
 0x169   : > { %v1460_v24 = vadd.s32 %v4980_v13, %v4987_v19  ;;  %v1480_v33 = vsub.s32 4294967266, %v1475_v39  ;;  %v1550_v55 = vsel %vm1540_vm8, %v1547_v3, %v1549_v16  ;;  %v1476_v46 = vsub.s32 32, %v1475_v39 }
 0x16a   : > { %v1553_v32 = vsel %vm1541_vm9, %v1535_v51, %v1552_v22  ;;  %v5126_v1 = vmul.u32.u64.low %v5102_v10, %v1550_v55  ;;  %v5127_v53 = vmul.u32.u64.high %v5102_v10, %v1550_v55, %v5126_v1  ;;  %v1546_v34 = vsel %vm1540_vm8, %v1543_v45, %v1545_v48 }
 0x16b   : > { %v1481_v31 = vadd.s32 127, %v1480_v33  ;;  %v1554_v37 = vsel %vm1540_vm8, %v1551_v59, %v1553_v32  ;;  %v1622_v9 = vsel %vm1621_vm12, %v1620_v56, 0  ;;  %v6280_v19 = vand.u32 2147483647, %v4627_v23 }
 0x16c   : > { %v5133_v41 = vmul.u32.u64.low %v5102_v10, %v1554_v37  ;;  %v5134_v13 = vmul.u32.u64.high %v5102_v10, %v1554_v37, %v5133_v41  ;;  %v1624_v61 = vand.u32 31, %v1622_v9  ;;  %v5137_v29 = vpop.eup %3946  ;;  %vm1190_vm13 = vcmp.eq.s32.totalorder %v5072_v2, 0 }
 0x16d   : > { %6422 = vst [vmem:[#allocation51_spill] sm:$0xff] %v5137_v29  ;;  %v5141_v51 = vand.u32 3, %v5080_v8  ;;  %v1389_v30 = vsel %vm5106_vm15, %v4618_v15, %v1386_v25  ;;  %v1477_v56 = vshll.u32 %v5090_v11, %v1475_v39  ;;  %v5147_v44 = vpop.eup %3948  ;;  %v1478_v45 = vshrl.u32 %v1460_v24, %v1476_v46 }
 0x16e   : > { %6423 = vst [vmem:[#allocation52_spill] sm:$0xff] %v5147_v44  ;;  %v1562_v47 = vmul.u32 %v5102_v10, %v1546_v34  ;;  %v1565_v3 = vadd.s32 1, %v5127_v53  ;;  %v1625_v48 = vsub.s32 32, %v1624_v61  ;;  %v6281_v20 = vxor.u32 2147483648, %v5117_v36 }
 0x16f   : > { %v5157_v59 = vsel %vm1193_vm2, %v6279_v18, %v5117_v36  ;;  %v5162_v11 = vsel %vm5106_vm15, 0, %v5088_v60  ;;  %v1482_v39 = vshll.u32 %v1481_v31, 23  ;;  %3950 = vcosq.f32 %v1389_v30 }
 0x170   : > { %vm1564_vm14 = vc.u32 %v5134_v13, %v5126_v1  ;;  %v1617_v10 = vand.u32 8388607, %v6280_v19  ;;  %v1627_v16 = vshll.u32 %v6394_v35, %v1624_v61  ;;  %v1628_v25 = vshrl.u32 %v6401_v21, %v1625_v48 }
 0x171   : > { %v1566_v22 = vsel %vm1564_vm14, %v1565_v3, %v5127_v53  ;;  %v1630_v24 = vshll.u32 %v6401_v21, %v1624_v61  ;;  %v1636_v38 = vshll.u32 %v6396_v6, %v1624_v61  ;;  %v1479_v60 = vor.u32 %v1478_v45, %v1477_v56 }
 0x172   : > { %v1567_v33 = vadd.s32 %v1566_v22, %v1562_v47  ;;  %v1623_v55 = vshrl.u32 %v1622_v9, 5  ;;  %v1631_v46 = vshrl.u32 %v6395_v50, %v1625_v48  ;;  %vm1189_vm0 = vcmp.lt.s32.totalorder %v5072_v2, 2 }
 0x173   : > { %vm1293_vm1 = vcmp.eq.s32.totalorder %v5141_v51, 0  ;;  %vm1296_vm3 = vcmp.eq.s32.totalorder %v5141_v51, 2  ;;  %v1483_v32 = vor.u32 4788187, %v1482_v39  ;;  %v1633_v53 = vshll.u32 %v6395_v50, %v1624_v61 }
 0x174   : > { %v1634_v31 = vshrl.u32 %v6396_v6, %v1625_v48  ;;  %v1637_v34 = vshrl.u32 %v6397_v14, %v1625_v48  ;;  %v1192_v37 = vsel %vm1190_vm13, %v5075_v0, %v6281_v20  ;;  %3952 = vsinq.f32 %v1389_v30 }
 0x175   : > { %v1568_v9 = vadd.s32 536870912, %v1567_v33  ;;  %v1618_v41 = vor.u32 8388608, %v1617_v10  ;;  %v1629_v56 = vor.u32 %v1628_v25, %v1627_v16  ;;  %v1632_v45 = vor.u32 %v1631_v46, %v1630_v24 }
 0x176   : > { %v1638_v47 = vor.u32 %v1637_v34, %v1636_v38  ;;  %v1639_v3 = vshll.u32 %v6397_v14, %v1624_v61  ;;  %vm1406_vm4 = vcmp.lt.s32.totalorder %v4621_v49, 0  ;;  %v1486_v39 = vcvt.s32.f32 %v1479_v60 }
 0x177   : > { %v5187_v22 = vshrl.u32 %v1568_v9, 30  ;;  %v1640_v18 = vshrl.u32 %v6391_v43, %v1625_v48  ;;  %vm1642_vm5 = vcmp.lt.s32.totalorder %v1623_v55, 1  ;;  %vm1187_vm6 = vweird.f32 %v4599_v12 }
 0x178   : > { %v1484_v19 = vand.u32 2147483647, %v1483_v32  ;;  %v1626_v30 = vshrl.u32 %v6394_v35, %v1625_v48  ;;  %v1635_v20 = vor.u32 %v1634_v31, %v1633_v53  ;;  %vm1645_vm15 = vcmp.lt.s32.totalorder %v1623_v55, 4 }
 0x179   : > { %vm1292_vm2 = vcmp.lt.s32.totalorder %v5141_v51, 2  ;;  %v1570_v10 = vshll.u32 %v5187_v22, 30  ;;  %v1641_v61 = vor.u32 %v1640_v18, %v1639_v3  ;;  %vm1644_vm7 = vcmp.lt.s32.totalorder %v1623_v55, 3 }
 0x17a   : > { %v1658_v16 = vshll.u32 %v1618_v41, 8  ;;  %vm1643_vm8 = vcmp.lt.s32.totalorder %v1623_v55, 2  ;;  %v1647_v25 = vsel %vm1645_vm15, %v1635_v20, 2102212464  ;;  %v1650_v24 = vsel %vm1642_vm5, %v1629_v56, %v1632_v45 }
 0x17b   : > { %v1651_v38 = vsel %vm1645_vm15, %v1638_v47, 920167782  ;;  %v6284_v60 = vxor.u32 2147483648, %v5147_v44  ;;  %v1490_v46 = vsub.s32 4, %v5049_v57  ;;  %v5200_v32 = vsub.s32 %v1567_v33, %v1570_v10 }
 0x17c   : > { %v1487_v53 = vmul.f32 %v1486_v39, %v1484_v19  ;;  %v1646_v18 = vsel %vm1642_vm5, %v1626_v30, %v1629_v56  ;;  %v1648_v31 = vsel %vm1644_vm7, %v1632_v45, %v1647_v25  ;;  %v1652_v34 = vsel %vm1644_vm7, %v1635_v20, %v1651_v38  ;;  %v5209_v48 = vpop.eup %3950 }
 0x17d   : > { %v1573_v9 = vsub.s32 0, %v5200_v32  ;;  %v1653_v41 = vsel %vm1643_vm8, %v1650_v24, %v1652_v34  ;;  %v1654_v3 = vsel %vm1642_vm5, %v1632_v45, %v1635_v20  ;;  %v1655_v26 = vsel %vm1645_vm15, %v1641_v61, 1326507024  ;;  %6424 = vst [vmem:[#allocation53_spill] sm:$0xff] %v5209_v48 }
 0x17e   : > { %v5212_v33 = vand.u32 3, %v5162_v11  ;;  %v1656_v19 = vsel %vm1644_vm7, %v1638_v47, %v1655_v26  ;;  %v5215_v56 = vmul.u32.u64.low %v1658_v16, %v1653_v41  ;;  %v5216_v39 = vmul.u32.u64.high %v1658_v16, %v1653_v41, %v5215_v56 }
 0x17f   : > { %v1196_v30 = vsel %vm1189_vm0, %v1192_v37, %v5157_v59  ;;  %v1295_v20 = vsel %vm1293_vm1, %v5137_v29, %v6284_v60  ;;  %v6425_v45 = vxor.u32 2147483648, %v5137_v29  ;;  %v3702_v47 = vmin.u32 %v1573_v9, %v5200_v32 }
 0x180   : > { %v1491_v10 = vsel %vm1406_vm4, %v1490_v46, %v5049_v57  ;;  %v1649_v2 = vsel %vm1643_vm8, %v1646_v18, %v1648_v31  ;;  %v1657_v59 = vsel %vm1643_vm8, %v1654_v3, %v1656_v19  ;;  %v1716_v37 = vand.u32 2139095040, %v4629_v58 }
 0x181   : > { %v1298_v26 = vsel %vm1296_vm3, %v6425_v45, %v5147_v44  ;;  %v1488_v61 = vxor.u32 2147483648, %v1487_v53  ;;  %v1575_v25 = vclz %v3702_v47  ;;  %v5242_v34 = vpop.eup %3952  ;;  %vm1396_vm9 = vcmp.eq.s32.totalorder %v5212_v33, 0 }
 0x182   : > { %v5239_v24 = vmul.u32.u64.low %v1658_v16, %v1657_v59  ;;  %v5240_v38 = vmul.u32.u64.high %v1658_v16, %v1657_v59, %v5239_v24  ;;  %6426 = vst [vmem:[#allocation54_spill] sm:$0xff] %v5242_v34  ;;  %v6427_v9 = vand.u32 2147483647, %v4621_v49  ;;  %v1668_v57 = vadd.s32 1, %v5216_v39 }
 0x183   : > { %v1717_v55 = vshrl.u32 %v1716_v37, 23  ;;  %v5254_v46 = vsel %vm1187_vm6, nan, %v1196_v30  ;;  %vm1399_vm11 = vcmp.eq.s32.totalorder %v5212_v33, 2  ;;  %v3703_v18 = vadd.s32 4294967294, %v1575_v25 }
 0x184   : > { %vm5247_vm10 = vcmp.le.f32.partialorder %v6427_v9, 0.7853982  ;;  %v1665_v31 = vmul.u32 %v1658_v16, %v1649_v2  ;;  %v5259_v3 = vsel %vm1292_vm2, %v1295_v20, %v1298_v26  ;;  %vm1509_vm12 = vcmp.lt.s32.totalorder %v4623_v62, 0  ;;  %v6431_v26 = vld [vmem:[#allocation42_spill] sm:$0xff] }
 0x185   : > { %v5263_v19 = vsel %vm5247_vm10, 0, %v1491_v10  ;;  %v6285_v45 = vand.u32 2147483647, %v4629_v58  ;;  %v3709_v47 = vadd.s32 4294967169, %v1717_v55  ;;  %v1489_v30 = vsel %vm1406_vm4, %v1488_v61, %v1487_v53 }
 0x186   : > { %6430 = vst [vmem:[#allocation55_spill] sm:$0xff] %v5263_v19  ;;  %v1563_v59 = vadd.s32 %v5126_v1, %v5134_v13  ;;  %vm3704_vm13 = vcmp.lt.s32.totalorder %v3703_v18, 0  ;;  %vm1667_vm14 = vc.u32 %v5240_v38, %v5215_v56  ;;  %v1819_v10 = vand.u32 2139095040, %v6431_v26 }
 0x187   : > { %v1578_v51 = vsel %vm3704_vm13, 0, %v3703_v18  ;;  %v1669_v16 = vsel %vm1667_vm14, %v1668_v57, %v5216_v39  ;;  %v1723_v20 = vadd.s32 1, %v3709_v47  ;;  %v6283_v53 = vxor.u32 2147483648, %v5242_v34 }
 0x188   : > { %v1579_v2 = vsub.s32 32, %v1578_v51  ;;  %v1580_v37 = vshll.u32 %v5200_v32, %v1578_v51  ;;  %v1583_v25 = vsub.s32 4294967266, %v1578_v51  ;;  %v1670_v24 = vadd.s32 %v1669_v16, %v1665_v31 }
 0x189   : > { %v6286_v61 = vxor.u32 2147483648, %v5209_v48  ;;  %v1492_v1 = vsel %vm5247_vm10, %v4621_v49, %v1489_v30  ;;  %vm1724_vm0 = vcmp.gt.s32.totalorder %v1723_v20, 0  ;;  %v1593_v39 = vsub.s32 4, %v5187_v22 }
 0x18a   : > { %v1581_v13 = vshrl.u32 %v1563_v59, %v1579_v2  ;;  %v1584_v9 = vadd.s32 127, %v1583_v25  ;;  %v1671_v57 = vadd.s32 536870912, %v1670_v24  ;;  %v5283_v55 = vand.u32 3, %v5263_v19 }
 0x18b   : > { %v1720_v32 = vand.u32 8388607, %v6285_v45  ;;  %v1725_v18 = vsel %vm1724_vm0, %v1723_v20, 0  ;;  %v1820_v31 = vshrl.u32 %v1819_v10, 23  ;;  %3954 = vcosq.f32 %v1492_v1 }
 0x18c   : > { %v6432_v47 = vand.u32 2147483647, %v4623_v62  ;;  %v1582_v30 = vor.u32 %v1581_v13, %v1580_v37  ;;  %v1585_v59 = vshll.u32 %v1584_v9, 23  ;;  %v5293_v51 = vshrl.u32 %v1671_v57, 30 }
 0x18d   : > { %v5300_v16 = vsel %vm1396_vm9, %v5209_v48, %v6283_v53  ;;  %v5307_v20 = vsel %vm1399_vm11, %v6286_v61, %v5242_v34  ;;  %3956 = vsinq.f32 %v1492_v1  ;;  %v1727_v10 = vand.u32 31, %v1725_v18 }
 0x18e   : > { %vm5289_vm1 = vcmp.le.f32.partialorder %v6432_v47, 0.7853982  ;;  %v1586_v2 = vor.u32 4788187, %v1585_v59  ;;  %v1589_v37 = vcvt.s32.f32 %v1582_v30  ;;  %v5312_v25 = vsel %vm1509_vm12, %v1593_v39, %v5187_v22 }
 0x18f   : > { %v1673_v13 = vshll.u32 %v5293_v51, 30  ;;  %v1721_v9 = vor.u32 8388608, %v1720_v32  ;;  %v1728_v57 = vsub.s32 32, %v1727_v10  ;;  %v3713_v53 = vadd.s32 4294967169, %v1820_v31 }
 0x190   : > { %v1587_v60 = vand.u32 2147483647, %v1586_v2  ;;  %v1730_v1 = vshll.u32 %v6394_v35, %v1727_v10  ;;  %v1733_v59 = vshll.u32 %v6401_v21, %v1727_v10  ;;  %v1736_v22 = vshll.u32 %v6395_v50, %v1727_v10 }
 0x191   : > { %v5316_v45 = vsub.s32 %v1670_v24, %v1673_v13  ;;  %v1731_v30 = vshrl.u32 %v6401_v21, %v1728_v57  ;;  %v1734_v61 = vshrl.u32 %v6395_v50, %v1728_v57  ;;  %v1739_v39 = vshll.u32 %v6396_v6, %v1727_v10 }
 0x192   : > { %v1590_v32 = vmul.f32 %v1589_v37, %v1587_v60  ;;  %v1726_v47 = vshrl.u32 %v1725_v18, 5  ;;  %v1737_v31 = vshrl.u32 %v6396_v6, %v1728_v57  ;;  %v1666_v24 = vadd.s32 %v5215_v56, %v5240_v38 }
 0x193   : > { %v1676_v63 = vsub.s32 0, %v5316_v45  ;;  %v1740_v2 = vshrl.u32 %v6397_v14, %v1728_v57  ;;  %v5329_v13 = vshll.u32 %v1721_v9, 8  ;;  %v1826_v7 = vadd.s32 1, %v3713_v53 }
 0x194   : > { %vm1395_vm3 = vcmp.lt.s32.totalorder %v5212_v33, 2  ;;  %v1591_v27 = vxor.u32 2147483648, %v1590_v32  ;;  %v1729_v60 = vshrl.u32 %v6394_v35, %v1728_v57  ;;  %v1742_v37 = vshll.u32 %v6397_v14, %v1727_v10 }
 0x195   : > { %v3706_v12 = vmin.u32 %v1676_v63, %v5316_v45  ;;  %v1732_v18 = vor.u32 %v1731_v30, %v1730_v1  ;;  %v1735_v48 = vor.u32 %v1734_v61, %v1733_v59  ;;  %v1738_v34 = vor.u32 %v1737_v31, %v1736_v22 }
 0x196   : > { %v1741_v29 = vor.u32 %v1740_v2, %v1739_v39  ;;  %vm1290_vm4 = vweird.f32 %v4616_v28  ;;  %v1592_v56 = vsel %vm1509_vm12, %v1591_v27, %v1590_v32  ;;  %v1743_v53 = vshrl.u32 %v6391_v43, %v1728_v57 }
 0x197   : > { %v1678_v38 = vclz %v3706_v12  ;;  %vm1745_vm5 = vcmp.lt.s32.totalorder %v1726_v47, 1  ;;  %v1595_v63 = vsel %vm5289_vm1, %v4623_v62, %v1592_v56  ;;  %vm1747_vm15 = vcmp.lt.s32.totalorder %v1726_v47, 3 }
 0x198   : > { %vm1748_vm2 = vcmp.lt.s32.totalorder %v1726_v47, 4  ;;  %vm1827_vm7 = vcmp.gt.s32.totalorder %v1826_v7, 0  ;;  %vm1393_vm8 = vweird.f32 %v4618_v15  ;;  %3958 = vcosq.f32 %v1595_v63  ;;  %v5343_v9 = vpop.eup %3954 }
 0x199   : > { %v3707_v61 = vadd.s32 4294967294, %v1678_v38  ;;  %v1744_v10 = vor.u32 %v1743_v53, %v1742_v37  ;;  %vm1746_vm9 = vcmp.lt.s32.totalorder %v1726_v47, 2  ;;  %6435 = vst [vmem:[#allocation42_spill] sm:$0xff] %v5343_v9  ;;  %v1749_v12 = vsel %vm1745_vm5, %v1729_v60, %v1732_v18 }
 0x19a   : > { %v1750_v27 = vsel %vm1748_vm2, %v1738_v34, 2102212464  ;;  %v1753_v57 = vsel %vm1745_vm5, %v1732_v18, %v1735_v48  ;;  %v1754_v1 = vsel %vm1748_vm2, %v1741_v29, 920167782  ;;  %v5349_v59 = vpop.eup %3956  ;;  %v1757_v39 = vsel %vm1745_vm5, %v1735_v48, %v1738_v34 }
 0x19b   : > { %6436 = vst [vmem:[#allocation56_spill] sm:$0xff] %v5349_v59  ;;  %vm3708_vm10 = vcmp.lt.s32.totalorder %v3707_v61, 0  ;;  %v1751_v30 = vsel %vm1747_vm15, %v1735_v48, %v1750_v27  ;;  %v1755_v22 = vsel %vm1747_vm15, %v1738_v34, %v1754_v1  ;;  %3960 = vsinq.f32 %v1595_v63 }
 0x19c   : > { %v1681_v32 = vsel %vm3708_vm10, 0, %v3707_v61  ;;  %v1756_v31 = vsel %vm1746_vm9, %v1753_v57, %v1755_v22  ;;  %v1758_v2 = vsel %vm1748_vm2, %v1744_v10, 1326507024  ;;  %v1752_v38 = vsel %vm1746_vm9, %v1749_v12, %v1751_v30 }
 0x19d   : > { %v1682_v60 = vsub.s32 32, %v1681_v32  ;;  %v1683_v37 = vshll.u32 %v5316_v45, %v1681_v32  ;;  %v1686_v18 = vsub.s32 4294967266, %v1681_v32  ;;  %v1759_v56 = vsel %vm1747_vm15, %v1741_v29, %v1758_v2 }
 0x19e   : > { %v1760_v53 = vsel %vm1746_vm9, %v1757_v39, %v1759_v56  ;;  %v5361_v27 = vmul.u32.u64.low %v5329_v13, %v1756_v31  ;;  %v5362_v1 = vmul.u32.u64.high %v5329_v13, %v1756_v31, %v5361_v27  ;;  %v1402_v29 = vsel %vm1395_vm3, %v5300_v16, %v5307_v20  ;;  %v6439_v39 = vld [vmem:[#allocation43_spill] sm:$0xff] }
 0x19f   : > { %v1684_v48 = vshrl.u32 %v1666_v24, %v1682_v60  ;;  %v1687_v34 = vadd.s32 127, %v1686_v18  ;;  %v5366_v63 = vmul.u32.u64.low %v5329_v13, %v1760_v53  ;;  %v5367_v61 = vmul.u32.u64.high %v5329_v13, %v1760_v53, %v5366_v63 }
 0x1a0   : > { %v5376_v45 = vsel %vm5289_vm1, 0, %v5312_v25  ;;  %v6438_v47 = vand.u32 2147483647, %v6431_v26  ;;  %v1828_v24 = vsel %vm1827_vm7, %v1826_v7, 0  ;;  %v1768_v30 = vmul.u32 %v5329_v13, %v1752_v38 }
 0x1a1   : > { %6437 = vst [vmem:[#allocation57_spill] sm:$0xff] %v5376_v45  ;;  %v1685_v12 = vor.u32 %v1684_v48, %v1683_v37  ;;  %v1688_v57 = vshll.u32 %v1687_v34, 23  ;;  %v1830_v22 = vand.u32 31, %v1828_v24  ;;  %v5385_v33 = vsel %vm1290_vm4, nan, %v5259_v3 }
 0x1a2   : > { %v1823_v10 = vand.u32 8388607, %v6438_v47  ;;  %vm1499_vm11 = vcmp.eq.s32.totalorder %v5283_v55, 0  ;;  %v5389_v41 = vand.u32 3, %v5376_v45  ;;  %v1771_v16 = vadd.s32 1, %v5362_v1 }
 0x1a3   : > { %vm1502_vm12 = vcmp.eq.s32.totalorder %v5283_v55, 2  ;;  %vm1612_vm13 = vcmp.lt.s32.totalorder %v4627_v23, 0  ;;  %v1689_v7 = vor.u32 4788187, %v1688_v57  ;;  %v1692_v20 = vcvt.s32.f32 %v1685_v12 }
 0x1a4   : > { %vm1770_vm14 = vc.u32 %v5367_v61, %v5361_v27  ;;  %v5398_v3 = vsel %vm1393_vm8, nan, %v1402_v29  ;;  %v1831_v13 = vsub.s32 32, %v1830_v22  ;;  %v6299_v31 = vxor.u32 2147483648, %v5343_v9 }
 0x1a5   : > { %v1772_v25 = vsel %vm1770_vm14, %v1771_v16, %v5362_v1  ;;  %v1690_v2 = vand.u32 2147483647, %v1689_v7  ;;  %v1824_v37 = vor.u32 8388608, %v1823_v10  ;;  %v5403_v18 = vpop.eup %3958  ;;  %v6308_v56 = vxor.u32 2147483648, %v5349_v59 }
 0x1a6   : > { %v1773_v60 = vadd.s32 %v1772_v25, %v1768_v30  ;;  %6440 = vst [vmem:[#allocation43_spill] sm:$0xff] %v5403_v18  ;;  %vm1602_vm0 = vcmp.eq.s32.totalorder %v5389_v41, 0  ;;  %vm1605_vm1 = vcmp.eq.s32.totalorder %v5389_v41, 2  ;;  %v5408_v38 = vshrl.u32 %v1828_v24, 5 }
 0x1a7   : > { %v1833_v53 = vshll.u32 %v6394_v35, %v1830_v22  ;;  %v1836_v1 = vshll.u32 %v6401_v21, %v1830_v22  ;;  %v6441_v48 = vand.u32 2147483647, %v4627_v23  ;;  %v1693_v63 = vmul.f32 %v1692_v20, %v1690_v2 }
 0x1a8   : > { %v1774_v29 = vadd.s32 536870912, %v1773_v60  ;;  %v1834_v47 = vshrl.u32 %v6401_v21, %v1831_v13  ;;  %v1837_v10 = vshrl.u32 %v6395_v50, %v1831_v13  ;;  %v1839_v12 = vshll.u32 %v6395_v50, %v1830_v22  ;;  %v5424_v16 = vpop.eup %3960 }
 0x1a9   : > { %vm5414_vm3 = vcmp.le.f32.partialorder %v6441_v48, 0.7853982  ;;  %v1840_v24 = vshrl.u32 %v6396_v6, %v1831_v13  ;;  %v1842_v57 = vshll.u32 %v6396_v6, %v1830_v22  ;;  %v1843_v30 = vshrl.u32 %v6397_v14, %v1831_v13  ;;  %6444 = vst [vmem:[#allocation58_spill] sm:$0xff] %v5424_v16 }
 0x1aa   : > { %v1504_v7 = vsel %vm1502_vm12, %v6299_v31, %v5349_v59  ;;  %v5431_v20 = vshrl.u32 %v1774_v29, 30  ;;  %v5433_v25 = vshll.u32 %v1824_v37, 8  ;;  %v1922_v2 = vand.u32 2139095040, %v6439_v39 }
 0x1ab   : > { %vm1498_vm5 = vcmp.lt.s32.totalorder %v5283_v55, 2  ;;  %v1501_v48 = vsel %vm1499_vm11, %v5343_v9, %v6308_v56  ;;  %v1694_v32 = vxor.u32 2147483648, %v1693_v63  ;;  %v1845_v15 = vshll.u32 %v6397_v14, %v1830_v22 }
 0x1ac   : > { %v1846_v28 = vshrl.u32 %v6391_v43, %v1831_v13  ;;  %v1776_v29 = vshll.u32 %v5431_v20, 30  ;;  %v1832_v37 = vshrl.u32 %v6394_v35, %v1831_v13  ;;  %v1835_v31 = vor.u32 %v1834_v47, %v1833_v53 }
 0x1ad   : > { %v1838_v44 = vor.u32 %v1837_v10, %v1836_v1  ;;  %vm1601_vm15 = vcmp.lt.s32.totalorder %v5389_v41, 2  ;;  %v1841_v0 = vor.u32 %v1840_v24, %v1839_v12  ;;  %v1844_v36 = vor.u32 %v1843_v30, %v1842_v57 }
 0x1ae   : > { %v1847_v59 = vor.u32 %v1846_v28, %v1845_v15  ;;  %vm1848_vm2 = vcmp.lt.s32.totalorder %v5408_v38, 1  ;;  %v6314_v56 = vxor.u32 2147483648, %v5424_v16  ;;  %v6313_v9 = vxor.u32 2147483648, %v5403_v18 }
 0x1af   : > { %v5450_v22 = vsub.s32 %v1773_v60, %v1776_v29  ;;  %v1923_v45 = vshrl.u32 %v1922_v2, 23  ;;  %v1695_v19 = vsel %vm1612_vm13, %v1694_v32, %v1693_v63  ;;  %vm1849_vm7 = vcmp.lt.s32.totalorder %v5408_v38, 2 }
 0x1b0   : > { %vm1850_vm9 = vcmp.lt.s32.totalorder %v5408_v38, 3  ;;  %vm1851_vm10 = vcmp.lt.s32.totalorder %v5408_v38, 4  ;;  %vm1496_vm11 = vweird.f32 %v4621_v49  ;;  %v1852_v15 = vsel %vm1848_vm2, %v1832_v37, %v1835_v31 }
 0x1b1   : > { %v1779_v28 = vsub.s32 0, %v5450_v22  ;;  %v1853_v13 = vsel %vm1851_vm10, %v1841_v0, 2102212464  ;;  %v1856_v60 = vsel %vm1848_vm2, %v1835_v31, %v1838_v44  ;;  %v1857_v53 = vsel %vm1851_vm10, %v1844_v36, 920167782 }
 0x1b2   : > { %v1854_v32 = vsel %vm1850_vm9, %v1838_v44, %v1853_v13  ;;  %v1860_v1 = vsel %vm1848_vm2, %v1838_v44, %v1841_v0  ;;  %v1861_v63 = vsel %vm1851_vm10, %v1847_v59, 1326507024  ;;  %vm6325_vm12 = vweird.f32 %v4623_v62 }
 0x1b3   : > { %v1604_v47 = vsel %vm1602_vm0, %v5403_v18, %v6314_v56  ;;  %v1607_v31 = vsel %vm1605_vm1, %v6313_v9, %v5424_v16  ;;  %v1696_v10 = vsub.s32 4, %v5293_v51  ;;  %vm1715_vm14 = vcmp.lt.s32.totalorder %v4629_v58, 0 }
 0x1b4   : > { %v3710_v44 = vmin.u32 %v1779_v28, %v5450_v22  ;;  %v1698_v59 = vsel %vm5414_vm3, %v4627_v23, %v1695_v19  ;;  %v1858_v12 = vsel %vm1850_vm9, %v1841_v0, %v1857_v53  ;;  %v1862_v24 = vsel %vm1850_vm9, %v1844_v36, %v1861_v63 }
 0x1b5   : > { %v3717_v57 = vadd.s32 4294967169, %v1923_v45  ;;  %v1855_v2 = vsel %vm1849_vm7, %v1852_v15, %v1854_v32  ;;  %v1859_v29 = vsel %vm1849_vm7, %v1856_v60, %v1858_v12  ;;  %v1863_v37 = vsel %vm1849_vm7, %v1860_v1, %v1862_v24 }
 0x1b6   : > { %v1781_v30 = vclz %v3710_v44  ;;  %v6445_v28 = vand.u32 2147483647, %v4629_v58  ;;  %v5501_v0 = vmul.u32.u64.low %v5433_v25, %v1863_v37  ;;  %v5502_v36 = vmul.u32.u64.high %v5433_v25, %v1863_v37, %v5501_v0 }
 0x1b7   : > { %v5505_v45 = vmul.u32.u64.low %v5433_v25, %v1859_v29  ;;  %v5506_v13 = vmul.u32.u64.high %v5433_v25, %v1859_v29, %v5505_v45  ;;  %v1505_v15 = vsel %vm1498_vm5, %v1501_v48, %v1504_v7  ;;  %v1697_v38 = vsel %vm1612_vm13, %v1696_v10, %v5293_v51 }
 0x1b8   : > { %vm5496_vm0 = vcmp.le.f32.partialorder %v6445_v28, 0.7853982  ;;  %v3711_v60 = vadd.s32 4294967294, %v1781_v30  ;;  %v1929_v32 = vadd.s32 1, %v3717_v57  ;;  %3962 = vcosq.f32 %v1698_v59 }
 0x1b9   : > { %v1769_v53 = vadd.s32 %v5361_v27, %v5367_v61  ;;  %v1799_v1 = vsub.s32 4, %v5431_v20  ;;  %v6448_v63 = vand.u32 2147483647, %v6439_v39  ;;  %v1608_v12 = vsel %vm1601_vm15, %v1604_v47, %v1607_v31 }
 0x1ba   : > { %vm3712_vm1 = vcmp.lt.s32.totalorder %v3711_v60, 0  ;;  %v1871_v55 = vmul.u32 %v5433_v25, %v1855_v2  ;;  %vm1930_vm5 = vcmp.gt.s32.totalorder %v1929_v32, 0  ;;  %3964 = vsinq.f32 %v1698_v59 }
 0x1bb   : > { %v1926_v44 = vand.u32 8388607, %v6448_v63  ;;  %v1784_v51 = vsel %vm3712_vm1, 0, %v3711_v60  ;;  %vm1873_vm13 = vc.u32 %v5502_v36, %v5505_v45  ;;  %v1874_v7 = vadd.s32 1, %v5506_v13 }
 0x1bc   : > { %v1785_v27 = vsub.s32 32, %v1784_v51  ;;  %v1786_v61 = vshll.u32 %v5450_v22, %v1784_v51  ;;  %v1789_v48 = vsub.s32 4294967266, %v1784_v51  ;;  %v1931_v10 = vsel %vm1930_vm5, %v1929_v32, 0 }
 0x1bd   : > { %v5528_v41 = vsel %vm1496_vm11, nan, %v1505_v15  ;;  %v1800_v25 = vsel %vm1715_vm14, %v1799_v1, %v5431_v20  ;;  %v1875_v47 = vsel %vm1873_vm13, %v1874_v7, %v5506_v13  ;;  %v1933_v31 = vand.u32 31, %v1931_v10 }
 0x1be   : > { %v5536_v59 = vsel %vm5414_vm3, 0, %v1697_v38  ;;  %v1787_v24 = vshrl.u32 %v1769_v53, %v1785_v27  ;;  %v1790_v57 = vadd.s32 127, %v1789_v48  ;;  %v1876_v22 = vadd.s32 %v1875_v47, %v1871_v55  ;;  %v6449_v55 = vld [vmem:[#allocation44_spill] sm:$0xff] }
 0x1bf   : > { %v5540_v30 = vsel %vm6325_vm12, nan, %v1608_v12  ;;  %v5543_v2 = vand.u32 3, %v5536_v59  ;;  %v1927_v29 = vor.u32 8388608, %v1926_v44  ;;  %v1934_v37 = vsub.s32 32, %v1933_v31 }
 0x1c0   : > { %v1788_v20 = vor.u32 %v1787_v24, %v1786_v61  ;;  %v1791_v28 = vshll.u32 %v1790_v57, 23  ;;  %v5547_v0 = vsel %vm5496_vm0, 0, %v1800_v25  ;;  %v1877_v34 = vadd.s32 536870912, %v1876_v22 }
 0x1c1   : > { %v5550_v13 = vand.u32 3, %v5547_v0  ;;  %v1936_v15 = vshll.u32 %v6394_v35, %v1933_v31  ;;  %v1937_v38 = vshrl.u32 %v6401_v21, %v1934_v37  ;;  %v1939_v60 = vshll.u32 %v6401_v21, %v1933_v31 }
 0x1c2   : > { %v1792_v32 = vor.u32 4788187, %v1791_v28  ;;  %v1795_v53 = vcvt.s32.f32 %v1788_v20  ;;  %v5555_v1 = vshrl.u32 %v1877_v34, 30  ;;  %v1940_v63 = vshrl.u32 %v6395_v50, %v1934_v37 }
 0x1c3   : > { %v5558_v44 = vshrl.u32 %v1931_v10, 5  ;;  %v5560_v12 = vshll.u32 %v1927_v29, 8  ;;  %v2025_v7 = vand.u32 2139095040, %v6449_v55  ;;  %vm1708_vm3 = vcmp.eq.s32.totalorder %v5543_v2, 2 }
 0x1c4   : > { %v1793_v27 = vand.u32 2147483647, %v1792_v32  ;;  %v1879_v61 = vshll.u32 %v5555_v1, 30  ;;  %v1942_v48 = vshll.u32 %v6395_v50, %v1933_v31  ;;  %v1943_v25 = vshrl.u32 %v6396_v6, %v1934_v37 }
 0x1c5   : > { %vm1705_vm15 = vcmp.eq.s32.totalorder %v5543_v2, 0  ;;  %v1945_v10 = vshll.u32 %v6396_v6, %v1933_v31  ;;  %v1946_v47 = vshrl.u32 %v6397_v14, %v1934_v37  ;;  %v1948_v24 = vshll.u32 %v6397_v14, %v1933_v31  ;;  %v5573_v29 = vpop.eup %3962 }
 0x1c6   : > { %v1949_v57 = vshrl.u32 %v6391_v43, %v1934_v37  ;;  %v1796_v20 = vmul.f32 %v1795_v53, %v1793_v27  ;;  %v5575_v28 = vsub.s32 %v1876_v22, %v1879_v61  ;;  %v1938_v34 = vor.u32 %v1937_v38, %v1936_v15 }
 0x1c7   : > { %v1941_v32 = vor.u32 %v1940_v63, %v1939_v60  ;;  %v1872_v9 = vadd.s32 %v5505_v45, %v5502_v36  ;;  %v1947_v56 = vor.u32 %v1946_v47, %v1945_v10  ;;  %vm1951_vm2 = vcmp.lt.s32.totalorder %v5558_v44, 1  ;;  %v5580_v62 = vpop.eup %3964 }
 0x1c8   : > { %v2026_v51 = vshrl.u32 %v2025_v7, 23  ;;  %v1797_v18 = vxor.u32 2147483648, %v1796_v20  ;;  %v1882_v31 = vsub.s32 0, %v5575_v28  ;;  %v1935_v16 = vshrl.u32 %v6394_v35, %v1934_v37 }
 0x1c9   : > { %v1944_v49 = vor.u32 %v1943_v25, %v1942_v48  ;;  %vm1704_vm7 = vcmp.lt.s32.totalorder %v5543_v2, 2  ;;  %v6321_v22 = vxor.u32 2147483648, %v5573_v29  ;;  %v1950_v15 = vor.u32 %v1949_v57, %v1948_v24 }
 0x1ca   : > { %vm1953_vm9 = vcmp.lt.s32.totalorder %v5558_v44, 3  ;;  %vm1954_vm10 = vcmp.lt.s32.totalorder %v5558_v44, 4  ;;  %v1798_v36 = vsel %vm1715_vm14, %v1797_v18, %v1796_v20  ;;  %vm1818_vm1 = vcmp.lt.s32.totalorder %v6431_v26, 0 }
 0x1cb   : > { %v3714_v45 = vmin.u32 %v1882_v31, %v5575_v28  ;;  %vm1952_vm5 = vcmp.lt.s32.totalorder %v5558_v44, 2  ;;  %v1959_v37 = vsel %vm1951_vm2, %v1938_v34, %v1941_v32  ;;  %v6322_v38 = vxor.u32 2147483648, %v5580_v62 }
 0x1cc   : > { %v1801_v60 = vsel %vm5496_vm0, %v4629_v58, %v1798_v36  ;;  %v1956_v53 = vsel %vm1954_vm10, %v1944_v49, 2102212464  ;;  %v1960_v18 = vsel %vm1954_vm10, %v1947_v56, 920167782  ;;  %vm6324_vm14 = vweird.f32 %v4627_v23 }
 0x1cd   : > { %3966 = vcosq.f32 %v1801_v60  ;;  %v1884_v63 = vclz %v3714_v45  ;;  %v1955_v7 = vsel %vm1951_vm2, %v1935_v16, %v1938_v34  ;;  %v1961_v27 = vsel %vm1953_vm9, %v1944_v49, %v1960_v18 }
 0x1ce   : > { %3968 = vsinq.f32 %v1801_v60  ;;  %v6450_v19 = vand.u32 2147483647, %v6431_v26  ;;  %v1957_v48 = vsel %vm1953_vm9, %v1941_v32, %v1956_v53  ;;  %v1962_v25 = vsel %vm1952_vm5, %v1959_v37, %v1961_v27 }
 0x1cf   : > { %v1963_v10 = vsel %vm1951_vm2, %v1941_v32, %v1944_v49  ;;  %v3715_v16 = vadd.s32 4294967294, %v1884_v63  ;;  %v1964_v47 = vsel %vm1954_vm10, %v1950_v15, 1326507024  ;;  %v1710_v20 = vsel %vm1708_vm3, %v6321_v22, %v5580_v62 }
 0x1d0   : > { %vm5610_vm0 = vcmp.le.f32.partialorder %v6450_v19, 0.7853982  ;;  %v5623_v24 = vmul.u32.u64.low %v5560_v12, %v1962_v25  ;;  %v5624_v57 = vmul.u32.u64.high %v5560_v12, %v1962_v25, %v5623_v24  ;;  %v1902_v34 = vsub.s32 4, %v5555_v1 }
 0x1d1   : > { %v1965_v49 = vsel %vm1953_vm9, %v1947_v56, %v1964_v47  ;;  %v3721_v32 = vadd.s32 4294967169, %v2026_v51  ;;  %v1707_v31 = vsel %vm1705_vm15, %v5573_v29, %v6322_v38  ;;  %vm3716_vm13 = vcmp.lt.s32.totalorder %v3715_v16, 0 }
 0x1d2   : > { %v1958_v15 = vsel %vm1952_vm5, %v1955_v7, %v1957_v48  ;;  %v1966_v36 = vsel %vm1952_vm5, %v1963_v10, %v1965_v49  ;;  %v1887_v45 = vsel %vm3716_vm13, 0, %v3715_v16  ;;  %v1977_v63 = vadd.s32 1, %v5624_v57 }
 0x1d3   : > { %v5645_v37 = vmul.u32.u64.low %v5560_v12, %v1966_v36  ;;  %v5646_v60 = vmul.u32.u64.high %v5560_v12, %v1966_v36, %v5645_v37  ;;  %v2032_v56 = vadd.s32 1, %v3721_v32  ;;  %v1888_v51 = vsub.s32 32, %v1887_v45 }
 0x1d4   : > { %v1889_v53 = vshll.u32 %v5575_v28, %v1887_v45  ;;  %v1892_v18 = vsub.s32 4294967266, %v1887_v45  ;;  %v1903_v27 = vsel %vm1818_vm1, %v1902_v34, %v5555_v1  ;;  %v1974_v7 = vmul.u32 %v5560_v12, %v1958_v15  ;;  %v6454_v28 = vld [vmem:[#allocation45_spill] sm:$0xff] }
 0x1d5   : > { %v6453_v44 = vand.u32 2147483647, %v6449_v55  ;;  %vm2033_vm3 = vcmp.gt.s32.totalorder %v2032_v56, 0  ;;  %v1711_v48 = vsel %vm1704_vm7, %v1707_v31, %v1710_v20  ;;  %v1890_v25 = vshrl.u32 %v1872_v9, %v1888_v51 }
 0x1d6   : > { %v1893_v10 = vadd.s32 127, %v1892_v18  ;;  %v2034_v16 = vsel %vm2033_vm3, %v2032_v56, 0  ;;  %vm1808_vm15 = vcmp.eq.s32.totalorder %v5550_v13, 0  ;;  %vm1811_vm2 = vcmp.eq.s32.totalorder %v5550_v13, 2 }
 0x1d7   : > { %v2029_v19 = vand.u32 8388607, %v6453_v44  ;;  %vm1976_vm9 = vc.u32 %v5646_v60, %v5623_v24  ;;  %v2036_v1 = vand.u32 31, %v2034_v16  ;;  %v5664_v12 = vmul.f32 %v5254_v46, %v6454_v28 }
 0x1d8   : > { %v1891_v47 = vor.u32 %v1890_v25, %v1889_v53  ;;  %v1894_v34 = vshll.u32 %v1893_v10, 23  ;;  %v5668_v2 = vsel %vm5610_vm0, 0, %v1903_v27  ;;  %v1978_v9 = vsel %vm1976_vm9, %v1977_v63, %v5624_v57 }
 0x1d9   : > { %v5673_v20 = vsel %vm6324_vm14, nan, %v1711_v48  ;;  %v5676_v49 = vand.u32 3, %v5668_v2  ;;  %v1979_v32 = vadd.s32 %v1978_v9, %v1974_v7  ;;  %v2037_v31 = vsub.s32 32, %v2036_v1 }
 0x1da   : > { %v1895_v15 = vor.u32 4788187, %v1894_v34  ;;  %v1898_v46 = vcvt.s32.f32 %v1891_v47  ;;  %v2030_v36 = vor.u32 8388608, %v2029_v19  ;;  %v5680_v45 = vmul.f32 %v5385_v33, %v4862_v52  ;;  %v5682_v37 = vpop.eup %3966 }
 0x1db   : > { %v1980_v56 = vadd.s32 536870912, %v1979_v32  ;;  %v2039_v57 = vshll.u32 %v6394_v35, %v2036_v1  ;;  %v2042_v51 = vshll.u32 %v6401_v21, %v2036_v1  ;;  %v2045_v53 = vshll.u32 %v6395_v50, %v2036_v1  ;;  %v5687_v18 = vpop.eup %3968 }
 0x1dc   : > { %vm1807_vm7 = vcmp.lt.s32.totalorder %v5550_v13, 2  ;;  %v1896_v63 = vand.u32 2147483647, %v1895_v15  ;;  %v2040_v27 = vshrl.u32 %v6401_v21, %v2037_v31  ;;  %v2043_v7 = vshrl.u32 %v6395_v50, %v2037_v31 }
 0x1dd   : > { %v2048_v33 = vshll.u32 %v6396_v6, %v2036_v1  ;;  %v1812_v44 = vxor.u32 2147483648, %v5682_v37  ;;  %v1981_v19 = vshrl.u32 %v1980_v56, 30  ;;  %v2046_v48 = vshrl.u32 %v6396_v6, %v2037_v31 }
 0x1de   : > { %v2049_v25 = vshrl.u32 %v6397_v14, %v2037_v31  ;;  %v1809_v10 = vxor.u32 2147483648, %v5687_v18  ;;  %v1899_v47 = vmul.f32 %v1898_v46, %v1896_v63  ;;  %v2035_v34 = vshrl.u32 %v2034_v16, 5 }
 0x1df   : > { %v5699_v9 = vmul.f32 %v5398_v3, %v4869_v5  ;;  %vm1921_vm10 = vcmp.lt.s32.totalorder %v6439_v39, 0  ;;  %v1982_v50 = vshll.u32 %v1981_v19, 30  ;;  %v2038_v21 = vshrl.u32 %v6394_v35, %v2037_v31 }
 0x1e0   : > { %v2051_v15 = vshll.u32 %v6397_v14, %v2036_v1  ;;  %v5704_v56 = vshll.u32 %v2030_v36, 8  ;;  %vm6323_vm5 = vweird.f32 %v4629_v58  ;;  %v1900_v6 = vxor.u32 2147483648, %v1899_v47 }
 0x1e1   : > { %v2041_v22 = vor.u32 %v2040_v27, %v2039_v57  ;;  %v2044_v38 = vor.u32 %v2043_v7, %v2042_v51  ;;  %v2052_v16 = vshrl.u32 %v6391_v43, %v2037_v31  ;;  %v1813_v3 = vsel %vm1811_vm2, %v1812_v44, %v5687_v18 }
 0x1e2   : > { %v5713_v46 = vsub.s32 %v1979_v32, %v1982_v50  ;;  %v2047_v35 = vor.u32 %v2046_v48, %v2045_v53  ;;  %v2050_v63 = vor.u32 %v2049_v25, %v2048_v33  ;;  %v1810_v14 = vsel %vm1808_vm15, %v5682_v37, %v1809_v10 }
 0x1e3   : > { %v1901_v1 = vsel %vm1818_vm1, %v1900_v6, %v1899_v47  ;;  %v6455_v43 = vand.u32 2147483647, %v6439_v39  ;;  %v2005_v36 = vsub.s32 4, %v1981_v19  ;;  %vm2054_vm3 = vcmp.lt.s32.totalorder %v2035_v34, 1 }
 0x1e4   : > { %v1904_v32 = vsel %vm5610_vm0, %v6431_v26, %v1901_v1  ;;  %v1985_v57 = vsub.s32 0, %v5713_v46  ;;  %v2053_v51 = vor.u32 %v2052_v16, %v2051_v15  ;;  %vm2057_vm2 = vcmp.lt.s32.totalorder %v2035_v34, 4 }
 0x1e5   : > { %vm5724_vm13 = vcmp.le.f32.partialorder %v6455_v43, 0.7853982  ;;  %3970 = vcosq.f32 %v1904_v32  ;;  %vm2055_vm15 = vcmp.lt.s32.totalorder %v2035_v34, 2  ;;  %vm2056_vm9 = vcmp.lt.s32.totalorder %v2035_v34, 3 }
 0x1e6   : > { %v2059_v53 = vsel %vm2057_vm2, %v2047_v35, 2102212464  ;;  %3972 = vsinq.f32 %v1904_v32  ;;  %v3718_v27 = vmin.u32 %v1985_v57, %v5713_v46  ;;  %v2058_v7 = vsel %vm2054_vm3, %v2038_v21, %v2041_v22 }
 0x1e7   : > { %v2062_v33 = vsel %vm2054_vm3, %v2041_v22, %v2044_v38  ;;  %v2060_v48 = vsel %vm2056_vm9, %v2044_v38, %v2059_v53  ;;  %v2063_v25 = vsel %vm2057_vm2, %v2050_v63, 920167782  ;;  %v2066_v61 = vsel %vm2054_vm3, %v2044_v38, %v2047_v35 }
 0x1e8   : > { %v2228_v47 = vadd.s32 3, %v5061_v54  ;;  %v1814_v50 = vsel %vm1807_vm7, %v1810_v14, %v1813_v3  ;;  %v1987_v15 = vclz %v3718_v27  ;;  %v2064_v6 = vsel %vm2056_vm9, %v2047_v35, %v2063_v25 }
 0x1e9   : > { %v2067_v16 = vsel %vm2057_vm2, %v2053_v51, 1326507024  ;;  %v2006_v1 = vsel %vm1921_vm10, %v2005_v36, %v1981_v19  ;;  %v2061_v22 = vsel %vm2055_vm15, %v2058_v7, %v2060_v48  ;;  %v2065_v21 = vsel %vm2055_vm15, %v2062_v33, %v2064_v6  ;;  %v6459_v6 = vld [vmem:[#allocation57_spill] sm:$0xff] }
 0x1ea   : > { %v2068_v43 = vsel %vm2056_vm9, %v2050_v63, %v2067_v16  ;;  %vm1914_vm1 = vcmp.eq.s32.totalorder %v5676_v49, 2  ;;  %v3719_v54 = vadd.s32 4294967294, %v1987_v15  ;;  %vm1911_vm0 = vcmp.eq.s32.totalorder %v5676_v49, 0 }
 0x1eb   : > { %v2069_v13 = vsel %vm2055_vm15, %v2066_v61, %v2068_v43  ;;  %v5749_v38 = vmul.u32.u64.low %v5704_v56, %v2065_v21  ;;  %v5750_v3 = vmul.u32.u64.high %v5704_v56, %v2065_v21, %v5749_v38  ;;  %v5760_v14 = vmul.f32 %v5528_v41, %v4875_v17 }
 0x1ec   : > { %v5755_v19 = vmul.u32.u64.low %v5704_v56, %v2069_v13  ;;  %v5756_v35 = vmul.u32.u64.high %v5704_v56, %v2069_v13, %v5755_v19  ;;  %v5764_v63 = vmul.f32 %v5540_v30, %v4942_v40  ;;  %v1815_v34 = vsel %vm6323_vm5, nan, %v1814_v50  ;;  %v6458_v50 = vld [vmem:[#allocation55_spill] sm:$0xff] }
 0x1ed   : > { %v1975_v36 = vadd.s32 %v5623_v24, %v5646_v60  ;;  %vm3720_vm7 = vcmp.lt.s32.totalorder %v3719_v54, 0  ;;  %v5772_v32 = vsel %vm5724_vm13, 0, %v2006_v1  ;;  %vm1910_vm3 = vcmp.lt.s32.totalorder %v5676_v49, 2 }
 0x1ee   : > { %v1990_v57 = vsel %vm3720_vm7, 0, %v3719_v54  ;;  %v2077_v41 = vmul.u32 %v5704_v56, %v2061_v22  ;;  %v2229_v51 = vand.u32 3, %v2228_v47  ;;  %v2332_v30 = vadd.s32 3, %v5080_v8 }
 0x1ef   : > { %v1991_v53 = vsub.s32 32, %v1990_v57  ;;  %v1992_v27 = vshll.u32 %v5713_v46, %v1990_v57  ;;  %v1995_v7 = vsub.s32 4294967266, %v1990_v57  ;;  %v2080_v33 = vadd.s32 1, %v5750_v3  ;;  %v6460_v57 = vld [vmem:[#allocation50_spill] sm:$0xff] }
 0x1f0   : > { %v5780_v24 = vand.u32 3, %v5772_v32  ;;  %vm2079_vm2 = vc.u32 %v5756_v35, %v5749_v38  ;;  %v5786_v60 = vmul.f32 %v5673_v20, %v4993_v42  ;;  %v2436_v56 = vadd.s32 3, %v5162_v11 }
 0x1f1   : > { %vm1908_vm15 = vweird.f32 %v6431_v26  ;;  %v1993_v8 = vshrl.u32 %v1975_v36, %v1991_v53  ;;  %v1996_v48 = vadd.s32 127, %v1995_v7  ;;  %v2081_v46 = vsel %vm2079_vm2, %v2080_v33, %v5750_v3 }
 0x1f2   : > { %v5792_v25 = vmul.f32 %v1815_v34, %v5005_v4  ;;  %v2082_v61 = vadd.s32 %v2081_v46, %v2077_v41  ;;  %v2333_v47 = vand.u32 3, %v2332_v30  ;;  %v2540_v15 = vadd.s32 3, %v6458_v50  ;;  %v5796_v1 = vpop.eup %3970  ;;  %v6462_v30 = vld [vmem:[#allocation49_spill] sm:$0xff] }
 0x1f3   : > { %v2644_v16 = vadd.s32 3, %v6459_v6  ;;  %v1994_v20 = vor.u32 %v1993_v8, %v1992_v27  ;;  %v1997_v22 = vshll.u32 %v1996_v48, 23  ;;  %vm2230_vm9 = vcmp.lt.s32.totalorder %v2229_v51, 2  ;;  %v5798_v11 = vpop.eup %3972  ;;  %v6467_v6 = vld [vmem:[#allocation52_spill] sm:$0xff]  ;;  %v6505_v46 = vld [vmem:[#allocation17_spill] sm:$0xff] }
 0x1f4   : > { %vm2231_vm7 = vcmp.eq.s32.totalorder %v2229_v51, 0  ;;  %v6326_v21 = vxor.u32 2147483648, %v5796_v1  ;;  %vm2024_vm2 = vcmp.lt.s32.totalorder %v6449_v55, 0  ;;  %v2083_v43 = vadd.s32 536870912, %v2082_v61 }
 0x1f5   : > { %vm2234_vm5 = vcmp.eq.s32.totalorder %v2229_v51, 2  ;;  %v2437_v54 = vand.u32 3, %v2436_v56  ;;  %v6327_v13 = vxor.u32 2147483648, %v5798_v11  ;;  %v1998_v3 = vor.u32 4788187, %v1997_v22  ;;  %v6469_v22 = vld [vmem:[#allocation51_spill] sm:$0xff] }
 0x1f6   : > { %v2001_v19 = vcvt.s32.f32 %v1994_v20  ;;  %vm2335_vm14 = vcmp.eq.s32.totalorder %v2333_v47, 0  ;;  %v1916_v34 = vsel %vm1914_vm1, %v6326_v21, %v5798_v11  ;;  %v2084_v36 = vshrl.u32 %v2083_v43, 30 }
 0x1f7   : > { %v6461_v41 = vxor.u32 2147483648, %v6460_v57  ;;  %vm2338_vm12 = vcmp.eq.s32.totalorder %v2333_v47, 2  ;;  %v1913_v27 = vsel %vm1911_vm0, %v5796_v1, %v6327_v13  ;;  %v1999_v7 = vand.u32 2147483647, %v1998_v3 }
 0x1f8   : > { %v6463_v33 = vxor.u32 2147483648, %v6462_v30  ;;  %v2541_v8 = vand.u32 3, %v2540_v15  ;;  %v6464_v48 = vand.u32 2147483647, %v6449_v55  ;;  %v2085_v50 = vshll.u32 %v2084_v36, 30 }
 0x1f9   : > { %v2233_v53 = vsel %vm2231_vm7, %v6462_v30, %v6461_v41  ;;  %vm2334_vm7 = vcmp.lt.s32.totalorder %v2333_v47, 2  ;;  %v6468_v20 = vxor.u32 2147483648, %v6467_v6  ;;  %v6470_v3 = vxor.u32 2147483648, %v6469_v22 }
 0x1fa   : > { %v2236_v56 = vsel %vm2234_vm5, %v6463_v33, %v6460_v57  ;;  %vm5821_vm1 = vcmp.le.f32.partialorder %v6464_v48, 0.7853982  ;;  %v1917_v57 = vsel %vm1910_vm3, %v1913_v27, %v1916_v34  ;;  %v2002_v15 = vmul.f32 %v2001_v19, %v1999_v7  ;;  %v6471_v19 = vld [vmem:[#allocation54_spill] sm:$0xff]  ;;  %v6473_v27 = vld [vmem:[#allocation53_spill] sm:$0xff] }
 0x1fb   : > { %v2337_v43 = vsel %vm2335_vm14, %v6469_v22, %v6468_v20  ;;  %v2340_v41 = vsel %vm2338_vm12, %v6470_v3, %v6467_v6  ;;  %v2108_v30 = vsub.s32 4, %v2084_v36  ;;  %vm2439_vm5 = vcmp.eq.s32.totalorder %v2437_v54, 0  ;;  %v6477_v22 = vld [vmem:[#allocation42_spill] sm:$0xff] }
 0x1fc   : > { %v2078_v33 = vadd.s32 %v5749_v38, %v5756_v35  ;;  %v5835_v48 = vsub.s32 %v2082_v61, %v2085_v50  ;;  %v2237_v47 = vsel %vm2230_vm9, %v2233_v53, %v2236_v56  ;;  %vm2442_vm0 = vcmp.eq.s32.totalorder %v2437_v54, 2  ;;  %v6475_v56 = vld [vmem:[#allocation56_spill] sm:$0xff] }
 0x1fd   : > { %v2003_v21 = vxor.u32 2147483648, %v2002_v15  ;;  %v2341_v20 = vsel %vm2334_vm7, %v2337_v43, %v2340_v41  ;;  %vm2438_vm14 = vcmp.lt.s32.totalorder %v2437_v54, 2  ;;  %v2645_v13 = vand.u32 3, %v2644_v16 }
 0x1fe   : > { %v1918_v6 = vsel %vm1908_vm15, nan, %v1917_v57  ;;  %v2088_v49 = vsub.s32 0, %v5835_v48  ;;  %v6472_v34 = vxor.u32 2147483648, %v6471_v19  ;;  %vm2543_vm12 = vcmp.eq.s32.totalorder %v2541_v8, 0 }
 0x1ff   : > { %v2004_v38 = vsel %vm1921_vm10, %v2003_v21, %v2002_v15  ;;  %v2109_v35 = vsel %vm2024_vm2, %v2108_v30, %v2084_v36  ;;  %v6474_v51 = vxor.u32 2147483648, %v6473_v27  ;;  %vm2546_vm3 = vcmp.eq.s32.totalorder %v2541_v8, 2 }
 0x200   : > { %v2441_v7 = vsel %vm2439_vm5, %v6473_v27, %v6472_v34  ;;  %v2007_v16 = vsel %vm5724_vm13, %v6439_v39, %v2004_v38  ;;  %v3722_v53 = vmin.u32 %v2088_v49, %v5835_v48  ;;  %vm2542_vm9 = vcmp.lt.s32.totalorder %v2541_v8, 2  ;;  %v6481_v8 = vld [vmem:[#allocation46_spill] sm:$0xff] }
 0x201   : > { %v2444_v61 = vsel %vm2442_vm0, %v6474_v51, %v6471_v19  ;;  %v6476_v50 = vxor.u32 2147483648, %v6475_v56  ;;  %3974 = vcosq.f32 %v2007_v16  ;;  %v5860_v36 = vsel %vm1187_vm6, nan, %v2237_v47 }
 0x202   : > { %v5864_v41 = vsel %vm1290_vm4, nan, %v2341_v20  ;;  %v6480_v31 = vxor.u32 2147483648, %v6477_v22  ;;  %3976 = vsinq.f32 %v2007_v16  ;;  %v2090_v15 = vclz %v3722_v53  ;;  %v6486_v53 = vld [vmem:[#allocation43_spill] sm:$0xff] }
 0x203   : > { %v2545_v43 = vsel %vm2543_vm12, %v6477_v22, %v6476_v50  ;;  %v5870_v30 = vmul.f32 %v1918_v6, %v6481_v8  ;;  %v2445_v49 = vsel %vm2438_vm14, %v2441_v7, %v2444_v61  ;;  %v2111_v19 = vsel %vm5821_vm1, 0, %v2109_v35  ;;  %v6484_v35 = vld [vmem:[#allocation58_spill] sm:$0xff] }
 0x204   : > { %v2548_v57 = vsel %vm2546_vm3, %v6480_v31, %v6475_v56  ;;  %vm2647_vm6 = vcmp.eq.s32.totalorder %v2645_v13, 0  ;;  %v2748_v34 = vadd.s32 3, %v5536_v59  ;;  %v3723_v20 = vadd.s32 4294967294, %v2090_v15 }
 0x205   : > { %v2549_v47 = vsel %vm2542_vm9, %v2545_v43, %v2548_v57  ;;  %v5876_v27 = vand.u32 3, %v2111_v19  ;;  %v2852_v38 = vadd.s32 3, %v5547_v0  ;;  %v2956_v51 = vadd.s32 3, %v5668_v2 }
 0x206   : > { %v5882_v6 = vsel %vm1393_vm8, nan, %v2445_v49  ;;  %vm2646_vm4 = vcmp.lt.s32.totalorder %v2645_v13, 2  ;;  %vm2650_vm10 = vcmp.eq.s32.totalorder %v2645_v13, 2  ;;  %v2749_v54 = vand.u32 3, %v2748_v34 }
 0x207   : > { %vm2017_vm13 = vcmp.eq.s32.totalorder %v5780_v24, 2  ;;  %vm3724_vm7 = vcmp.lt.s32.totalorder %v3723_v20, 0  ;;  %v5887_v59 = vsel %vm1496_vm11, nan, %v2549_v47  ;;  %v6485_v61 = vxor.u32 2147483648, %v6484_v35 }
 0x208   : > { %v2853_v56 = vand.u32 3, %v2852_v38  ;;  %vm2014_vm5 = vcmp.eq.s32.totalorder %v5780_v24, 0  ;;  %v2093_v2 = vsel %vm3724_vm7, 0, %v3723_v20  ;;  %vm2751_vm8 = vcmp.eq.s32.totalorder %v2749_v54, 0 }
 0x209   : > { %v2649_v0 = vsel %vm2647_vm6, %v6486_v53, %v6485_v61  ;;  %vm2754_vm0 = vcmp.eq.s32.totalorder %v2749_v54, 2  ;;  %v2957_v50 = vand.u32 3, %v2956_v51  ;;  %vm2013_vm14 = vcmp.lt.s32.totalorder %v5780_v24, 2  ;;  %v6496_v24 = vld [vmem:[#allocation47_spill] sm:$0xff] }
 0x20a   : > { %v2094_v22 = vsub.s32 32, %v2093_v2  ;;  %v2095_v43 = vshll.u32 %v5835_v48, %v2093_v2  ;;  %v2098_v21 = vsub.s32 4294967266, %v2093_v2  ;;  %v6487_v3 = vxor.u32 2147483648, %v6486_v53 }
 0x20b   : > { %vm2011_vm11 = vweird.f32 %v6439_v39  ;;  %vm2750_vm12 = vcmp.lt.s32.totalorder %v2749_v54, 2  ;;  %vm2855_vm3 = vcmp.eq.s32.totalorder %v2853_v56, 0  ;;  %vm2858_vm9 = vcmp.eq.s32.totalorder %v2853_v56, 2 }
 0x20c   : > { %v2652_v31 = vsel %vm2650_vm10, %v6487_v3, %v6484_v35  ;;  %v3060_v57 = vadd.s32 3, %v5772_v32  ;;  %v2096_v15 = vshrl.u32 %v2078_v33, %v2094_v22  ;;  %v2099_v49 = vadd.s32 127, %v2098_v21 }
 0x20d   : > { %v6488_v47 = vxor.u32 2147483648, %v5580_v62  ;;  %v6489_v48 = vxor.u32 2147483648, %v5573_v29  ;;  %v2653_v38 = vsel %vm2646_vm4, %v2649_v0, %v2652_v31  ;;  %vm2854_vm6 = vcmp.lt.s32.totalorder %v2853_v56, 2 }
 0x20e   : > { %vm2959_vm10 = vcmp.eq.s32.totalorder %v2957_v50, 0  ;;  %v3164_v51 = vadd.s32 3, %v2111_v19  ;;  %v2097_v16 = vor.u32 %v2096_v15, %v2095_v43  ;;  %v2100_v7 = vshll.u32 %v2099_v49, 23 }
 0x20f   : > { %v2753_v34 = vsel %vm2751_vm8, %v5573_v29, %v6488_v47  ;;  %v2756_v20 = vsel %vm2754_vm0, %v6489_v48, %v5580_v62  ;;  %v2857_v32 = vsel %vm2855_vm3, %v5682_v37, %v1809_v10  ;;  %v2860_v33 = vsel %vm2858_vm9, %v1812_v44, %v5687_v18  ;;  %v3975_v29 = vpop.eup %3974  ;;  %v6492_v37 = vld [vmem:[#allocation41_spill] sm:$0xff] }
 0x210   : > { %v2757_v35 = vsel %vm2750_vm12, %v2753_v34, %v2756_v20  ;;  %vm2958_vm7 = vcmp.lt.s32.totalorder %v2957_v50, 2  ;;  %vm2962_vm8 = vcmp.eq.s32.totalorder %v2957_v50, 2  ;;  %v3061_v62 = vand.u32 3, %v3060_v57  ;;  %v3977_v2 = vpop.eup %3976  ;;  %v3185_v50 = vld [vmem:[%s4340_s6] sm:$0x1f] }
 0x211   : > { %v2101_v13 = vor.u32 4788187, %v2100_v7  ;;  %v2104_v61 = vcvt.s32.f32 %v2097_v16  ;;  %v6490_v19 = vxor.u32 2147483648, %v5798_v11  ;;  %v6491_v0 = vxor.u32 2147483648, %v5796_v1 }
 0x212   : > { %v2018_v22 = vxor.u32 2147483648, %v3975_v29  ;;  %vm6493_vm4 = vweird.f32 %v6492_v37  ;;  %v2861_v44 = vsel %vm2854_vm6, %v2857_v32, %v2860_v33  ;;  %vm3063_vm0 = vcmp.eq.s32.totalorder %v3061_v62, 0  ;;  %v6498_v32 = vld [vmem:[#allocation24_spill] sm:$0xff] }
 0x213   : > { %v2961_v53 = vsel %vm2959_vm10, %v5796_v1, %v6490_v19  ;;  %v2964_v10 = vsel %vm2962_vm8, %v6491_v0, %v5798_v11  ;;  %v2654_v18 = vsel %vm6493_vm4, nan, %v2653_v38  ;;  %v2015_v54 = vxor.u32 2147483648, %v3977_v2 }
 0x214   : > { %v2102_v43 = vand.u32 2147483647, %v2101_v13  ;;  %vm3062_vm12 = vcmp.lt.s32.totalorder %v3061_v62, 2  ;;  %vm3066_vm3 = vcmp.eq.s32.totalorder %v3061_v62, 2  ;;  %v2019_v21 = vsel %vm2017_vm13, %v2018_v22, %v3977_v2  ;;  %v6502_v13 = vld [vmem:[#allocation26_spill] sm:$0xff] }
 0x215   : > { %vm6494_vm9 = vweird.f32 %v4627_v23  ;;  %v2965_v11 = vsel %vm2958_vm7, %v2961_v53, %v2964_v10  ;;  %v3068_v3 = vsel %vm3066_vm3, %v2018_v22, %v3977_v2  ;;  %v2016_v31 = vsel %vm2014_vm5, %v3975_v29, %v2015_v54  ;;  %v6504_v53 = vld [vmem:[#allocation28_spill] sm:$0xff]  ;;  %v6506_v22 = vld [vmem:[#allocation29_spill] sm:$0xff] }
 0x216   : > { %v2758_v1 = vsel %vm6494_vm9, nan, %v2757_v35  ;;  %v2105_v56 = vmul.f32 %v2104_v61, %v2102_v43  ;;  %vm6495_vm6 = vweird.f32 %v4629_v58  ;;  %v3065_v15 = vsel %vm3063_vm0, %v3975_v29, %v2015_v54  ;;  %v6500_v35 = vld [vmem:[#allocation22_spill] sm:$0xff]  ;;  %v6501_v29 = vld [vmem:[#allocation25_spill] sm:$0xff]  ;;  %v6508_v54 = vld [vmem:[#allocation31_spill] sm:$0xff] }
 0x217   : > { %v2862_v57 = vsel %vm6495_vm6, nan, %v2861_v44  ;;  %v2020_v49 = vsel %vm2013_vm14, %v2016_v31, %v2019_v21  ;;  %v3069_v47 = vsel %vm3062_vm12, %v3065_v15, %v3068_v3  ;;  %v5935_v34 = vand.u32 3, %v3164_v51  ;;  %v6510_v3 = vld [vmem:[#allocation33_spill] sm:$0xff] }
 0x218   : > { %v5939_v23 = vmul.f32 %v5860_v36, %v6454_v28  ;;  %v2021_v48 = vsel %vm2011_vm11, nan, %v2020_v49  ;;  %v2106_v20 = vxor.u32 2147483648, %v2105_v56  ;;  %v2966_v58 = vsel %vm1908_vm15, nan, %v2965_v11 }
 0x219   : > { %v5948_v38 = vmul.f32 %v5864_v41, %v4862_v52  ;;  %v5951_v16 = vmul.f32 %v2021_v48, %v6496_v24  ;;  %v3070_v51 = vsel %vm2011_vm11, nan, %v3069_v47  ;;  %v5957_v28 = vmul.f32 %v5882_v6, %v4869_v5  ;;  %v6497_v5 = vld [vmem:[#allocation23_spill] sm:$0xff]  ;;  %v6513_v47 = vld [vmem:[#allocation20_spill] sm:$0xff] }
 0x21a   : > { %v5961_v36 = vmul.f32 %v5887_v59, %v4875_v17  ;;  %v2107_v26 = vsel %vm2024_vm2, %v2106_v20, %v2105_v56  ;;  %v5966_v52 = vmul.f32 %v2654_v18, %v4942_v40  ;;  %v5969_v41 = vmul.f32 %v2758_v1, %v4993_v42  ;;  %v6499_v17 = vld [vmem:[#allocation21_spill] sm:$0xff]  ;;  %v6503_v42 = vld [vmem:[#allocation27_spill] sm:$0xff]  ;;  %v6507_v18 = vld [vmem:[#allocation30_spill] sm:$0xff] }
 0x21b   : > { %v3765_v7 = vadd.f32 -0.1, %v3185_v50  ;;  %v2110_v39 = vsel %vm5821_vm1, %v6449_v55, %v2107_v26  ;;  %v3188_v6 = vmul.f32 0.2, %v6497_v5  ;;  %v3189_v33 = vmul.f32 0.2, %v6498_v32 }
 0x21c   : > { %v3190_v59 = vmul.f32 0.2, %v6499_v17  ;;  %3978 = vcosq.f32 %v2110_v39  ;;  %v3191_v62 = vmul.f32 0.2, %v6500_v35  ;;  %v3192_v40 = vmul.f32 0.2, %v6501_v29 }
 0x21d   : > { %v3193_v61 = vmul.f32 0.2, %v6502_v13  ;;  %3980 = vsinq.f32 %v2110_v39  ;;  %v3194_v19 = vmul.f32 0.2, %v6503_v42  ;;  %v3195_v0 = vmul.f32 0.2, %v6504_v53 }
 0x21e   : > { %v3196_v10 = vmul.f32 0.2, %v6505_v46  ;;  %v5984_v2 = vmul.f32 %v2862_v57, %v5005_v4  ;;  %v3197_v37 = vmul.f32 0.2, %v6506_v22  ;;  %v3198_v44 = vmul.f32 0.2, %v6507_v18 }
 0x21f   : > { %v3199_v43 = vmul.f32 0.2, %v6508_v54  ;;  %v5990_v21 = vmul.f32 %v2966_v58, %v6481_v8  ;;  %v6509_v1 = vld [vmem:[#allocation32_spill] sm:$0xff]  ;;  %v3201_v31 = vmul.f32 0.2, %v6510_v3  ;;  %v6511_v56 = vld [vmem:[#allocation34_spill] sm:$0xff]  ;;  %v5996_v49 = vmul.f32 %v3070_v51, %v6496_v24 }
 0x220   : > { %v3200_v11 = vmul.f32 0.2, %v6509_v1  ;;  %v3202_v15 = vmul.f32 0.2, %v6511_v56  ;;  %v6512_v4 = vld [vmem:[#allocation18_spill] sm:$0xff]  ;;  %v6514_v48 = vld [vmem:[#allocation35_spill] sm:$0xff]  ;;  %vm2114_vm11 = vweird.f32 %v6449_v55 }
 0x221   : > { %v3203_v57 = vmul.f32 0.2, %v6512_v4  ;;  %v3204_v50 = vmul.f32 0.2, %v6513_v47  ;;  %v3205_v20 = vmul.f32 0.2, %v6514_v48 }
 0x222   : > { %vm2120_vm15 = vcmp.eq.s32.totalorder %v5876_v27, 2  ;;  %vm3170_vm2 = vcmp.eq.s32.totalorder %v5935_v34, 2  ;;  %v6515_v8 = vld [vmem:[#allocation36_spill] sm:$0xff]  ;;  %v6516_v26 = vld [vmem:[#allocation37_spill] sm:$0xff]  ;;  %vm2117_vm1 = vcmp.eq.s32.totalorder %v5876_v27, 0  ;;  %vm3167_vm13 = vcmp.eq.s32.totalorder %v5935_v34, 0 }
 0x223   : > { %v3206_v58 = vmul.f32 0.2, %v6515_v8  ;;  %v3207_v39 = vmul.f32 0.2, %v6516_v26  ;;  %v6517_v5 = vld [vmem:[#allocation16_spill] sm:$0xff]  ;;  %vm2116_vm5 = vcmp.lt.s32.totalorder %v5876_v27, 2 }
 0x224   : > { %v3211_v32 = vsub.s32 0, %v6517_v5  ;;  %v3215_v17 = vsub.s32 1, %v6517_v5  ;;  %v3219_v24 = vsub.s32 2, %v6517_v5  ;;  %v3223_v51 = vsub.s32 3, %v6517_v5  ;;  %v6529_v27 = vld [vmem:[#allocation48_spill] sm:$0xff] }
 0x225   : > { %v6328_v35 = vsub.s32 4, %v6517_v5  ;;  %v6013_v29 = vmul.f32 0.05, %v5664_v12  ;;  %vm3166_vm14 = vcmp.lt.s32.totalorder %v5935_v34, 2  ;;  %v6018_v53 = vmul.f32 0.05, %v5680_v45 }
 0x226   : > { %v3212_v13 = vrot.slane %v3765_v7, %v3211_v32  ;;  %v3216_v42 = vrot.slane %v3765_v7, %v3215_v17  ;;  %v6021_v46 = vmul.f32 0.05, %v5699_v9  ;;  %v3220_v22 = vrot.slane %v3765_v7, %v3219_v24 }
 0x227   : > { %v3224_v12 = vrot.slane %v3765_v7, %v3223_v51  ;;  %v3228_v18 = vrot.slane %v3765_v7, %v6328_v35  ;;  %v6031_v54 = vmul.f32 0.05, %v5760_v14  ;;  %v3186_v14 = vld [vmem:[%s248_s18] sm:$0x1f] }
 0x228   : > { %v6033_v1 = vadd.f32 %v3212_v13, %v3188_v6  ;;  %v6035_v45 = vadd.f32 %v3216_v42, %v3189_v33  ;;  %v6037_v9 = vadd.f32 %v3212_v13, %v3193_v61  ;;  %v6039_v3 = vadd.f32 %v3216_v42, %v3194_v19 }
 0x229   : > { %v6041_v56 = vadd.f32 %v3220_v22, %v3190_v59  ;;  %v6043_v4 = vadd.f32 %v3224_v12, %v3191_v62  ;;  %v6045_v47 = vadd.f32 %v3228_v18, %v3192_v40  ;;  %v6047_v48 = vadd.f32 %v3220_v22, %v3195_v0  ;;  %v3979_v0 = vpop.eup %3978 }
 0x22a   : > { %v6051_v7 = vadd.f32 %v3224_v12, %v3196_v10  ;;  %v6053_v6 = vadd.f32 %v3228_v18, %v3197_v37  ;;  %v6055_v33 = vadd.f32 %v3212_v13, %v3198_v44  ;;  %v6057_v61 = vadd.f32 %v3216_v42, %v3199_v43  ;;  %v3981_v44 = vpop.eup %3980 }
 0x22b   : > { %v6059_v19 = vadd.f32 %v3220_v22, %v3200_v11  ;;  %v6061_v59 = vadd.f32 %v3224_v12, %v3201_v31  ;;  %v6063_v62 = vadd.f32 %v3228_v18, %v3202_v15  ;;  %v6065_v40 = vadd.f32 %v3212_v13, %v3203_v57 }
 0x22c   : > { %6518 = vst [vmem:[#allocation44_spill] sm:$0xff] %v6053_v6  ;;  %6519 = vst [vmem:[#allocation45_spill] sm:$0xff] %v6055_v33  ;;  %v6067_v8 = vadd.f32 %v3216_v42, %v3204_v50  ;;  %v6069_v26 = vadd.f32 %v3220_v22, %v3205_v20  ;;  %v6071_v10 = vadd.f32 %v3224_v12, %v3206_v58  ;;  %v2121_v43 = vxor.u32 2147483648, %v3979_v0 }
 0x22d   : > { %6520 = vst [vmem:[#allocation55_spill] sm:$0xff] %v6057_v61  ;;  %6521 = vst [vmem:[#allocation57_spill] sm:$0xff] %v6059_v19  ;;  %v6073_v37 = vadd.f32 %v3228_v18, %v3207_v39  ;;  %v3258_v11 = vmul.f32 0.05, %v5764_v63  ;;  %v3259_v31 = vmul.f32 0.05, %v5786_v60  ;;  %v3278_v35 = vrot.slane %v3186_v14, %v3211_v32 }
 0x22e   : > { %6522 = vst [vmem:[#allocation50_spill] sm:$0xff] %v6061_v59  ;;  %6523 = vst [vmem:[#allocation49_spill] sm:$0xff] %v6063_v62  ;;  %v2118_v15 = vxor.u32 2147483648, %v3981_v44  ;;  %v3260_v57 = vmul.f32 0.05, %v5792_v25  ;;  %v3282_v50 = vrot.slane %v3186_v14, %v3215_v17  ;;  %v2122_v20 = vsel %vm2120_vm15, %v2121_v43, %v3981_v44  ;;  %v3336_v62 = vld [vmem:[%s4330_s17 + $0x80] sm:$0xff] }
 0x22f   : > { %6524 = vst [vmem:[#allocation52_spill] sm:$0xff] %v6065_v40  ;;  %6525 = vst [vmem:[#allocation51_spill] sm:$0xff] %v6067_v8  ;;  %v3261_v13 = vmul.f32 0.05, %v5870_v30  ;;  %v3172_v58 = vsel %vm3170_vm2, %v2121_v43, %v3981_v44  ;;  %v3262_v39 = vmul.f32 0.05, %v5951_v16  ;;  %v3286_v55 = vrot.slane %v3186_v14, %v3219_v24 }
 0x230   : > { %6526 = vst [vmem:[#allocation54_spill] sm:$0xff] %v6069_v26  ;;  %6527 = vst [vmem:[#allocation53_spill] sm:$0xff] %v6071_v10  ;;  %v3264_v42 = vmul.f32 0.05, %v5939_v23  ;;  %v2119_v63 = vsel %vm2117_vm1, %v3979_v0, %v2118_v15  ;;  %v3169_v60 = vsel %vm3167_vm13, %v3979_v0, %v2118_v15  ;;  %v3265_v25 = vmul.f32 0.05, %v5948_v38 }
 0x231   : > { %6528 = vst [vmem:[#allocation56_spill] sm:$0xff] %v6073_v37  ;;  %v3266_v30 = vmul.f32 0.05, %v5957_v28  ;;  %v2123_v32 = vsel %vm2116_vm5, %v2119_v63, %v2122_v20  ;;  %v3173_v17 = vsel %vm3166_vm14, %v3169_v60, %v3172_v58  ;;  %v3267_v16 = vmul.f32 0.05, %v5961_v36  ;;  %v3320_v20 = vld [vmem:[%s4330_s17] sm:$0xff] }
 0x232   : > { %v3268_v23 = vmul.f32 0.05, %v5966_v52  ;;  %v2124_v22 = vsel %vm2114_vm11, nan, %v2123_v32  ;;  %v3174_v12 = vsel %vm2114_vm11, nan, %v3173_v17  ;;  %v3269_v38 = vmul.f32 0.05, %v5969_v41 }
 0x233   : > { %v3270_v28 = vmul.f32 0.05, %v5984_v2  ;;  %v2134_v18 = vmul.f32 %v2124_v22, %v6529_v27  ;;  %v3184_v34 = vmul.f32 %v3174_v12, %v6529_v27  ;;  %v3271_v36 = vmul.f32 0.05, %v5990_v21  ;;  %v3325_v22 = vld [vmem:[%s4330_s17 + $0x28] sm:$0xff]  ;;  %v3327_v27 = vld [vmem:[%s4330_s17 + $0x38] sm:$0xff] }
 0x234   : > { %v3272_v52 = vmul.f32 0.05, %v5996_v49  ;;  %v3290_v0 = vrot.slane %v3186_v14, %v3223_v51  ;;  %v6530_v41 = vsub.s32 4, %v6517_v5  ;;  %v3300_v44 = vadd.f32 %v3278_v35, %v6013_v29  ;;  %v3321_v5 = vld [vmem:[%s4330_s17 + $0x8] sm:$0xff]  ;;  %v3322_v29 = vld [vmem:[%s4330_s17 + $0x10] sm:$0xff]  ;;  %v3331_v37 = vld [vmem:[%s4330_s17 + $0x58] sm:$0xff] }
 0x235   : > { %v3263_v43 = vmul.f32 0.05, %v2134_v18  ;;  %v3273_v15 = vmul.f32 0.05, %v3184_v34  ;;  %v3301_v21 = vadd.f32 %v3282_v50, %v6018_v53  ;;  %v3305_v49 = vadd.f32 %v3278_v35, %v3259_v31  ;;  %v3324_v31 = vld [vmem:[%s4330_s17 + $0x20] sm:$0xff]  ;;  %v3333_v26 = vld [vmem:[%s4330_s17 + $0x68] sm:$0xff] }
 0x236   : > { %v3294_v2 = vrot.slane %v3186_v14, %v6530_v41  ;;  %v3302_v58 = vadd.f32 %v3286_v55, %v6021_v46  ;;  %v3303_v24 = vadd.f32 %v3290_v0, %v6031_v54  ;;  %v3306_v51 = vadd.f32 %v3282_v50, %v3260_v57  ;;  %v3323_v14 = vld [vmem:[%s4330_s17 + $0x18] sm:$0xff]  ;;  %v3326_v46 = vld [vmem:[%s4330_s17 + $0x30] sm:$0xff]  ;;  %v3328_v18 = vld [vmem:[%s4330_s17 + $0x40] sm:$0xff] }
 0x237   : > { %v3307_v60 = vadd.f32 %v3286_v55, %v3261_v13  ;;  %v3308_v32 = vadd.f32 %v3290_v0, %v3262_v39  ;;  %v3310_v53 = vadd.f32 %v3278_v35, %v3264_v42  ;;  %v3311_v54 = vadd.f32 %v3282_v50, %v3265_v25  ;;  %v3329_v13 = vld [vmem:[%s4330_s17 + $0x48] sm:$0xff]  ;;  %v3332_v10 = vld [vmem:[%s4330_s17 + $0x60] sm:$0xff]  ;;  %v3335_v8 = vld [vmem:[%s4330_s17 + $0x78] sm:$0xff] }
 0x238   : > { %v3304_v63 = vadd.f32 %v3294_v2, %v3258_v11  ;;  %v3309_v17 = vadd.f32 %v3294_v2, %v3263_v43  ;;  %v3312_v11 = vadd.f32 %v3286_v55, %v3266_v30  ;;  %v3313_v57 = vadd.f32 %v3290_v0, %v3267_v16  ;;  %v3330_v43 = vld [vmem:[%s4330_s17 + $0x50] sm:$0xff]  ;;  %v3337_v59 = vld [vmem:[%s4330_s17 + $0x88] sm:$0xff] }
 0x239   : > { %v3314_v12 = vadd.f32 %v3294_v2, %v3268_v23  ;;  %v3315_v39 = vadd.f32 %v3278_v35, %v3269_v38  ;;  %v3316_v42 = vadd.f32 %v3282_v50, %v3270_v28  ;;  %v3317_v34 = vadd.f32 %v3286_v55, %v3271_v36  ;;  %v3334_v30 = vld [vmem:[%s4330_s17 + $0x70] sm:$0xff]  ;;  %v3339_v28 = vld [vmem:[%s4330_s17 + $0x98] sm:$0xff] }
 0x23a   : > { %v3318_v41 = vadd.f32 %v3290_v0, %v3272_v52  ;;  %v3319_v25 = vadd.f32 %v3294_v2, %v3273_v15  ;;  %v3340_v16 = vmul.f32 %v3320_v20, %v3300_v44  ;;  %v3341_v23 = vmul.f32 %v3321_v5, %v3301_v21  ;;  %v3338_v19 = vld [vmem:[%s4330_s17 + $0x90] sm:$0xff] }
 0x23b   : > { %v3342_v40 = vmul.f32 %v3322_v29, %v3302_v58  ;;  %v3343_v61 = vmul.f32 %v3323_v14, %v3303_v24  ;;  %v3344_v35 = vmul.f32 %v3324_v31, %v3304_v63  ;;  %v3345_v38 = vmul.f32 %v3325_v22, %v3305_v49  ;;  %v6539_v14 = vld [vmem:[#allocation54_spill] sm:$0xff] }
 0x23c   : > { %v3346_v50 = vmul.f32 %v3326_v46, %v3306_v51  ;;  %v3347_v36 = vmul.f32 %v3327_v27, %v3307_v60  ;;  %v3348_v52 = vmul.f32 %v3328_v18, %v3308_v32  ;;  %v3349_v55 = vmul.f32 %v3329_v13, %v3309_v17  ;;  %v6540_v32 = vld [vmem:[#allocation53_spill] sm:$0xff] }
 0x23d   : > { %v3350_v0 = vmul.f32 %v3330_v43, %v3310_v53  ;;  %v3351_v33 = vmul.f32 %v3331_v37, %v3311_v54  ;;  %v3352_v2 = vmul.f32 %v3332_v10, %v3312_v11  ;;  %v3353_v15 = vmul.f32 %v3333_v26, %v3313_v57  ;;  %v6538_v10 = vld [vmem:[#allocation51_spill] sm:$0xff]  ;;  %v6541_v53 = vld [vmem:[#allocation56_spill] sm:$0xff] }
 0x23e   : > { %v3354_v6 = vmul.f32 %v3334_v30, %v3314_v12  ;;  %v3355_v44 = vmul.f32 %v3335_v8, %v3315_v39  ;;  %v3356_v21 = vmul.f32 %v3336_v62, %v3316_v42  ;;  %v3357_v20 = vmul.f32 %v3337_v59, %v3317_v34  ;;  %v6535_v62 = vld [vmem:[#allocation50_spill] sm:$0xff] }
 0x23f   : > { %v3358_v58 = vmul.f32 %v3338_v19, %v3318_v41  ;;  %v3359_v5 = vmul.f32 %v3339_v28, %v3319_v25  ;;  %v3360_v24 = vadd.f32 %v3340_v16, %v6033_v1  ;;  %v3361_v49 = vadd.f32 %v3341_v23, %v6035_v45  ;;  %v6534_v19 = vld [vmem:[#allocation57_spill] sm:$0xff] }
 0x240   : > { %v3362_v63 = vadd.f32 %v3342_v40, %v6041_v56  ;;  %v3363_v51 = vadd.f32 %v3343_v61, %v6043_v4  ;;  %v3364_v29 = vadd.f32 %v3344_v35, %v6045_v47  ;;  %v3365_v37 = vadd.f32 %v3345_v38, %v6037_v9  ;;  %v6531_v9 = vld [vmem:[#allocation44_spill] sm:$0xff]  ;;  %v6533_v47 = vld [vmem:[#allocation55_spill] sm:$0xff] }
 0x241   : > { %v3366_v26 = vadd.f32 %v3346_v50, %v6039_v3  ;;  %v3367_v1 = vadd.f32 %v3347_v36, %v6047_v48  ;;  %v3368_v45 = vadd.f32 %v3348_v52, %v6051_v7  ;;  %v3369_v56 = vadd.f32 %v3349_v55, %v6531_v9  ;;  %v6532_v3 = vld [vmem:[#allocation45_spill] sm:$0xff]  ;;  %3380 = vst [vmem:[%s6146_s24] sm:$0xff] %v3360_v24  ;;  %v6537_v7 = vld [vmem:[#allocation52_spill] sm:$0xff] }
 0x242   : > { %v3370_v4 = vadd.f32 %v3350_v0, %v6532_v3  ;;  %3381 = vst [vmem:[%s6146_s24 + $0x8] sm:$0xff] %v3361_v49  ;;  %3382 = vst [vmem:[%s6146_s24 + $0x10] sm:$0xff] %v3362_v63  ;;  %v3371_v61 = vadd.f32 %v3351_v33, %v6533_v47  ;;  %v3372_v59 = vadd.f32 %v3352_v2, %v6534_v19  ;;  %v6536_v48 = vld [vmem:[#allocation49_spill] sm:$0xff] }
 0x243   : > { %v3373_v40 = vadd.f32 %v3353_v15, %v6535_v62  ;;  %v3374_v8 = vadd.f32 %v3354_v6, %v6536_v48  ;;  %3383 = vst [vmem:[%s6146_s24 + $0x18] sm:$0xff] %v3363_v51  ;;  %3384 = vst [vmem:[%s6146_s24 + $0x20] sm:$0xff] %v3364_v29  ;;  %v3375_v33 = vadd.f32 %v3355_v44, %v6537_v7 }
 0x244   : > { %3385 = vst [vmem:[%s6146_s24 + $0x28] sm:$0xff] %v3365_v37  ;;  %3386 = vst [vmem:[%s6146_s24 + $0x30] sm:$0xff] %v3366_v26  ;;  %v3376_v6 = vadd.f32 %v3356_v21, %v6538_v10  ;;  %v3377_v60 = vadd.f32 %v3357_v20, %v6539_v14  ;;  %v3378_v17 = vadd.f32 %v3358_v58, %v6540_v32 }
 0x245   : > { %3387 = vst [vmem:[%s6146_s24 + $0x38] sm:$0xff] %v3367_v1  ;;  %3388 = vst [vmem:[%s6146_s24 + $0x40] sm:$0xff] %v3368_v45  ;;  %v3379_v31 = vadd.f32 %v3359_v5, %v6541_v53 }
 0x246   : > { %3389 = vst [vmem:[%s6146_s24 + $0x48] sm:$0xff] %v3369_v56  ;;  %3390 = vst [vmem:[%s6146_s24 + $0x50] sm:$0xff] %v3370_v4 }
 0x247   : > { %3391 = vst [vmem:[%s6146_s24 + $0x58] sm:$0xff] %v3371_v61  ;;  %3392 = vst [vmem:[%s6146_s24 + $0x60] sm:$0xff] %v3372_v59 }
 0x248   : > { %3393 = vst [vmem:[%s6146_s24 + $0x68] sm:$0xff] %v3373_v40  ;;  %3394 = vst [vmem:[%s6146_s24 + $0x70] sm:$0xff] %v3374_v8 }
 0x249   : > { %3395 = vst [vmem:[%s6146_s24 + $0x78] sm:$0xff] %v3375_v33  ;;  %3396 = vst [vmem:[%s6146_s24 + $0x80] sm:$0xff] %v3376_v6 }
 0x24a   : > { %3397 = vst [vmem:[%s6146_s24 + $0x88] sm:$0xff] %v3377_v60  ;;  %3398 = vst [vmem:[%s6146_s24 + $0x90] sm:$0xff] %v3378_v17 }
 0x24b   : > { %3399 = vst [vmem:[%s6146_s24 + $0x98] sm:$0xff] %v3379_v31 }
 0x24c   : > { %4079 = shalt.err (!%p4076_p7)
}
 0x24d   : > { %s4080_s10 = scalar_lea.hbm %s6169_s11, 2560  ;;  %s4084_s29 = scalar_lea.hbm %s6240_s3, 5120 }
 0x24e   : > { %p4081_p10 = scmp.ne.s32.totalorder %s6169_s11, %s4080_s10  ;;  %p4085_p2 = scmp.lt.s32.totalorder %s6169_s11, %s6240_s3 }
 0x24f   : > { %p4086_p8 = scmp.lt.s32.totalorder %s4084_s29, %s4080_s10 }
 0x250   : > { %p4082_p13 = pnand %p4081_p10, %p4243_p9 }
 0x251   : > { %p4087_p0 = por %p4086_p8, %p4085_p2 }
 0x252   : > { %p4083_p1 = pneg %p4082_p13 }
 0x254   : > { %p4088_p3 = pnand %p4087_p0, %p4083_p1 }
 0x256   : > { %4091 = shalt.err (!%p4088_p3)
}
 0x257   : > { %s4165_s17 = smov 640   ;;  %s4166_s0 = smov 1280  }
 0x258   : > { %s4167_s20 = smov 40  }
 0x259   : > { %3824 = dma.vmem_to_hbm [thread:$0]  (%p4243_p9), %s6179_s22, 2560, %s6169_s11, %s3401_s15, %s4165_s17, %s4166_s0, %s4167_s20  }
 0x25a PF: > { %s6542_s30 = sld [smem:[#allocation13_spill]]  ;;  %s3432_s6 = sand.u32 1, %s4130_s12  }
 0x25b   : > { %p3837_p4 = pnand %p3550_p12, %p4250_p11  ;;  %s3433_s7 = scalar_lea.sflag [#allocation4], %s3432_s6 }
 0x25d   : > { %p3838_p5 = pneg %p3837_p4 }
 0x25f   : > { %4125 = dma.done.wait (%p3838_p5), %s3433_s7, 2560  }
 0x260   : > { %4127 = vsyncadd (%p3838_p5), %s3433_s7, 4294964736  ;;  %s22_s17 = sadd.s32 1, %s6542_s30   ;;  %s6543_s18 = sld [smem:[#allocation12_spill]] }
 0x261   : > { %p19_p6 = scmp.ge.s32.totalorder %s22_s17, 4   ;;  %s6544_s14 = sld [smem:[#allocation15_spill]] }
 0x262   : > { %s6545_s25 = sld [smem:[#allocation14_spill]]  ;;  %s6546_s12 = smov %s4134_s13 }
 0x263   : > { %s6548_s15 = smov %s4146_s16 }
 0x264   :  { %21 = sbr.rel (!%p19_p6) target bundleno = 11 (0xb), region = 101 }
 0x266   : > { %s6547_s13 = smov %s6543_s18 }
 0x268   : > { %s6549_s16 = smov %s6545_s25 }
 0x269   :  { %3438 = vsyncpa [#allocation3], 1 }
 0x26a   :  { %3440 = vsyncpa [#allocation3 + $0x1], 1 }
 0x26b   :  { %3441 = vsyncpa [#allocation6], 1 }
 0x26c   :  { %3443 = vsyncpa [#allocation6 + $0x1], 1 }
 0x26d   :  { %3444 = vsyncpa [#allocation4], 1 }
 0x26e   :  { %3446 = vsyncpa [#allocation4 + $0x1], 1 }

</bundles_post_ra>
